<compile_context>
chip_gen: v7x
topology: tpu7x:2x2x1
jax: 0.10.0
libtpu: 0.0.40
codegen_flags: <defaults>
</compile_context>

<pallas_src>
import functools

import jax
import jax.numpy as jnp
from jax.experimental import pallas as pl
from jax.experimental.pallas import tpu as pltpu

# bf16 MXU (both operands bf16, f32 accumulate): recommended on v6e/v7x for
# extra matmul throughput.  Default False so the strict 1e-2 max-abs check
# against the f32 reference passes exactly (review correctness concern #2).
USE_BF16_MXU = False

# Per-tap accumulated matmuls instead of a lane-concatenated im2col for the 4
# block convs.  Recommended True on v7x (MRB accumulates in place); keep False
# on v5e/v6e where the single im2col matmul is the better trade-off.
TAP_ACCUM_BLOCKS = False


def _load_weight(w_ref):
    w = w_ref[...]                                   # bf16 in HBM/VMEM
    return w if USE_BF16_MXU else w.astype(jnp.float32)


def _mxu_dot(a, w):
    if USE_BF16_MXU:
        a = a.astype(jnp.bfloat16)
    return jnp.dot(a, w, preferred_element_type=jnp.float32)


def _fused_backbone_kernel(*refs, tb, stem_rows, stem_l, block_ks):
    # refs = [x, (w, scale, bias) x 5, sel x 4, out]
    n_layers = 1 + len(block_ks)
    x_ref = refs[0]
    wsb = refs[1:1 + 3 * n_layers]
    sel_refs = refs[1 + 3 * n_layers:1 + 3 * n_layers + len(block_ks)]
    o_ref = refs[-1]
    f32 = jnp.float32

    def bn_relu(acc, layer):
        s = wsb[3 * layer + 1][...]
        b = wsb[3 * layer + 2][...]
        return jnp.maximum(acc * s + b, 0.0)

    # ---- stem: conv stride already folded into lanes; per-tap accumulation --
    w0 = _load_weight(wsb[0])                        # (stem_rows*cw, c0_pad)
    cw = x_ref.shape[2]
    xs = [x_ref[b] for b in range(tb)]               # (rows0, cw) per sample
    acc = None
    for r in range(stem_rows):
        xr = jnp.concatenate([xs[b][r:r + stem_l, :] for b in range(tb)],
                             axis=0)                 # (tb*stem_l, cw)
        part = _mxu_dot(xr.astype(f32), w0[r * cw:(r + 1) * cw, :])
        acc = part if acc is None else acc + part
    h = bn_relu(acc, 0)                              # (tb*stem_l, c0_pad) >= 0

    # ---- 4 blocks: conv -> folded BN -> ReLU -> MaxPool1d(3,2,1) ------------
    for i, k in enumerate(block_ks):
        layer = i + 1
        li = h.shape[0] // tb
        c = h.shape[1]
        pad = k // 2
        w = _load_weight(wsb[3 * layer])             # (k*c, c_out)

        # per-sample zero-padded copies ("same" stride-1 conv padding)
        zp = jnp.zeros((pad, c), f32)
        hp = [jnp.concatenate([zp, h[b * li:(b + 1) * li, :], zp], axis=0)
              for b in range(tb)]

        if TAP_ACCUM_BLOCKS:
            acc = None
            for t in range(k):
                xt = jnp.concatenate([hp[b][t:t + li, :] for b in range(tb)],
                                     axis=0)
                part = _mxu_dot(xt, w[t * c:(t + 1) * c, :])
                acc = part if acc is None else acc + part
        else:
            xcol = jnp.concatenate(
                [jnp.concatenate([hp[b][t:t + li, :] for t in range(k)], axis=1)
                 for b in range(tb)], axis=0)        # (tb*li, k*c)
            acc = _mxu_dot(xcol, w)

        y = bn_relu(acc, layer)                      # (tb*li, c_out), >= 0

        # MaxPool1d(kernel=3, stride=2, padding=1).  Zero padding is valid
        # ONLY because y is post-ReLU (>= 0).
        z1 = jnp.zeros((1, y.shape[1]), f32)
        ms = []
        for b in range(tb):
            yp = jnp.concatenate([z1, y[b * li:(b + 1) * li, :], z1], axis=0)
            ms.append(jnp.maximum(jnp.maximum(yp[0:li, :], yp[1:li + 1, :]),
                                  yp[2:li + 2, :]))
        m = jnp.concatenate(ms, axis=0)              # (tb*li, c_out)
        # stride-2 subsample via host-precomputed block-diagonal 0/1 matmul
        h = jnp.dot(sel_refs[i][...], m, preferred_element_type=f32)

    # ---- write back (tb samples along the block's leading dim) --------------
    l_out = h.shape[0] // tb
    for b in range(tb):
        o_ref[b] = h[b * l_out:(b + 1) * l_out, :].astype(o_ref.dtype)


def cnn_backbone_pallas(x_ncl, params, stride, *, batch_block=8):
    """x_ncl: (B, 256, L) float32, PyTorch NCL layout; returns (B, 256, L_out)."""
    B, c_in0, L = x_ncl.shape
    w0, s0, b0 = params[0]                           # w0 bf16 (K0, c_in, 64)
    K0, _, c_out0 = w0.shape
    pad0 = K0 // 2
    l_conv0 = (L + 2 * pad0 - K0) // stride + 1      # PyTorch conv out length
    stem_rows = (K0 - 1) // stride + 1               # row-taps after stride fold
    rows0 = l_conv0 + stem_rows - 1

    tb = min(B, batch_block)                         # samples stacked per step
    nb = (B + tb - 1) // tb
    b_pad = nb * tb

    # ---- host prep: NCL->NLC, pad L + batch, fold conv stride into lanes ----
    x_nlc = jnp.transpose(x_ncl, (0, 2, 1))
    extra = rows0 * stride - (L + pad0)
    x_p = jnp.pad(x_nlc, ((0, b_pad - B), (pad0, max(extra, 0)), (0, 0)))
    x_fold = x_p[:, :rows0 * stride, :].reshape(b_pad, rows0, stride * c_in0)

    # ---- stem weights: zero-pad taps to stem_rows*stride, pad out-channels
    #      up to a multiple of 128 (lane-aligned taps for block 1) ------------
    c0 = ((c_out0 + 127) // 128) * 128
    w0f = (jnp.zeros((stem_rows * stride, c_in0, c0), w0.dtype)
           .at[:K0, :, :c_out0].set(w0)
           .reshape(stem_rows * stride * c_in0, c0))
    s0f = jnp.zeros((1, c0), jnp.float32).at[0, :c_out0].set(s0)
    b0f = jnp.zeros((1, c0), jnp.float32).at[0, :c_out0].set(b0)

    flat = [(w0f, s0f, b0f)]
    block_ks = []
    prev_c = c0
    for w, s, b in params[1:]:
        k, ci, co = w.shape
        block_ks.append(k)
        wz = (jnp.zeros((k, prev_c, co), w.dtype).at[:, :ci, :].set(w)
              .reshape(k * prev_c, co))              # c_in padded if needed
        flat.append((wz, s.reshape(1, -1).astype(jnp.float32),
                     b.reshape(1, -1).astype(jnp.float32)))
        prev_c = co

    # ---- MaxPool stride-2 block-diagonal selection constants (per block) ----
    sels = []
    l = l_conv0
    for _ in block_ks:
        lo = (l - 1) // 2 + 1                        # MaxPool1d(3,2,1) length
        r = jnp.arange(tb * lo)
        cidx = (r // lo) * l + 2 * (r % lo)
        sels.append(jnp.zeros((tb * lo, tb * l), jnp.float32)
                    .at[r, cidx].set(1.0))
        l = lo
    l_out, c_out = l, flat[-1][0].shape[1]

    # ---- cost estimate -------------------------------------------------------
    flops = 2 * b_pad * l_conv0 * w0f.shape[0] * w0f.shape[1]
    ll = l_conv0
    for wf, _, _ in flat[1:]:
        flops += 2 * b_pad * ll * wf.shape[0] * wf.shape[1]
        ll = (ll - 1) // 2 + 1
    bytes_accessed = (x_fold.size * 4 + b_pad * l_out * c_out * 4
                      + sum(a.size * a.dtype.itemsize for t in flat for a in t)
                      + sum(s.size * 4 for s in sels))

    # ---- pallas_call plumbing ------------------------------------------------
    inputs = [x_fold]
    in_specs = [pl.BlockSpec((tb, rows0, stride * c_in0), lambda i: (i, 0, 0))]
    for wf, sf, bf in flat:
        inputs += [wf, sf, bf]
        in_specs += [pl.BlockSpec(wf.shape, lambda i: (0, 0)),
                     pl.BlockSpec(sf.shape, lambda i: (0, 0)),
                     pl.BlockSpec(bf.shape, lambda i: (0, 0))]
    for sel in sels:
        inputs.append(sel)
        in_specs.append(pl.BlockSpec(sel.shape, lambda i: (0, 0)))

    kernel = functools.partial(
        _fused_backbone_kernel, tb=tb, stem_rows=stem_rows, stem_l=l_conv0,
        block_ks=tuple(block_ks))

    out = pl.pallas_call(
        kernel,
        out_shape=jax.ShapeDtypeStruct((b_pad, l_out, c_out), x_ncl.dtype),
        grid=(nb,),
        in_specs=in_specs,
        out_specs=pl.BlockSpec((tb, l_out, c_out), lambda i: (i, 0, 0)),
        compiler_params=pltpu.CompilerParams(dimension_semantics=("parallel",)),
        cost_estimate=pl.CostEstimate(flops=int(flops), transcendentals=0,
                                      bytes_accessed=int(bytes_accessed)),
    )(*inputs)

    return jnp.transpose(out[:B], (0, 2, 1))         # NLC -> NCL


# ---------------------------------------------------------------------------
# Parameters (deterministic, synthetic) and pure-JAX reference
# ---------------------------------------------------------------------------
def make_params(key, kernal_size):
    """Conv weights stored in bf16 (inference storage format used by the
    kernel); eval-mode BN + conv bias folded into per-channel f32 scale/bias."""
    layer_cfg = [
        (256, 64, kernal_size),   # stem
        (64, 128, 7),
        (128, 128, 5),
        (128, 256, 3),
        (256, 256, 3),
    ]
    params = []
    for c_in, c_out, k in layer_cfg:
        key, k1, k2, k3, k4, k5, k6 = jax.random.split(key, 7)
        w = jax.random.normal(k1, (k, c_in, c_out), jnp.float32) / jnp.sqrt(c_in * k)
        conv_b = 0.05 * jax.random.normal(k2, (c_out,), jnp.float32)
        gamma = 1.0 + 0.1 * jax.random.normal(k3, (c_out,), jnp.float32)
        beta = 0.1 * jax.random.normal(k4, (c_out,), jnp.float32)
        r_mean = 0.05 * jax.random.normal(k5, (c_out,), jnp.float32)
        r_var = jax.random.uniform(k6, (c_out,), jnp.float32, 0.5, 1.5)
        scale = gamma / jnp.sqrt(r_var + 1e-5)              # fold BN (eval)
        bias = beta + scale * (conv_b - r_mean)             # fold conv bias
        params.append((w.astype(jnp.bfloat16), scale, bias))
    return params


def cnn_backbone_ref(x_ncl, params, stride):
    """Pure-JAX f32 reference (NCL layout, mirrors PyTorch semantics; uses the
    same bf16-stored weights as the kernel, upcast to f32)."""
    def conv_bn_relu(x, w_kio, scale, bias, s):
        k = w_kio.shape[0]
        w_oik = jnp.transpose(w_kio.astype(jnp.float32), (2, 1, 0))
        y = jax.lax.conv_general_dilated(
            x, w_oik, (s,), [(k // 2, k // 2)],
            dimension_numbers=("NCH", "OIH", "NCH"))
        y = y * scale[None, :, None] + bias[None, :, None]
        return jnp.maximum(y, 0.0)

    def maxpool(x):
        return jax.lax.reduce_window(
            x, -jnp.inf, jax.lax.max,
            (1, 1, 3), (1, 1, 2), [(0, 0), (0, 0), (1, 1)])

    w, s, b = params[0]
    x = conv_bn_relu(x_ncl, w, s, b, stride)
    for w, sc, bi in params[1:]:
        x = maxpool(conv_bn_relu(x, w, sc, bi, 1))
    return x


if __name__ == "__main__":
    KERNAL_SIZE, STRIDE = 5, 2          # CNNBackBone(kernal_size=5, stride=2)
    B, C_IN, L = 2, 256, 64             # input is (N, 256, L) per the stem conv

    key = jax.random.PRNGKey(0)
    kx, kp = jax.random.split(key)
    x = jax.random.normal(kx, (B, C_IN, L), jnp.float32)
    params = make_params(kp, KERNAL_SIZE)

    out = jax.block_until_ready(cnn_backbone_pallas(x, params, STRIDE))
    ref = jax.block_until_ready(cnn_backbone_ref(x, params, STRIDE))

    assert out.shape == ref.shape, (out.shape, ref.shape)
    max_err = float(jnp.max(jnp.abs(out - ref)))
    assert max_err < 1e-2, f"max abs err too large: {max_err}"
    print("KERNEL_OK")
</pallas_src>

<mosaic_0001>
module attributes {stable_mosaic.version = 11 : i64} {
  func.func @_fused_backbone_kernel(%arg0: i32, %arg1: memref<2x34x512xf32, #tpu.memory_space<vmem>>, %arg2: memref<1536x128xbf16, #tpu.memory_space<vmem>>, %arg3: memref<1x128xf32, #tpu.memory_space<vmem>>, %arg4: memref<1x128xf32, #tpu.memory_space<vmem>>, %arg5: memref<896x128xbf16, #tpu.memory_space<vmem>>, %arg6: memref<1x128xf32, #tpu.memory_space<vmem>>, %arg7: memref<1x128xf32, #tpu.memory_space<vmem>>, %arg8: memref<640x128xbf16, #tpu.memory_space<vmem>>, %arg9: memref<1x128xf32, #tpu.memory_space<vmem>>, %arg10: memref<1x128xf32, #tpu.memory_space<vmem>>, %arg11: memref<384x256xbf16, #tpu.memory_space<vmem>>, %arg12: memref<1x256xf32, #tpu.memory_space<vmem>>, %arg13: memref<1x256xf32, #tpu.memory_space<vmem>>, %arg14: memref<768x256xbf16, #tpu.memory_space<vmem>>, %arg15: memref<1x256xf32, #tpu.memory_space<vmem>>, %arg16: memref<1x256xf32, #tpu.memory_space<vmem>>, %arg17: memref<32x64xf32, #tpu.memory_space<vmem>>, %arg18: memref<16x32xf32, #tpu.memory_space<vmem>>, %arg19: memref<8x16xf32, #tpu.memory_space<vmem>>, %arg20: memref<4x8xf32, #tpu.memory_space<vmem>>, %arg21: memref<2x2x256xf32, #tpu.memory_space<vmem>>) attributes {dimension_semantics = [#tpu.dimension_semantics<parallel>], iteration_bounds = array<i64: 1>, scalar_prefetch = 0 : i64, scratch_operands = 0 : i64, tpu.core_type = #tpu.core_type<tc>, window_params = [{transform_indices = @transform_0, window_bounds = array<i64: 2, 34, 512>}, {pipeline_mode = #tpu.pipeline_mode<synchronous>, transform_indices = @transform_1, window_bounds = array<i64: 1536, 128>}, {pipeline_mode = #tpu.pipeline_mode<synchronous>, transform_indices = @transform_2, window_bounds = array<i64: 1, 128>}, {pipeline_mode = #tpu.pipeline_mode<synchronous>, transform_indices = @transform_3, window_bounds = array<i64: 1, 128>}, {pipeline_mode = #tpu.pipeline_mode<synchronous>, transform_indices = @transform_4, window_bounds = array<i64: 896, 128>}, {pipeline_mode = #tpu.pipeline_mode<synchronous>, transform_indices = @transform_5, window_bounds = array<i64: 1, 128>}, {pipeline_mode = #tpu.pipeline_mode<synchronous>, transform_indices = @transform_6, window_bounds = array<i64: 1, 128>}, {pipeline_mode = #tpu.pipeline_mode<synchronous>, transform_indices = @transform_7, window_bounds = array<i64: 640, 128>}, {pipeline_mode = #tpu.pipeline_mode<synchronous>, transform_indices = @transform_8, window_bounds = array<i64: 1, 128>}, {pipeline_mode = #tpu.pipeline_mode<synchronous>, transform_indices = @transform_9, window_bounds = array<i64: 1, 128>}, {pipeline_mode = #tpu.pipeline_mode<synchronous>, transform_indices = @transform_10, window_bounds = array<i64: 384, 256>}, {pipeline_mode = #tpu.pipeline_mode<synchronous>, transform_indices = @transform_11, window_bounds = array<i64: 1, 256>}, {pipeline_mode = #tpu.pipeline_mode<synchronous>, transform_indices = @transform_12, window_bounds = array<i64: 1, 256>}, {pipeline_mode = #tpu.pipeline_mode<synchronous>, transform_indices = @transform_13, window_bounds = array<i64: 768, 256>}, {pipeline_mode = #tpu.pipeline_mode<synchronous>, transform_indices = @transform_14, window_bounds = array<i64: 1, 256>}, {pipeline_mode = #tpu.pipeline_mode<synchronous>, transform_indices = @transform_15, window_bounds = array<i64: 1, 256>}, {pipeline_mode = #tpu.pipeline_mode<synchronous>, transform_indices = @transform_16, window_bounds = array<i64: 32, 64>}, {pipeline_mode = #tpu.pipeline_mode<synchronous>, transform_indices = @transform_17, window_bounds = array<i64: 16, 32>}, {pipeline_mode = #tpu.pipeline_mode<synchronous>, transform_indices = @transform_18, window_bounds = array<i64: 8, 16>}, {pipeline_mode = #tpu.pipeline_mode<synchronous>, transform_indices = @transform_19, window_bounds = array<i64: 4, 8>}, {transform_indices = @transform_20, window_bounds = array<i64: 2, 2, 256>}]} {
    %c0 = arith.constant 0 : index
    %c0_0 = arith.constant 0 : index
    %0 = vector.load %arg2[%c0, %c0_0] : memref<1536x128xbf16, #tpu.memory_space<vmem>>, vector<1536x128xbf16>
    %1 = arith.extf %0 : vector<1536x128xbf16> to vector<1536x128xf32>
    %c0_1 = arith.constant 0 : index
    %c0_2 = arith.constant 0 : index
    %c0_3 = arith.constant 0 : index
    %2 = vector.load %arg1[%c0_1, %c0_2, %c0_3] : memref<2x34x512xf32, #tpu.memory_space<vmem>>, vector<1x34x512xf32>
    %3 = vector.shape_cast %2 : vector<1x34x512xf32> to vector<34x512xf32>
    %c1 = arith.constant 1 : index
    %c0_4 = arith.constant 0 : index
    %c0_5 = arith.constant 0 : index
    %4 = vector.load %arg1[%c1, %c0_4, %c0_5] : memref<2x34x512xf32, #tpu.memory_space<vmem>>, vector<1x34x512xf32>
    %5 = vector.shape_cast %4 : vector<1x34x512xf32> to vector<34x512xf32>
    %6 = vector.extract_strided_slice %3 {offsets = [0, 0], sizes = [32, 512], strides = [1, 1]} : vector<34x512xf32> to vector<32x512xf32>
    %7 = vector.extract_strided_slice %5 {offsets = [0, 0], sizes = [32, 512], strides = [1, 1]} : vector<34x512xf32> to vector<32x512xf32>
    %8 = tpu.concatenate %6, %7 in 0 : vector<32x512xf32>, vector<32x512xf32> -> vector<64x512xf32>
    %9 = vector.extract_strided_slice %1 {offsets = [0, 0], sizes = [512, 128], strides = [1, 1]} : vector<1536x128xf32> to vector<512x128xf32>
    %cst = arith.constant dense<0.000000e+00> : vector<64x128xf32>
    %10 = tpu.matmul %8, %9, %cst {dimension_numbers = #tpu.dot_dimension_numbers<[1], [0], [0], [1], [0, 0, 1, 1], [], []>} : vector<64x512xf32>, vector<512x128xf32>, vector<64x128xf32> -> vector<64x128xf32>
    %11 = vector.extract_strided_slice %3 {offsets = [1, 0], sizes = [32, 512], strides = [1, 1]} : vector<34x512xf32> to vector<32x512xf32>
    %12 = vector.extract_strided_slice %5 {offsets = [1, 0], sizes = [32, 512], strides = [1, 1]} : vector<34x512xf32> to vector<32x512xf32>
    %13 = tpu.concatenate %11, %12 in 0 : vector<32x512xf32>, vector<32x512xf32> -> vector<64x512xf32>
    %14 = vector.extract_strided_slice %1 {offsets = [512, 0], sizes = [512, 128], strides = [1, 1]} : vector<1536x128xf32> to vector<512x128xf32>
    %cst_6 = arith.constant dense<0.000000e+00> : vector<64x128xf32>
    %15 = tpu.matmul %13, %14, %cst_6 {dimension_numbers = #tpu.dot_dimension_numbers<[1], [0], [0], [1], [0, 0, 1, 1], [], []>} : vector<64x512xf32>, vector<512x128xf32>, vector<64x128xf32> -> vector<64x128xf32>
    %16 = arith.addf %10, %15 : vector<64x128xf32>
    %17 = vector.extract_strided_slice %3 {offsets = [2, 0], sizes = [32, 512], strides = [1, 1]} : vector<34x512xf32> to vector<32x512xf32>
    %18 = vector.extract_strided_slice %5 {offsets = [2, 0], sizes = [32, 512], strides = [1, 1]} : vector<34x512xf32> to vector<32x512xf32>
    %19 = tpu.concatenate %17, %18 in 0 : vector<32x512xf32>, vector<32x512xf32> -> vector<64x512xf32>
    %20 = vector.extract_strided_slice %1 {offsets = [1024, 0], sizes = [512, 128], strides = [1, 1]} : vector<1536x128xf32> to vector<512x128xf32>
    %cst_7 = arith.constant dense<0.000000e+00> : vector<64x128xf32>
    %21 = tpu.matmul %19, %20, %cst_7 {dimension_numbers = #tpu.dot_dimension_numbers<[1], [0], [0], [1], [0, 0, 1, 1], [], []>} : vector<64x512xf32>, vector<512x128xf32>, vector<64x128xf32> -> vector<64x128xf32>
    %22 = arith.addf %16, %21 : vector<64x128xf32>
    %c0_8 = arith.constant 0 : index
    %c0_9 = arith.constant 0 : index
    %23 = vector.load %arg3[%c0_8, %c0_9] : memref<1x128xf32, #tpu.memory_space<vmem>>, vector<1x128xf32>
    %c0_10 = arith.constant 0 : index
    %c0_11 = arith.constant 0 : index
    %24 = vector.load %arg4[%c0_10, %c0_11] : memref<1x128xf32, #tpu.memory_space<vmem>>, vector<1x128xf32>
    %25 = vector.broadcast %23 : vector<1x128xf32> to vector<64x128xf32>
    %26 = arith.mulf %22, %25 : vector<64x128xf32>
    %27 = vector.broadcast %24 : vector<1x128xf32> to vector<64x128xf32>
    %28 = arith.addf %26, %27 : vector<64x128xf32>
    %cst_12 = arith.constant 0.000000e+00 : f32
    %29 = vector.broadcast %cst_12 : f32 to vector<64x128xf32>
    %30 = arith.maximumf %28, %29 : vector<64x128xf32>
    %c0_13 = arith.constant 0 : index
    %c0_14 = arith.constant 0 : index
    %31 = vector.load %arg5[%c0_13, %c0_14] : memref<896x128xbf16, #tpu.memory_space<vmem>>, vector<896x128xbf16>
    %32 = arith.extf %31 : vector<896x128xbf16> to vector<896x128xf32>
    %cst_15 = arith.constant 0.000000e+00 : f32
    %33 = vector.broadcast %cst_15 : f32 to vector<3x128xf32>
    %34 = vector.extract_strided_slice %30 {offsets = [0, 0], sizes = [32, 128], strides = [1, 1]} : vector<64x128xf32> to vector<32x128xf32>
    %35 = tpu.concatenate %33, %34, %33 in 0 : vector<3x128xf32>, vector<32x128xf32>, vector<3x128xf32> -> vector<38x128xf32>
    %36 = vector.extract_strided_slice %30 {offsets = [32, 0], sizes = [32, 128], strides = [1, 1]} : vector<64x128xf32> to vector<32x128xf32>
    %37 = tpu.concatenate %33, %36, %33 in 0 : vector<3x128xf32>, vector<32x128xf32>, vector<3x128xf32> -> vector<38x128xf32>
    %38 = vector.extract_strided_slice %35 {offsets = [0, 0], sizes = [32, 128], strides = [1, 1]} : vector<38x128xf32> to vector<32x128xf32>
    %39 = vector.extract_strided_slice %35 {offsets = [1, 0], sizes = [32, 128], strides = [1, 1]} : vector<38x128xf32> to vector<32x128xf32>
    %40 = vector.extract_strided_slice %35 {offsets = [2, 0], sizes = [32, 128], strides = [1, 1]} : vector<38x128xf32> to vector<32x128xf32>
    %41 = vector.extract_strided_slice %35 {offsets = [3, 0], sizes = [32, 128], strides = [1, 1]} : vector<38x128xf32> to vector<32x128xf32>
    %42 = vector.extract_strided_slice %35 {offsets = [4, 0], sizes = [32, 128], strides = [1, 1]} : vector<38x128xf32> to vector<32x128xf32>
    %43 = vector.extract_strided_slice %35 {offsets = [5, 0], sizes = [32, 128], strides = [1, 1]} : vector<38x128xf32> to vector<32x128xf32>
    %44 = vector.extract_strided_slice %35 {offsets = [6, 0], sizes = [32, 128], strides = [1, 1]} : vector<38x128xf32> to vector<32x128xf32>
    %45 = tpu.concatenate %38, %39, %40, %41, %42, %43, %44 in 1 : vector<32x128xf32>, vector<32x128xf32>, vector<32x128xf32>, vector<32x128xf32>, vector<32x128xf32>, vector<32x128xf32>, vector<32x128xf32> -> vector<32x896xf32>
    %46 = vector.extract_strided_slice %37 {offsets = [0, 0], sizes = [32, 128], strides = [1, 1]} : vector<38x128xf32> to vector<32x128xf32>
    %47 = vector.extract_strided_slice %37 {offsets = [1, 0], sizes = [32, 128], strides = [1, 1]} : vector<38x128xf32> to vector<32x128xf32>
    %48 = vector.extract_strided_slice %37 {offsets = [2, 0], sizes = [32, 128], strides = [1, 1]} : vector<38x128xf32> to vector<32x128xf32>
    %49 = vector.extract_strided_slice %37 {offsets = [3, 0], sizes = [32, 128], strides = [1, 1]} : vector<38x128xf32> to vector<32x128xf32>
    %50 = vector.extract_strided_slice %37 {offsets = [4, 0], sizes = [32, 128], strides = [1, 1]} : vector<38x128xf32> to vector<32x128xf32>
    %51 = vector.extract_strided_slice %37 {offsets = [5, 0], sizes = [32, 128], strides = [1, 1]} : vector<38x128xf32> to vector<32x128xf32>
    %52 = vector.extract_strided_slice %37 {offsets = [6, 0], sizes = [32, 128], strides = [1, 1]} : vector<38x128xf32> to vector<32x128xf32>
    %53 = tpu.concatenate %46, %47, %48, %49, %50, %51, %52 in 1 : vector<32x128xf32>, vector<32x128xf32>, vector<32x128xf32>, vector<32x128xf32>, vector<32x128xf32>, vector<32x128xf32>, vector<32x128xf32> -> vector<32x896xf32>
    %54 = tpu.concatenate %45, %53 in 0 : vector<32x896xf32>, vector<32x896xf32> -> vector<64x896xf32>
    %cst_16 = arith.constant dense<0.000000e+00> : vector<64x128xf32>
    %55 = tpu.matmul %54, %32, %cst_16 {dimension_numbers = #tpu.dot_dimension_numbers<[1], [0], [0], [1], [0, 0, 1, 1], [], []>} : vector<64x896xf32>, vector<896x128xf32>, vector<64x128xf32> -> vector<64x128xf32>
    %c0_17 = arith.constant 0 : index
    %c0_18 = arith.constant 0 : index
    %56 = vector.load %arg6[%c0_17, %c0_18] : memref<1x128xf32, #tpu.memory_space<vmem>>, vector<1x128xf32>
    %c0_19 = arith.constant 0 : index
    %c0_20 = arith.constant 0 : index
    %57 = vector.load %arg7[%c0_19, %c0_20] : memref<1x128xf32, #tpu.memory_space<vmem>>, vector<1x128xf32>
    %58 = vector.broadcast %56 : vector<1x128xf32> to vector<64x128xf32>
    %59 = arith.mulf %55, %58 : vector<64x128xf32>
    %60 = vector.broadcast %57 : vector<1x128xf32> to vector<64x128xf32>
    %61 = arith.addf %59, %60 : vector<64x128xf32>
    %cst_21 = arith.constant 0.000000e+00 : f32
    %62 = vector.broadcast %cst_21 : f32 to vector<64x128xf32>
    %63 = arith.maximumf %61, %62 : vector<64x128xf32>
    %cst_22 = arith.constant 0.000000e+00 : f32
    %64 = vector.broadcast %cst_22 : f32 to vector<1x128xf32>
    %65 = vector.extract_strided_slice %63 {offsets = [0, 0], sizes = [32, 128], strides = [1, 1]} : vector<64x128xf32> to vector<32x128xf32>
    %66 = tpu.concatenate %64, %65, %64 in 0 : vector<1x128xf32>, vector<32x128xf32>, vector<1x128xf32> -> vector<34x128xf32>
    %67 = vector.extract_strided_slice %66 {offsets = [0, 0], sizes = [32, 128], strides = [1, 1]} : vector<34x128xf32> to vector<32x128xf32>
    %68 = vector.extract_strided_slice %66 {offsets = [1, 0], sizes = [32, 128], strides = [1, 1]} : vector<34x128xf32> to vector<32x128xf32>
    %69 = arith.maximumf %67, %68 : vector<32x128xf32>
    %70 = vector.extract_strided_slice %66 {offsets = [2, 0], sizes = [32, 128], strides = [1, 1]} : vector<34x128xf32> to vector<32x128xf32>
    %71 = arith.maximumf %69, %70 : vector<32x128xf32>
    %72 = vector.extract_strided_slice %63 {offsets = [32, 0], sizes = [32, 128], strides = [1, 1]} : vector<64x128xf32> to vector<32x128xf32>
    %73 = tpu.concatenate %64, %72, %64 in 0 : vector<1x128xf32>, vector<32x128xf32>, vector<1x128xf32> -> vector<34x128xf32>
    %74 = vector.extract_strided_slice %73 {offsets = [0, 0], sizes = [32, 128], strides = [1, 1]} : vector<34x128xf32> to vector<32x128xf32>
    %75 = vector.extract_strided_slice %73 {offsets = [1, 0], sizes = [32, 128], strides = [1, 1]} : vector<34x128xf32> to vector<32x128xf32>
    %76 = arith.maximumf %74, %75 : vector<32x128xf32>
    %77 = vector.extract_strided_slice %73 {offsets = [2, 0], sizes = [32, 128], strides = [1, 1]} : vector<34x128xf32> to vector<32x128xf32>
    %78 = arith.maximumf %76, %77 : vector<32x128xf32>
    %79 = tpu.concatenate %71, %78 in 0 : vector<32x128xf32>, vector<32x128xf32> -> vector<64x128xf32>
    %c0_23 = arith.constant 0 : index
    %c0_24 = arith.constant 0 : index
    %80 = vector.load %arg17[%c0_23, %c0_24] : memref<32x64xf32, #tpu.memory_space<vmem>>, vector<32x64xf32>
    %cst_25 = arith.constant dense<0.000000e+00> : vector<32x128xf32>
    %81 = tpu.matmul %80, %79, %cst_25 {dimension_numbers = #tpu.dot_dimension_numbers<[1], [0], [0], [1], [0, 0, 1, 1], [], []>} : vector<32x64xf32>, vector<64x128xf32>, vector<32x128xf32> -> vector<32x128xf32>
    %c0_26 = arith.constant 0 : index
    %c0_27 = arith.constant 0 : index
    %82 = vector.load %arg8[%c0_26, %c0_27] : memref<640x128xbf16, #tpu.memory_space<vmem>>, vector<640x128xbf16>
    %83 = arith.extf %82 : vector<640x128xbf16> to vector<640x128xf32>
    %cst_28 = arith.constant 0.000000e+00 : f32
    %84 = vector.broadcast %cst_28 : f32 to vector<2x128xf32>
    %85 = vector.extract_strided_slice %81 {offsets = [0, 0], sizes = [16, 128], strides = [1, 1]} : vector<32x128xf32> to vector<16x128xf32>
    %86 = tpu.concatenate %84, %85, %84 in 0 : vector<2x128xf32>, vector<16x128xf32>, vector<2x128xf32> -> vector<20x128xf32>
    %87 = vector.extract_strided_slice %81 {offsets = [16, 0], sizes = [16, 128], strides = [1, 1]} : vector<32x128xf32> to vector<16x128xf32>
    %88 = tpu.concatenate %84, %87, %84 in 0 : vector<2x128xf32>, vector<16x128xf32>, vector<2x128xf32> -> vector<20x128xf32>
    %89 = vector.extract_strided_slice %86 {offsets = [0, 0], sizes = [16, 128], strides = [1, 1]} : vector<20x128xf32> to vector<16x128xf32>
    %90 = vector.extract_strided_slice %86 {offsets = [1, 0], sizes = [16, 128], strides = [1, 1]} : vector<20x128xf32> to vector<16x128xf32>
    %91 = vector.extract_strided_slice %86 {offsets = [2, 0], sizes = [16, 128], strides = [1, 1]} : vector<20x128xf32> to vector<16x128xf32>
    %92 = vector.extract_strided_slice %86 {offsets = [3, 0], sizes = [16, 128], strides = [1, 1]} : vector<20x128xf32> to vector<16x128xf32>
    %93 = vector.extract_strided_slice %86 {offsets = [4, 0], sizes = [16, 128], strides = [1, 1]} : vector<20x128xf32> to vector<16x128xf32>
    %94 = tpu.concatenate %89, %90, %91, %92, %93 in 1 : vector<16x128xf32>, vector<16x128xf32>, vector<16x128xf32>, vector<16x128xf32>, vector<16x128xf32> -> vector<16x640xf32>
    %95 = vector.extract_strided_slice %88 {offsets = [0, 0], sizes = [16, 128], strides = [1, 1]} : vector<20x128xf32> to vector<16x128xf32>
    %96 = vector.extract_strided_slice %88 {offsets = [1, 0], sizes = [16, 128], strides = [1, 1]} : vector<20x128xf32> to vector<16x128xf32>
    %97 = vector.extract_strided_slice %88 {offsets = [2, 0], sizes = [16, 128], strides = [1, 1]} : vector<20x128xf32> to vector<16x128xf32>
    %98 = vector.extract_strided_slice %88 {offsets = [3, 0], sizes = [16, 128], strides = [1, 1]} : vector<20x128xf32> to vector<16x128xf32>
    %99 = vector.extract_strided_slice %88 {offsets = [4, 0], sizes = [16, 128], strides = [1, 1]} : vector<20x128xf32> to vector<16x128xf32>
    %100 = tpu.concatenate %95, %96, %97, %98, %99 in 1 : vector<16x128xf32>, vector<16x128xf32>, vector<16x128xf32>, vector<16x128xf32>, vector<16x128xf32> -> vector<16x640xf32>
    %101 = tpu.concatenate %94, %100 in 0 : vector<16x640xf32>, vector<16x640xf32> -> vector<32x640xf32>
    %cst_29 = arith.constant dense<0.000000e+00> : vector<32x128xf32>
    %102 = tpu.matmul %101, %83, %cst_29 {dimension_numbers = #tpu.dot_dimension_numbers<[1], [0], [0], [1], [0, 0, 1, 1], [], []>} : vector<32x640xf32>, vector<640x128xf32>, vector<32x128xf32> -> vector<32x128xf32>
    %c0_30 = arith.constant 0 : index
    %c0_31 = arith.constant 0 : index
    %103 = vector.load %arg9[%c0_30, %c0_31] : memref<1x128xf32, #tpu.memory_space<vmem>>, vector<1x128xf32>
    %c0_32 = arith.constant 0 : index
    %c0_33 = arith.constant 0 : index
    %104 = vector.load %arg10[%c0_32, %c0_33] : memref<1x128xf32, #tpu.memory_space<vmem>>, vector<1x128xf32>
    %105 = vector.broadcast %103 : vector<1x128xf32> to vector<32x128xf32>
    %106 = arith.mulf %102, %105 : vector<32x128xf32>
    %107 = vector.broadcast %104 : vector<1x128xf32> to vector<32x128xf32>
    %108 = arith.addf %106, %107 : vector<32x128xf32>
    %cst_34 = arith.constant 0.000000e+00 : f32
    %109 = vector.broadcast %cst_34 : f32 to vector<32x128xf32>
    %110 = arith.maximumf %108, %109 : vector<32x128xf32>
    %cst_35 = arith.constant 0.000000e+00 : f32
    %111 = vector.broadcast %cst_35 : f32 to vector<1x128xf32>
    %112 = vector.extract_strided_slice %110 {offsets = [0, 0], sizes = [16, 128], strides = [1, 1]} : vector<32x128xf32> to vector<16x128xf32>
    %113 = tpu.concatenate %111, %112, %111 in 0 : vector<1x128xf32>, vector<16x128xf32>, vector<1x128xf32> -> vector<18x128xf32>
    %114 = vector.extract_strided_slice %113 {offsets = [0, 0], sizes = [16, 128], strides = [1, 1]} : vector<18x128xf32> to vector<16x128xf32>
    %115 = vector.extract_strided_slice %113 {offsets = [1, 0], sizes = [16, 128], strides = [1, 1]} : vector<18x128xf32> to vector<16x128xf32>
    %116 = arith.maximumf %114, %115 : vector<16x128xf32>
    %117 = vector.extract_strided_slice %113 {offsets = [2, 0], sizes = [16, 128], strides = [1, 1]} : vector<18x128xf32> to vector<16x128xf32>
    %118 = arith.maximumf %116, %117 : vector<16x128xf32>
    %119 = vector.extract_strided_slice %110 {offsets = [16, 0], sizes = [16, 128], strides = [1, 1]} : vector<32x128xf32> to vector<16x128xf32>
    %120 = tpu.concatenate %111, %119, %111 in 0 : vector<1x128xf32>, vector<16x128xf32>, vector<1x128xf32> -> vector<18x128xf32>
    %121 = vector.extract_strided_slice %120 {offsets = [0, 0], sizes = [16, 128], strides = [1, 1]} : vector<18x128xf32> to vector<16x128xf32>
    %122 = vector.extract_strided_slice %120 {offsets = [1, 0], sizes = [16, 128], strides = [1, 1]} : vector<18x128xf32> to vector<16x128xf32>
    %123 = arith.maximumf %121, %122 : vector<16x128xf32>
    %124 = vector.extract_strided_slice %120 {offsets = [2, 0], sizes = [16, 128], strides = [1, 1]} : vector<18x128xf32> to vector<16x128xf32>
    %125 = arith.maximumf %123, %124 : vector<16x128xf32>
    %126 = tpu.concatenate %118, %125 in 0 : vector<16x128xf32>, vector<16x128xf32> -> vector<32x128xf32>
    %c0_36 = arith.constant 0 : index
    %c0_37 = arith.constant 0 : index
    %127 = vector.load %arg18[%c0_36, %c0_37] : memref<16x32xf32, #tpu.memory_space<vmem>>, vector<16x32xf32>
    %cst_38 = arith.constant dense<0.000000e+00> : vector<16x128xf32>
    %128 = tpu.matmul %127, %126, %cst_38 {dimension_numbers = #tpu.dot_dimension_numbers<[1], [0], [0], [1], [0, 0, 1, 1], [], []>} : vector<16x32xf32>, vector<32x128xf32>, vector<16x128xf32> -> vector<16x128xf32>
    %c0_39 = arith.constant 0 : index
    %c0_40 = arith.constant 0 : index
    %129 = vector.load %arg11[%c0_39, %c0_40] : memref<384x256xbf16, #tpu.memory_space<vmem>>, vector<384x256xbf16>
    %130 = arith.extf %129 : vector<384x256xbf16> to vector<384x256xf32>
    %cst_41 = arith.constant 0.000000e+00 : f32
    %131 = vector.broadcast %cst_41 : f32 to vector<1x128xf32>
    %132 = vector.extract_strided_slice %128 {offsets = [0, 0], sizes = [8, 128], strides = [1, 1]} : vector<16x128xf32> to vector<8x128xf32>
    %133 = tpu.concatenate %131, %132, %131 in 0 : vector<1x128xf32>, vector<8x128xf32>, vector<1x128xf32> -> vector<10x128xf32>
    %134 = vector.extract_strided_slice %128 {offsets = [8, 0], sizes = [8, 128], strides = [1, 1]} : vector<16x128xf32> to vector<8x128xf32>
    %135 = tpu.concatenate %131, %134, %131 in 0 : vector<1x128xf32>, vector<8x128xf32>, vector<1x128xf32> -> vector<10x128xf32>
    %136 = vector.extract_strided_slice %133 {offsets = [0, 0], sizes = [8, 128], strides = [1, 1]} : vector<10x128xf32> to vector<8x128xf32>
    %137 = vector.extract_strided_slice %133 {offsets = [1, 0], sizes = [8, 128], strides = [1, 1]} : vector<10x128xf32> to vector<8x128xf32>
    %138 = vector.extract_strided_slice %133 {offsets = [2, 0], sizes = [8, 128], strides = [1, 1]} : vector<10x128xf32> to vector<8x128xf32>
    %139 = tpu.concatenate %136, %137, %138 in 1 : vector<8x128xf32>, vector<8x128xf32>, vector<8x128xf32> -> vector<8x384xf32>
    %140 = vector.extract_strided_slice %135 {offsets = [0, 0], sizes = [8, 128], strides = [1, 1]} : vector<10x128xf32> to vector<8x128xf32>
    %141 = vector.extract_strided_slice %135 {offsets = [1, 0], sizes = [8, 128], strides = [1, 1]} : vector<10x128xf32> to vector<8x128xf32>
    %142 = vector.extract_strided_slice %135 {offsets = [2, 0], sizes = [8, 128], strides = [1, 1]} : vector<10x128xf32> to vector<8x128xf32>
    %143 = tpu.concatenate %140, %141, %142 in 1 : vector<8x128xf32>, vector<8x128xf32>, vector<8x128xf32> -> vector<8x384xf32>
    %144 = tpu.concatenate %139, %143 in 0 : vector<8x384xf32>, vector<8x384xf32> -> vector<16x384xf32>
    %cst_42 = arith.constant dense<0.000000e+00> : vector<16x256xf32>
    %145 = tpu.matmul %144, %130, %cst_42 {dimension_numbers = #tpu.dot_dimension_numbers<[1], [0], [0], [1], [0, 0, 1, 1], [], []>} : vector<16x384xf32>, vector<384x256xf32>, vector<16x256xf32> -> vector<16x256xf32>
    %c0_43 = arith.constant 0 : index
    %c0_44 = arith.constant 0 : index
    %146 = vector.load %arg12[%c0_43, %c0_44] : memref<1x256xf32, #tpu.memory_space<vmem>>, vector<1x256xf32>
    %c0_45 = arith.constant 0 : index
    %c0_46 = arith.constant 0 : index
    %147 = vector.load %arg13[%c0_45, %c0_46] : memref<1x256xf32, #tpu.memory_space<vmem>>, vector<1x256xf32>
    %148 = vector.broadcast %146 : vector<1x256xf32> to vector<16x256xf32>
    %149 = arith.mulf %145, %148 : vector<16x256xf32>
    %150 = vector.broadcast %147 : vector<1x256xf32> to vector<16x256xf32>
    %151 = arith.addf %149, %150 : vector<16x256xf32>
    %cst_47 = arith.constant 0.000000e+00 : f32
    %152 = vector.broadcast %cst_47 : f32 to vector<16x256xf32>
    %153 = arith.maximumf %151, %152 : vector<16x256xf32>
    %cst_48 = arith.constant 0.000000e+00 : f32
    %154 = vector.broadcast %cst_48 : f32 to vector<1x256xf32>
    %155 = vector.extract_strided_slice %153 {offsets = [0, 0], sizes = [8, 256], strides = [1, 1]} : vector<16x256xf32> to vector<8x256xf32>
    %156 = tpu.concatenate %154, %155, %154 in 0 : vector<1x256xf32>, vector<8x256xf32>, vector<1x256xf32> -> vector<10x256xf32>
    %157 = vector.extract_strided_slice %156 {offsets = [0, 0], sizes = [8, 256], strides = [1, 1]} : vector<10x256xf32> to vector<8x256xf32>
    %158 = vector.extract_strided_slice %156 {offsets = [1, 0], sizes = [8, 256], strides = [1, 1]} : vector<10x256xf32> to vector<8x256xf32>
    %159 = arith.maximumf %157, %158 : vector<8x256xf32>
    %160 = vector.extract_strided_slice %156 {offsets = [2, 0], sizes = [8, 256], strides = [1, 1]} : vector<10x256xf32> to vector<8x256xf32>
    %161 = arith.maximumf %159, %160 : vector<8x256xf32>
    %162 = vector.extract_strided_slice %153 {offsets = [8, 0], sizes = [8, 256], strides = [1, 1]} : vector<16x256xf32> to vector<8x256xf32>
    %163 = tpu.concatenate %154, %162, %154 in 0 : vector<1x256xf32>, vector<8x256xf32>, vector<1x256xf32> -> vector<10x256xf32>
    %164 = vector.extract_strided_slice %163 {offsets = [0, 0], sizes = [8, 256], strides = [1, 1]} : vector<10x256xf32> to vector<8x256xf32>
    %165 = vector.extract_strided_slice %163 {offsets = [1, 0], sizes = [8, 256], strides = [1, 1]} : vector<10x256xf32> to vector<8x256xf32>
    %166 = arith.maximumf %164, %165 : vector<8x256xf32>
    %167 = vector.extract_strided_slice %163 {offsets = [2, 0], sizes = [8, 256], strides = [1, 1]} : vector<10x256xf32> to vector<8x256xf32>
    %168 = arith.maximumf %166, %167 : vector<8x256xf32>
    %169 = tpu.concatenate %161, %168 in 0 : vector<8x256xf32>, vector<8x256xf32> -> vector<16x256xf32>
    %c0_49 = arith.constant 0 : index
    %c0_50 = arith.constant 0 : index
    %170 = vector.load %arg19[%c0_49, %c0_50] : memref<8x16xf32, #tpu.memory_space<vmem>>, vector<8x16xf32>
    %cst_51 = arith.constant dense<0.000000e+00> : vector<8x256xf32>
    %171 = tpu.matmul %170, %169, %cst_51 {dimension_numbers = #tpu.dot_dimension_numbers<[1], [0], [0], [1], [0, 0, 1, 1], [], []>} : vector<8x16xf32>, vector<16x256xf32>, vector<8x256xf32> -> vector<8x256xf32>
    %c0_52 = arith.constant 0 : index
    %c0_53 = arith.constant 0 : index
    %172 = vector.load %arg14[%c0_52, %c0_53] : memref<768x256xbf16, #tpu.memory_space<vmem>>, vector<768x256xbf16>
    %173 = arith.extf %172 : vector<768x256xbf16> to vector<768x256xf32>
    %cst_54 = arith.constant 0.000000e+00 : f32
    %174 = vector.broadcast %cst_54 : f32 to vector<1x256xf32>
    %175 = vector.extract_strided_slice %171 {offsets = [0, 0], sizes = [4, 256], strides = [1, 1]} : vector<8x256xf32> to vector<4x256xf32>
    %176 = tpu.concatenate %174, %175, %174 in 0 : vector<1x256xf32>, vector<4x256xf32>, vector<1x256xf32> -> vector<6x256xf32>
    %177 = vector.extract_strided_slice %171 {offsets = [4, 0], sizes = [4, 256], strides = [1, 1]} : vector<8x256xf32> to vector<4x256xf32>
    %178 = tpu.concatenate %174, %177, %174 in 0 : vector<1x256xf32>, vector<4x256xf32>, vector<1x256xf32> -> vector<6x256xf32>
    %179 = vector.extract_strided_slice %176 {offsets = [0, 0], sizes = [4, 256], strides = [1, 1]} : vector<6x256xf32> to vector<4x256xf32>
    %180 = vector.extract_strided_slice %176 {offsets = [1, 0], sizes = [4, 256], strides = [1, 1]} : vector<6x256xf32> to vector<4x256xf32>
    %181 = vector.extract_strided_slice %176 {offsets = [2, 0], sizes = [4, 256], strides = [1, 1]} : vector<6x256xf32> to vector<4x256xf32>
    %182 = tpu.concatenate %179, %180, %181 in 1 : vector<4x256xf32>, vector<4x256xf32>, vector<4x256xf32> -> vector<4x768xf32>
    %183 = vector.extract_strided_slice %178 {offsets = [0, 0], sizes = [4, 256], strides = [1, 1]} : vector<6x256xf32> to vector<4x256xf32>
    %184 = vector.extract_strided_slice %178 {offsets = [1, 0], sizes = [4, 256], strides = [1, 1]} : vector<6x256xf32> to vector<4x256xf32>
    %185 = vector.extract_strided_slice %178 {offsets = [2, 0], sizes = [4, 256], strides = [1, 1]} : vector<6x256xf32> to vector<4x256xf32>
    %186 = tpu.concatenate %183, %184, %185 in 1 : vector<4x256xf32>, vector<4x256xf32>, vector<4x256xf32> -> vector<4x768xf32>
    %187 = tpu.concatenate %182, %186 in 0 : vector<4x768xf32>, vector<4x768xf32> -> vector<8x768xf32>
    %cst_55 = arith.constant dense<0.000000e+00> : vector<8x256xf32>
    %188 = tpu.matmul %187, %173, %cst_55 {dimension_numbers = #tpu.dot_dimension_numbers<[1], [0], [0], [1], [0, 0, 1, 1], [], []>} : vector<8x768xf32>, vector<768x256xf32>, vector<8x256xf32> -> vector<8x256xf32>
    %c0_56 = arith.constant 0 : index
    %c0_57 = arith.constant 0 : index
    %189 = vector.load %arg15[%c0_56, %c0_57] : memref<1x256xf32, #tpu.memory_space<vmem>>, vector<1x256xf32>
    %c0_58 = arith.constant 0 : index
    %c0_59 = arith.constant 0 : index
    %190 = vector.load %arg16[%c0_58, %c0_59] : memref<1x256xf32, #tpu.memory_space<vmem>>, vector<1x256xf32>
    %191 = vector.broadcast %189 : vector<1x256xf32> to vector<8x256xf32>
    %192 = arith.mulf %188, %191 : vector<8x256xf32>
    %193 = vector.broadcast %190 : vector<1x256xf32> to vector<8x256xf32>
    %194 = arith.addf %192, %193 : vector<8x256xf32>
    %cst_60 = arith.constant 0.000000e+00 : f32
    %195 = vector.broadcast %cst_60 : f32 to vector<8x256xf32>
    %196 = arith.maximumf %194, %195 : vector<8x256xf32>
    %cst_61 = arith.constant 0.000000e+00 : f32
    %197 = vector.broadcast %cst_61 : f32 to vector<1x256xf32>
    %198 = vector.extract_strided_slice %196 {offsets = [0, 0], sizes = [4, 256], strides = [1, 1]} : vector<8x256xf32> to vector<4x256xf32>
    %199 = tpu.concatenate %197, %198, %197 in 0 : vector<1x256xf32>, vector<4x256xf32>, vector<1x256xf32> -> vector<6x256xf32>
    %200 = vector.extract_strided_slice %199 {offsets = [0, 0], sizes = [4, 256], strides = [1, 1]} : vector<6x256xf32> to vector<4x256xf32>
    %201 = vector.extract_strided_slice %199 {offsets = [1, 0], sizes = [4, 256], strides = [1, 1]} : vector<6x256xf32> to vector<4x256xf32>
    %202 = arith.maximumf %200, %201 : vector<4x256xf32>
    %203 = vector.extract_strided_slice %199 {offsets = [2, 0], sizes = [4, 256], strides = [1, 1]} : vector<6x256xf32> to vector<4x256xf32>
    %204 = arith.maximumf %202, %203 : vector<4x256xf32>
    %205 = vector.extract_strided_slice %196 {offsets = [4, 0], sizes = [4, 256], strides = [1, 1]} : vector<8x256xf32> to vector<4x256xf32>
    %206 = tpu.concatenate %197, %205, %197 in 0 : vector<1x256xf32>, vector<4x256xf32>, vector<1x256xf32> -> vector<6x256xf32>
    %207 = vector.extract_strided_slice %206 {offsets = [0, 0], sizes = [4, 256], strides = [1, 1]} : vector<6x256xf32> to vector<4x256xf32>
    %208 = vector.extract_strided_slice %206 {offsets = [1, 0], sizes = [4, 256], strides = [1, 1]} : vector<6x256xf32> to vector<4x256xf32>
    %209 = arith.maximumf %207, %208 : vector<4x256xf32>
    %210 = vector.extract_strided_slice %206 {offsets = [2, 0], sizes = [4, 256], strides = [1, 1]} : vector<6x256xf32> to vector<4x256xf32>
    %211 = arith.maximumf %209, %210 : vector<4x256xf32>
    %212 = tpu.concatenate %204, %211 in 0 : vector<4x256xf32>, vector<4x256xf32> -> vector<8x256xf32>
    %c0_62 = arith.constant 0 : index
    %c0_63 = arith.constant 0 : index
    %213 = vector.load %arg20[%c0_62, %c0_63] : memref<4x8xf32, #tpu.memory_space<vmem>>, vector<4x8xf32>
    %cst_64 = arith.constant dense<0.000000e+00> : vector<4x256xf32>
    %214 = tpu.matmul %213, %212, %cst_64 {dimension_numbers = #tpu.dot_dimension_numbers<[1], [0], [0], [1], [0, 0, 1, 1], [], []>} : vector<4x8xf32>, vector<8x256xf32>, vector<4x256xf32> -> vector<4x256xf32>
    %215 = vector.extract_strided_slice %214 {offsets = [0, 0], sizes = [2, 256], strides = [1, 1]} : vector<4x256xf32> to vector<2x256xf32>
    %c0_65 = arith.constant 0 : index
    %c0_66 = arith.constant 0 : index
    %c0_67 = arith.constant 0 : index
    %216 = vector.load %arg21[%c0_65, %c0_66, %c0_67] : memref<2x2x256xf32, #tpu.memory_space<vmem>>, vector<1x2x256xf32>
    %217 = vector.shape_cast %216 : vector<1x2x256xf32> to vector<2x256xf32>
    %218 = vector.shape_cast %215 : vector<2x256xf32> to vector<1x2x256xf32>
    tpu.vector_store %arg21[%c0_65, %c0_66, %c0_67], %218 {strides = array<i32>} : memref<2x2x256xf32, #tpu.memory_space<vmem>>, vector<1x2x256xf32>,
    %219 = vector.extract_strided_slice %214 {offsets = [2, 0], sizes = [2, 256], strides = [1, 1]} : vector<4x256xf32> to vector<2x256xf32>
    %c1_68 = arith.constant 1 : index
    %c0_69 = arith.constant 0 : index
    %c0_70 = arith.constant 0 : index
    %220 = vector.load %arg21[%c1_68, %c0_69, %c0_70] : memref<2x2x256xf32, #tpu.memory_space<vmem>>, vector<1x2x256xf32>
    %221 = vector.shape_cast %220 : vector<1x2x256xf32> to vector<2x256xf32>
    %222 = vector.shape_cast %219 : vector<2x256xf32> to vector<1x2x256xf32>
    tpu.vector_store %arg21[%c1_68, %c0_69, %c0_70], %222 {strides = array<i32>} : memref<2x2x256xf32, #tpu.memory_space<vmem>>, vector<1x2x256xf32>,
    return
  }
  func.func @transform_0(%arg0: i32) -> (i32, i32, i32) {
    %c0_i32 = arith.constant 0 : i32
    %c0_i32_0 = arith.constant 0 : i32
    %c0_i32_1 = arith.constant 0 : i32
    return %arg0, %c0_i32, %c0_i32_0 : i32, i32, i32
  }
  func.func @transform_1(%arg0: i32) -> (i32, i32) {
    %c0_i32 = arith.constant 0 : i32
    %c0_i32_0 = arith.constant 0 : i32
    %c0_i32_1 = arith.constant 0 : i32
    return %c0_i32, %c0_i32_0 : i32, i32
  }
  func.func @transform_2(%arg0: i32) -> (i32, i32) {
    %c0_i32 = arith.constant 0 : i32
    %c0_i32_0 = arith.constant 0 : i32
    %c0_i32_1 = arith.constant 0 : i32
    return %c0_i32, %c0_i32_0 : i32, i32
  }
  func.func @transform_3(%arg0: i32) -> (i32, i32) {
    %c0_i32 = arith.constant 0 : i32
    %c0_i32_0 = arith.constant 0 : i32
    %c0_i32_1 = arith.constant 0 : i32
    return %c0_i32, %c0_i32_0 : i32, i32
  }
  func.func @transform_4(%arg0: i32) -> (i32, i32) {
    %c0_i32 = arith.constant 0 : i32
    %c0_i32_0 = arith.constant 0 : i32
    %c0_i32_1 = arith.constant 0 : i32
    return %c0_i32, %c0_i32_0 : i32, i32
  }
  func.func @transform_5(%arg0: i32) -> (i32, i32) {
    %c0_i32 = arith.constant 0 : i32
    %c0_i32_0 = arith.constant 0 : i32
    %c0_i32_1 = arith.constant 0 : i32
    return %c0_i32, %c0_i32_0 : i32, i32
  }
  func.func @transform_6(%arg0: i32) -> (i32, i32) {
    %c0_i32 = arith.constant 0 : i32
    %c0_i32_0 = arith.constant 0 : i32
    %c0_i32_1 = arith.constant 0 : i32
    return %c0_i32, %c0_i32_0 : i32, i32
  }
  func.func @transform_7(%arg0: i32) -> (i32, i32) {
    %c0_i32 = arith.constant 0 : i32
    %c0_i32_0 = arith.constant 0 : i32
    %c0_i32_1 = arith.constant 0 : i32
    return %c0_i32, %c0_i32_0 : i32, i32
  }
  func.func @transform_8(%arg0: i32) -> (i32, i32) {
    %c0_i32 = arith.constant 0 : i32
    %c0_i32_0 = arith.constant 0 : i32
    %c0_i32_1 = arith.constant 0 : i32
    return %c0_i32, %c0_i32_0 : i32, i32
  }
  func.func @transform_9(%arg0: i32) -> (i32, i32) {
    %c0_i32 = arith.constant 0 : i32
    %c0_i32_0 = arith.constant 0 : i32
    %c0_i32_1 = arith.constant 0 : i32
    return %c0_i32, %c0_i32_0 : i32, i32
  }
  func.func @transform_10(%arg0: i32) -> (i32, i32) {
    %c0_i32 = arith.constant 0 : i32
    %c0_i32_0 = arith.constant 0 : i32
    %c0_i32_1 = arith.constant 0 : i32
    return %c0_i32, %c0_i32_0 : i32, i32
  }
  func.func @transform_11(%arg0: i32) -> (i32, i32) {
    %c0_i32 = arith.constant 0 : i32
    %c0_i32_0 = arith.constant 0 : i32
    %c0_i32_1 = arith.constant 0 : i32
    return %c0_i32, %c0_i32_0 : i32, i32
  }
  func.func @transform_12(%arg0: i32) -> (i32, i32) {
    %c0_i32 = arith.constant 0 : i32
    %c0_i32_0 = arith.constant 0 : i32
    %c0_i32_1 = arith.constant 0 : i32
    return %c0_i32, %c0_i32_0 : i32, i32
  }
  func.func @transform_13(%arg0: i32) -> (i32, i32) {
    %c0_i32 = arith.constant 0 : i32
    %c0_i32_0 = arith.constant 0 : i32
    %c0_i32_1 = arith.constant 0 : i32
    return %c0_i32, %c0_i32_0 : i32, i32
  }
  func.func @transform_14(%arg0: i32) -> (i32, i32) {
    %c0_i32 = arith.constant 0 : i32
    %c0_i32_0 = arith.constant 0 : i32
    %c0_i32_1 = arith.constant 0 : i32
    return %c0_i32, %c0_i32_0 : i32, i32
  }
  func.func @transform_15(%arg0: i32) -> (i32, i32) {
    %c0_i32 = arith.constant 0 : i32
    %c0_i32_0 = arith.constant 0 : i32
    %c0_i32_1 = arith.constant 0 : i32
    return %c0_i32, %c0_i32_0 : i32, i32
  }
  func.func @transform_16(%arg0: i32) -> (i32, i32) {
    %c0_i32 = arith.constant 0 : i32
    %c0_i32_0 = arith.constant 0 : i32
    %c0_i32_1 = arith.constant 0 : i32
    return %c0_i32, %c0_i32_0 : i32, i32
  }
  func.func @transform_17(%arg0: i32) -> (i32, i32) {
    %c0_i32 = arith.constant 0 : i32
    %c0_i32_0 = arith.constant 0 : i32
    %c0_i32_1 = arith.constant 0 : i32
    return %c0_i32, %c0_i32_0 : i32, i32
  }
  func.func @transform_18(%arg0: i32) -> (i32, i32) {
    %c0_i32 = arith.constant 0 : i32
    %c0_i32_0 = arith.constant 0 : i32
    %c0_i32_1 = arith.constant 0 : i32
    return %c0_i32, %c0_i32_0 : i32, i32
  }
  func.func @transform_19(%arg0: i32) -> (i32, i32) {
    %c0_i32 = arith.constant 0 : i32
    %c0_i32_0 = arith.constant 0 : i32
    %c0_i32_1 = arith.constant 0 : i32
    return %c0_i32, %c0_i32_0 : i32, i32
  }
  func.func @transform_20(%arg0: i32) -> (i32, i32, i32) {
    %c0_i32 = arith.constant 0 : i32
    %c0_i32_0 = arith.constant 0 : i32
    %c0_i32_1 = arith.constant 0 : i32
    return %arg0, %c0_i32, %c0_i32_0 : i32, i32, i32
  }
}

</mosaic_0001>

<bundles_post_ra>
// kernel: tpu_custom_call.1
= control target key start
LH: loop header
LB: loop body
LE: loop exit
PB: predicated region body
PF: predicated region fallthrough
CT: control target
= control target key end

     0   :  { %s8838_s0 = inlined_call_operand.vmem [shape: f32[2,34,512], index: 0, kind: input, shape index: {}]   ;;  %s8839_s1 = inlined_call_operand.hbm [shape: bf16[1536,128], index: 1, kind: input, shape index: {}]   ;;  %s8840_s2 = inlined_call_operand.vmem [shape: f32[1,128], index: 2, kind: input, shape index: {}]   ;;  %s8841_s3 = inlined_call_operand.vmem [shape: f32[1,128], index: 3, kind: input, shape index: {}]   ;;  %s8842_s4 = inlined_call_operand.vmem [shape: bf16[896,128], index: 4, kind: input, shape index: {}]   ;;  %s8843_s5 = inlined_call_operand.vmem [shape: f32[1,128], index: 5, kind: input, shape index: {}]   ;;  %s8844_s6 = inlined_call_operand.vmem [shape: f32[1,128], index: 6, kind: input, shape index: {}]   ;;  %s8845_s7 = inlined_call_operand.hbm [shape: bf16[640,128], index: 7, kind: input, shape index: {}]   ;;  %s8846_s8 = inlined_call_operand.vmem [shape: f32[1,128], index: 8, kind: input, shape index: {}]   ;;  %s8847_s9 = inlined_call_operand.vmem [shape: f32[1,128], index: 9, kind: input, shape index: {}]   ;;  %s8848_s10 = inlined_call_operand.hbm [shape: bf16[384,256], index: 10, kind: input, shape index: {}]   ;;  %s8849_s11 = inlined_call_operand.vmem [shape: f32[1,256], index: 11, kind: input, shape index: {}]   ;;  %s8850_s12 = inlined_call_operand.vmem [shape: f32[1,256], index: 12, kind: input, shape index: {}]   ;;  %s8851_s13 = inlined_call_operand.hbm [shape: bf16[768,256], index: 13, kind: input, shape index: {}]   ;;  %s8852_s14 = inlined_call_operand.vmem [shape: f32[1,256], index: 14, kind: input, shape index: {}]   ;;  %s8853_s15 = inlined_call_operand.vmem [shape: f32[1,256], index: 15, kind: input, shape index: {}]   ;;  %s8854_s16 = inlined_call_operand.vmem [shape: f32[32,64], index: 16, kind: input, shape index: {}]   ;;  %s8855_s17 = inlined_call_operand.vmem [shape: f32[16,32], index: 17, kind: input, shape index: {}]   ;;  %s8856_s18 = inlined_call_operand.vmem [shape: f32[8,16], index: 18, kind: input, shape index: {}]   ;;  %s8857_s19 = inlined_call_operand.vmem [shape: f32[4,8], index: 19, kind: input, shape index: {}]   ;;  %s8858_s20 = inlined_call_operand.hbm [shape: f32[2,2,256], index: 20, kind: output, shape index: {}]  }
   0x1   :  { %8869 = sst [smem:[#allocation31_spill]] %s8838_s0 }
   0x2   :  { %8870 = sst [smem:[#allocation32_spill]] %s8839_s1 }
   0x3   :  { %8871 = sst [smem:[#allocation33_spill]] %s8840_s2 }
   0x4   :  { %8872 = sst [smem:[#allocation34_spill]] %s8841_s3 }
   0x5   :  { %8873 = sst [smem:[#allocation35_spill]] %s8842_s4 }
   0x6   :  { %25 = vsyncpa [#allocation3], 0 }
   0x7   :  { %26 = vsyncpa [#allocation6], 0 }
   0x8   :  { %27 = vsyncpa [#allocation9], 0 }
   0x9   :  { %28 = vsyncpa [#allocation4], 0  ;;  %s7492_s1 = smov [#allocation5]   ;;  %s7493_s23 = smov [#allocation2]  }
   0xa   :  { %s58_s22 = sshll.u32 %s7492_s1, 4  ;;  %s36_s24 = sshll.u32 %s7493_s23, 4  ;;  %s59_s22 = int_to_ptr.vmem [resolvable:$true] %s58_s22  ;;  %s7608_s24 = int_to_ptr.vmem [resolvable:$true] %s36_s24 }
   0xb   :  { %s7374_s3 = scalar_lea.hbm %s8845_s7, 5120 }
   0xc   :  { %p7375_p0 = scmp.ne.s32.totalorder %s8845_s7, %s7374_s3  ;;  %p7378_p1 = scmp.lt.u32.totalorder %s7374_s3, %s8845_s7 }
   0xe   :  { %p7380_p2 = pnand %p7378_p1, %p7375_p0 }
  0x10   :  { %7383 = shalt.err (!%p7380_p2)
}
  0x11   :  { %s7384_s29 = scalar_lea.vmem %s59_s22, 5120  ;;  %p7389_p4 = scmp.lt.s32.totalorder %s59_s22, %s59_s22 }
  0x12   :  { %p7385_p3 = scmp.ne.s32.totalorder %s59_s22, %s7384_s29  ;;  %p7390_p5 = scmp.lt.s32.totalorder %s7384_s29, %s7384_s29 }
  0x14   :  { %p7391_p6 = por %p7390_p5, %p7389_p4 }
  0x16   :  { %p7392_p7 = pnand %p7391_p6, %p7385_p3 }
  0x18   :  { %7395 = shalt.err (!%p7392_p7)
}
  0x19   :  { %s8862_s30 = smov 64   ;;  %s7495_s0 = smov 4  }
  0x1a   :  { %64 = dma.hbm_to_vmem [thread:$0]  %s8845_s7, 5120, %s59_s22, [#allocation6], %s8862_s30, %s8862_s30, %s7495_s0  }
  0x1b   :  { %s8874_s25 = sld [smem:[#allocation32_spill]] }
  0x21   :  { %s7396_s3 = scalar_lea.hbm %s8874_s25, 12288 }
  0x22   :  { %p7397_p8 = scmp.ne.s32.totalorder %s8874_s25, %s7396_s3  ;;  %p7400_p9 = scmp.lt.u32.totalorder %s7396_s3, %s8874_s25 }
  0x24   :  { %p7402_p10 = pnand %p7400_p9, %p7397_p8 }
  0x26   :  { %7405 = shalt.err (!%p7402_p10)
}
  0x27   :  { %s7406_s29 = scalar_lea.vmem %s7608_s24, 12288  ;;  %p7411_p12 = scmp.lt.s32.totalorder %s7608_s24, %s7608_s24 }
  0x28   :  { %p7407_p11 = scmp.ne.s32.totalorder %s7608_s24, %s7406_s29  ;;  %p7412_p13 = scmp.lt.s32.totalorder %s7406_s29, %s7406_s29 }
  0x2a   :  { %p7413_p0 = por %p7412_p13, %p7411_p12 }
  0x2c   :  { %p7414_p1 = pnand %p7413_p0, %p7407_p11 }
  0x2e   :  { %7417 = shalt.err (!%p7414_p1)
}
  0x2f   :  { %42 = dma.hbm_to_vmem [thread:$0]  %s8874_s25, 12288, %s7608_s24, [#allocation3], %s8862_s30, %s8862_s30, %s7495_s0  }
  0x30   :  { %s7496_s21 = smov [#allocation7]   ;;  %s7418_s3 = scalar_lea.hbm %s8848_s10, 6144 }
  0x31   :  { %s74_s1 = sshll.u32 %s7496_s21, 4  ;;  %p7419_p2 = scmp.ne.s32.totalorder %s8848_s10, %s7418_s3  ;;  %s75_s1 = int_to_ptr.vmem [resolvable:$true] %s74_s1 }
  0x32   :  { %p7422_p3 = scmp.lt.u32.totalorder %s7418_s3, %s8848_s10 }
  0x34   :  { %p7424_p4 = pnand %p7422_p3, %p7419_p2 }
  0x36   :  { %7427 = shalt.err (!%p7424_p4)
}
  0x37   :  { %s7428_s29 = scalar_lea.vmem %s75_s1, 6144  ;;  %p7433_p6 = scmp.lt.s32.totalorder %s75_s1, %s75_s1 }
  0x38   :  { %p7429_p5 = scmp.ne.s32.totalorder %s75_s1, %s7428_s29  ;;  %p7434_p7 = scmp.lt.s32.totalorder %s7428_s29, %s7428_s29 }
  0x3a   :  { %p7435_p8 = por %p7434_p7, %p7433_p6 }
  0x3c   :  { %p7436_p9 = pnand %p7435_p8, %p7429_p5 }
  0x3e   :  { %7439 = shalt.err (!%p7436_p9)
}
  0x3f   :  { %s7497_s24 = smov 128   ;;  %s7498_s25 = smov 8  }
  0x40   :  { %80 = dma.hbm_to_vmem [thread:$0]  %s8848_s10, 6144, %s75_s1, [#allocation6], %s7497_s24, %s7497_s24, %s7498_s25  }
  0x41   :  { %s7499_s21 = smov [#allocation8]   ;;  %s7440_s26 = scalar_lea.hbm %s8851_s13, 12288 }
  0x42   :  { %s90_s23 = sshll.u32 %s7499_s21, 4  ;;  %p7441_p10 = scmp.ne.s32.totalorder %s8851_s13, %s7440_s26  ;;  %s91_s23 = int_to_ptr.vmem [resolvable:$true] %s90_s23 }
  0x43   :  { %p7444_p11 = scmp.lt.u32.totalorder %s7440_s26, %s8851_s13 }
  0x45   :  { %p7446_p12 = pnand %p7444_p11, %p7441_p10 }
  0x47   :  { %7449 = shalt.err (!%p7446_p12)
}
  0x48   :  { %s7450_s30 = scalar_lea.vmem %s91_s23, 12288  ;;  %p7455_p0 = scmp.lt.s32.totalorder %s91_s23, %s91_s23 }
  0x49   :  { %p7451_p13 = scmp.ne.s32.totalorder %s91_s23, %s7450_s30  ;;  %p7456_p1 = scmp.lt.s32.totalorder %s7450_s30, %s7450_s30 }
  0x4b   :  { %p7457_p2 = por %p7456_p1, %p7455_p0 }
  0x4d   :  { %p7458_p3 = pnand %p7457_p2, %p7451_p13 }
  0x4f   :  { %7461 = shalt.err (!%p7458_p3)
}
  0x50   :  { %96 = dma.hbm_to_vmem [thread:$0]  %s8851_s13, 12288, %s91_s23, [#allocation9], %s7497_s24, %s7497_s24, %s7498_s25  }
  0x51   :  { %7484 = dma.done.wait [#allocation3], 12288  }
  0x52   :  { %7485 = vsyncadd [#allocation3], 4294955008 }
  0x53   :  { %7486 = dma.done.wait [#allocation6], 11264  }
  0x54   :  { %7487 = vsyncadd [#allocation6], 4294956032 }
  0x55   :  { %7488 = dma.done.wait [#allocation9], 12288  }
  0x56   :  { %7489 = vsyncadd [#allocation9], 4294955008  ;;  %v5344_v0 = vld [vmem:[#allocation2 + $0x140] sm:$0xff]   ;;  %v5345_v4 = vld [vmem:[#allocation2 + $0x148] sm:$0xff]   ;;  %s8875_s24 = sld [smem:[#allocation31_spill]]  ;;  %vm566_vm0 = vcmask 1046528  }
  0x57   :  { %v5360_v1 = vld [vmem:[#allocation2 + $0x1c0] sm:$0xff]   ;;  %6264 = vmatprep.subr.bf16.mxu0 %v5344_v0  ;;  %v5361_v5 = vld [vmem:[#allocation2 + $0x1c8] sm:$0xff]   ;;  %v5346_v8 = vld [vmem:[#allocation2 + $0x150] sm:$0xff]   ;;  %vm1111_vm1 = vcmask 1045504   ;;  %s8918_s30 = sld [smem:[#allocation35_spill]]  ;;  %s8919_s23 = sld [smem:[#allocation33_spill]] }
  0x58   :  { %v5336_v2 = vld [vmem:[#allocation2 + $0x100] sm:$0xff]   ;;  %6296 = vmatprep.subr.bf16.mxu1 %v5360_v1  ;;  %v5337_v6 = vld [vmem:[#allocation2 + $0x108] sm:$0xff]   ;;  %v5362_v9 = vld [vmem:[#allocation2 + $0x1d0] sm:$0xff]   ;;  %s8920_s26 = sld [smem:[#allocation34_spill]]  ;;  %vm1700_vm2 = vcmask 1042432   ;;  %vm1761_vm3 = vcmask 1044480  }
  0x59   :  { %v5352_v3 = vld [vmem:[#allocation2 + $0x180] sm:$0xff]   ;;  %6266 = vmatpush3.bf16.msra.mxu0 %v5336_v2  ;;  %v5353_v7 = vld [vmem:[#allocation2 + $0x188] sm:$0xff]   ;;  %v5338_v10 = vld [vmem:[#allocation2 + $0x110] sm:$0xff]   ;;  %vm1802_vm5 = vcmask 1041408   ;;  %vm1775_vm6 = vcmask 1043456   ;;  %vm2467_vm7 = vcmask 523264  }
  0x5a   :  { %6298 = vmatpush3.bf16.msra.mxu1 %v5352_v3  ;;  %6268 = vmatprep.subr.bf16.mxu0 %v5345_v4  ;;  %v5354_v11 = vld [vmem:[#allocation2 + $0x190] sm:$0xff]   ;;  %v5347_v12 = vld [vmem:[#allocation2 + $0x158] sm:$0xff]   ;;  %v5348_v21 = vld [vmem:[#allocation2 + $0x160] sm:$0xff]   ;;  %vm2358_vm8 = vcmask 1040384   ;;  %vm3148_vm10 = vcmask 261120   ;;  %vm3663_vm12 = vcmask 130048  }
  0x5b   :  { %6300 = vmatprep.subr.bf16.mxu1 %v5361_v5  ;;  %v5363_v13 = vld [vmem:[#allocation2 + $0x1d8] sm:$0xff]   ;;  %v5364_v22 = vld [vmem:[#allocation2 + $0x1e0] sm:$0xff]   ;;  %v5349_v34 = vld [vmem:[#allocation2 + $0x168] sm:$0xff]   ;;  %vm4376_vm13 = vcmask 64512  }
  0x5c   :  { %v5339_v14 = vld [vmem:[#allocation2 + $0x118] sm:$0xff]   ;;  %v7672_v16 = vld [vmem:[%s8875_s24 + $0x8] sm:$0xff]  ;;  %v5340_v30 = vld [vmem:[#allocation2 + $0x120] sm:$0xff]  }
  0x5d   :  { %6270 = vmatpush3.bf16.msra.mxu0 %v5337_v6  ;;  %v5355_v15 = vld [vmem:[#allocation2 + $0x198] sm:$0xff]   ;;  %v7677_v17 = vld [vmem:[%s8875_s24 + $0x28] sm:$0xff]  ;;  %v570_v18 = vrot.slane %v7672_v16, 1  ;;  %v1115_v26 = vrot.slane %v7672_v16, 2  ;;  %v5356_v31 = vld [vmem:[#allocation2 + $0x1a0] sm:$0xff]  }
  0x5e   :  { %6302 = vmatpush3.bf16.msra.mxu1 %v5353_v7  ;;  %6272 = vmatprep.subr.bf16.mxu0 %v5346_v8  ;;  %v7683_v19 = vld [vmem:[%s8875_s24 + $0x18] sm:$0xff]  ;;  %v571_v23 = vrot.slane %v7677_v17, 1  ;;  %v8864_v29 = vrot.slane %v7677_v17, 2  ;;  %v5365_v35 = vld [vmem:[#allocation2 + $0x1e8] sm:$0xff]   ;;  %v5350_v40 = vld [vmem:[#allocation2 + $0x170] sm:$0xff]  }
  0x5f   :  { %6304 = vmatprep.subr.bf16.mxu1 %v5362_v9  ;;  %v7688_v20 = vld [vmem:[%s8875_s24 + $0x38] sm:$0xff]  ;;  %v576_v24 = vrot.slane %v7683_v19, 1  ;;  %v1121_v32 = vrot.slane %v7683_v19, 2  ;;  %v5341_v38 = vld [vmem:[#allocation2 + $0x128] sm:$0xff]   ;;  %v5366_v41 = vld [vmem:[#allocation2 + $0x1f0] sm:$0xff]  }
  0x60   :  { %v577_v25 = vrot.slane %v7688_v20, 1  ;;  %v572_v27 = vsel %vm566_vm0, %v570_v18, %v571_v23  ;;  %v8863_v33 = vrot.slane %v7688_v20, 2  ;;  %v7706_v36 = vsel %vm1111_vm1, %v1115_v26, %v8864_v29  ;;  %v5357_v39 = vld [vmem:[#allocation2 + $0x1a8] sm:$0xff]   ;;  %v7716_v42 = vld [vmem:[%s8875_s24] sm:$0xff]  ;;  %v5342_v43 = vld [vmem:[#allocation2 + $0x130] sm:$0xff]  }
  0x61   :  { %6274 = vmatpush3.bf16.msra.mxu0 %v5338_v10  ;;  %755 = vmatprep.mubr.f32.mxu0 %v572_v27  ;;  %v7721_v44 = vld [vmem:[%s8875_s24 + $0x20] sm:$0xff]  ;;  %v1112_v45 = vrot.slane %v7716_v42, 2  ;;  %v5358_v46 = vld [vmem:[#allocation2 + $0x1b0] sm:$0xff]   ;;  %v5351_v50 = vld [vmem:[#allocation2 + $0x178] sm:$0xff]   ;;  %v567_v53 = vrot.slane %v7716_v42, 1 }
  0x62   :  { %6306 = vmatpush3.bf16.msra.mxu1 %v5354_v11  ;;  %6276 = vmatprep.subr.bf16.mxu0 %v5347_v12  ;;  %v578_v28 = vsel %vm566_vm0, %v576_v24, %v577_v25  ;;  %v7711_v37 = vsel %vm1111_vm1, %v1121_v32, %v8863_v33  ;;  %v7727_v47 = vld [vmem:[%s8875_s24 + $0x10] sm:$0xff]  ;;  %v1113_v49 = vrot.slane %v7721_v44, 2  ;;  %v5367_v51 = vld [vmem:[#allocation2 + $0x1f8] sm:$0xff]   ;;  %v7738_v52 = vld [vmem:[%s8875_s24 + $0x48] sm:$0xff]  ;;  %v568_v57 = vrot.slane %v7721_v44, 1 }
  0x63   :  { %6308 = vmatprep.subr.bf16.mxu1 %v5363_v13  ;;  %860 = vmatprep.mubr.f32.mxu1 %v578_v28  ;;  %v7732_v48 = vld [vmem:[%s8875_s24 + $0x30] sm:$0xff]  ;;  %v7744_v54 = vld [vmem:[%s8875_s24 + $0x58] sm:$0xff]  ;;  %v1118_v55 = vrot.slane %v7727_v47, 2  ;;  %v573_v58 = vrot.slane %v7727_v47, 1  ;;  %v7753_v60 = vld [vmem:[%s8875_s24 + $0x40] sm:$0xff]  ;;  %v581_v0 = vrot.slane %v7738_v52, 1 }
  0x64   :  { %v5343_v56 = vld [vmem:[#allocation2 + $0x138] sm:$0xff]   ;;  %v574_v59 = vrot.slane %v7732_v48, 1  ;;  %v7758_v61 = vsel %vm1111_vm1, %v1112_v45, %v1113_v49  ;;  %v5312_v63 = vld [vmem:[#allocation2 + $0x40] sm:$0xff]   ;;  %v7764_v1 = vld [vmem:[%s8875_s24 + $0x50] sm:$0xff]  ;;  %v1119_v2 = vrot.slane %v7732_v48, 2  ;;  %v585_v4 = vrot.slane %v7744_v54, 1 }
  0x65   :  { %6278 = vmatpush3.bf16.msra.mxu0 %v5339_v14  ;;  %8876 = vst [vmem:[#allocation15_spill] sm:$0xff] %v7758_v61  ;;  %v5359_v62 = vld [vmem:[#allocation2 + $0x1b8] sm:$0xff]   ;;  %v5328_v3 = vld [vmem:[#allocation2 + $0xc0] sm:$0xff]   ;;  %v7771_v5 = vld [vmem:[%s8875_s24 + $0x68] sm:$0xff]  ;;  %v579_v7 = vrot.slane %v7753_v60, 1  ;;  %v569_v11 = vsel %vm566_vm0, %v567_v53, %v568_v57 }
  0x66   :  { %6310 = vmatpush3.bf16.msra.mxu1 %v5355_v15  ;;  %6280 = vmatprep.subr.bf16.mxu0 %v5348_v21  ;;  %v7776_v6 = vld [vmem:[%s8875_s24 + $0x78] sm:$0xff]  ;;  %v7782_v8 = vld [vmem:[%s8875_s24 + $0x60] sm:$0xff]  ;;  %v7787_v9 = vld [vmem:[%s8875_s24 + $0x70] sm:$0xff]  ;;  %v7792_v10 = vsel %vm1111_vm1, %v1118_v55, %v1119_v2  ;;  %v575_v12 = vsel %vm566_vm0, %v573_v58, %v574_v59  ;;  %v583_v15 = vrot.slane %v7764_v1, 1  ;;  %v582_v21 = vsel %vm566_vm0, %v571_v23, %v581_v0 }
  0x67   :  { %6312 = vmatprep.subr.bf16.mxu1 %v5364_v22  ;;  %8877 = vst [vmem:[#allocation16_spill] sm:$0xff] %v7792_v10  ;;  %v4538_v13 = vld [vmem:[#allocation2] sm:$0xff]   ;;  %v7800_v18 = vld [vmem:[%s8875_s24 + $0x88] sm:$0x3]  ;;  %v589_v22 = vrot.slane %v7771_v5, 1  ;;  %v593_v24 = vrot.slane %v7776_v6, 1  ;;  %v586_v28 = vsel %vm566_vm0, %v577_v25, %v585_v4  ;;  %v580_v32 = vsel %vm566_vm0, %v568_v57, %v579_v7  ;;  %vm8309_vm4 = vmneg %vm1700_vm2 }
  0x68   :  { %v5320_v14 = vld [vmem:[#allocation2 + $0x80] sm:$0xff]   ;;  %8878 = vst [vmem:[#allocation17_spill] sm:$0xff] %v7800_v18  ;;  %v7810_v26 = vld [vmem:[%s8875_s24 + $0x98] sm:$0x3]  ;;  %v587_v23 = vrot.slane %v7782_v8, 1  ;;  %v584_v25 = vsel %vm566_vm0, %v574_v59, %v583_v15  ;;  %v5314_v55 = vld [vmem:[#allocation2 + $0x50] sm:$0xff]  }
  0x69   :  { %6282 = vmatpush3.bf16.msra.mxu0 %v5340_v30  ;;  %8879 = vst [vmem:[#allocation18_spill] sm:$0xff] %v7810_v26  ;;  %v7815_v27 = vld [vmem:[%s8875_s24 + $0x80] sm:$0x3]  ;;  %v591_v30 = vrot.slane %v7787_v9, 1  ;;  %v594_v53 = vsel %vm566_vm0, %v585_v4, %v593_v24  ;;  %v5330_v58 = vld [vmem:[#allocation2 + $0xd0] sm:$0xff]   ;;  %v7960_v29 = vld [vmem:[%s8875_s24 + $0x118] sm:$0xff] }
  0x6a   :  { %6314 = vmatpush3.bf16.msra.mxu1 %v5356_v31  ;;  %6284 = vmatprep.subr.bf16.mxu0 %v5349_v34  ;;  %v1124_v31 = vrot.slane %v7753_v60, 2  ;;  %v5313_v34 = vld [vmem:[#allocation2 + $0x48] sm:$0xff]   ;;  %v588_v57 = vsel %vm566_vm0, %v579_v7, %v587_v23  ;;  %v7867_v7 = vld [vmem:[%s8875_s24 + $0xd8] sm:$0xff]  ;;  %vm8669_vm9 = vmneg %vm1802_vm5 }
  0x6b   :  { %6316 = vmatprep.subr.bf16.mxu1 %v5365_v35  ;;  %v5329_v35 = vld [vmem:[#allocation2 + $0xc8] sm:$0xff]   ;;  %vm4526_vm11 = vmneg %vm2358_vm8 }
  0x6c   :  { %v7841_v45 = vsel %vm1111_vm1, %v1113_v49, %v1124_v31  ;;  %v592_v49 = vsel %vm566_vm0, %v583_v15, %v591_v30  ;;  %v5309_v10 = vld [vmem:[#allocation2 + $0x28] sm:$0xff]  }
  0x6d   :  { %6286 = vmatpush3.bf16.msra.mxu0 %v5341_v38  ;;  %v597_v38 = vrot.slane %v7800_v18, 1  ;;  %8880 = vst [vmem:[#allocation19_spill] sm:$0xff] %v7841_v45  ;;  %v5333_v45 = vld [vmem:[#allocation2 + $0xe8] sm:$0xff]  }
  0x6e   :  { %6318 = vmatpush3.bf16.msra.mxu1 %v5357_v39  ;;  %6288 = vmatprep.subr.bf16.mxu0 %v5350_v40  ;;  %v7828_v39 = vld [vmem:[%s8875_s24 + $0x90] sm:$0x3]  ;;  %v601_v40 = vrot.slane %v7810_v26, 1  ;;  %v5325_v61 = vld [vmem:[#allocation2 + $0xa8] sm:$0xff]  }
  0x6f   :  { %6320 = vmatprep.subr.bf16.mxu1 %v5366_v41  ;;  %v595_v41 = vrot.slane %v7815_v27, 1  ;;  %v599_v59 = vrot.slane %v7828_v39, 1 }
  0x70   :  { %v602_v15 = vsel %vm566_vm0, %v593_v24, %v601_v40  ;;  %v5306_v24 = vld [vmem:[#allocation2 + $0x10] sm:$0xff]  }
  0x71   :  { %6290 = vmatpush3.bf16.msra.mxu0 %v5342_v43  ;;  %v7836_v43 = vld [vmem:[%s8875_s24 + $0xa8] sm:$0xff] }
  0x72   :  { %6322 = vmatpush3.bf16.msra.mxu1 %v5358_v46  ;;  %6292 = vmatprep.subr.bf16.mxu0 %v5351_v50  ;;  %v5305_v46 = vld [vmem:[#allocation2 + $0x8] sm:$0xff]   ;;  %v642_v4 = vrot.slane %v7836_v43, 1 }
  0x73   :  { %6324 = vmatprep.subr.bf16.mxu1 %v5367_v51  ;;  %v5321_v50 = vld [vmem:[#allocation2 + $0x88] sm:$0xff]   ;;  %v590_v51 = vsel %vm566_vm0, %v581_v0, %v589_v22  ;;  %v1132_v0 = vrot.slane %v7782_v8, 2 }
  0x75   :  { %6294 = vmatpush3.bf16.msra.mxu0 %v5343_v56  ;;  %v1128_v56 = vrot.slane %v7764_v1, 2 }
  0x76   :  { %6326 = vmatpush3.bf16.msra.mxu1 %v5359_v62  ;;  %6328 = vmatprep.subr.bf16.mxu0 %v5312_v63  ;;  %v7854_v62 = vld [vmem:[%s8875_s24 + $0xc8] sm:$0xff]  ;;  %v7859_v63 = vld [vmem:[%s8875_s24 + $0xb8] sm:$0xff] }
  0x77   :  { %6360 = vmatprep.subr.bf16.mxu1 %v5328_v3  ;;  %v598_v3 = vsel %vm566_vm0, %v589_v22, %v597_v38  ;;  %v7890_v22 = vld [vmem:[%s8875_s24 + $0xb0] sm:$0xff] }
  0x78   :  { %756 = vmatmul.mubr.f32.vlgmr.msra.gmra.mrb[0].mxu0 %v569_v11  ;;  %v7872_v11 = vld [vmem:[%s8875_s24 + $0xa0] sm:$0xff] }
  0x79   :  { %861 = vmatmul.mubr.f32.vlgmr.msra.gmra.mrb[0].mxu1 %v575_v12  ;;  %6330 = vmatpush3.bf16.msra.mxu0 %v4538_v13  ;;  %v7877_v12 = vld [vmem:[%s8875_s24 + $0xc0] sm:$0xff]  ;;  %v7882_v13 = vsel %vm1111_vm1, %v1119_v2, %v1128_v56  ;;  %v7898_v2 = vsel %vm1111_vm1, %v1124_v31, %v1132_v0  ;;  %v649_v31 = vrot.slane %v7867_v7, 1  ;;  %v639_v40 = vrot.slane %v7872_v11, 1 }
  0x7a   :  { %6362 = vmatpush3.bf16.msra.mxu1 %v5320_v14  ;;  %760 = vmatprep.mubr.f32.mxu0 %v582_v21  ;;  %8881 = vst [vmem:[#allocation20_spill] sm:$0xff] %v7882_v13  ;;  %v1136_v14 = vrot.slane %v7787_v9, 2  ;;  %v596_v21 = vsel %vm566_vm0, %v587_v23, %v595_v41  ;;  %8882 = vst [vmem:[#allocation21_spill] sm:$0xff] %v7898_v2  ;;  %v8865_v23 = vrot.slane %v7854_v62, 1  ;;  %v7913_v41 = vld [vmem:[%s8875_s24 + $0xe8] sm:$0xff]  ;;  %v1165_v33 = vrot.slane %v7877_v12, 2 }
  0x7b   :  { %865 = vmatprep.mubr.f32.mxu1 %v586_v28  ;;  %6332 = vmatprep.subr.bf16.mxu0 %v5313_v34  ;;  %v7895_v28 = vld [vmem:[%s8875_s24 + $0xd0] sm:$0xff]  ;;  %v5308_v2 = vld [vmem:[#allocation2 + $0x20] sm:$0xff]   ;;  %v8895_v26 = vrot.slane %v7877_v12, 1 }
  0x7c   :  { %6364 = vmatprep.subr.bf16.mxu1 %v5329_v35  ;;  %761 = vmatmul.mubr.f32.gmra.mrb[2].mxu0 %v580_v32  ;;  %v1140_v32 = vrot.slane %v7815_v27, 2  ;;  %v5322_v34 = vld [vmem:[#allocation2 + $0x90] sm:$0xff]   ;;  %v648_v35 = vrot.slane %v7859_v63, 1  ;;  %v7904_v38 = vsel %vm1111_vm1, %v1128_v56, %v1136_v14  ;;  %v8866_v27 = vrot.slane %v7877_v12, 1  ;;  %v5324_v13 = vld [vmem:[#allocation2 + $0xa0] sm:$0xff]  }
  0x7d   :  { %866 = vmatmul.mubr.f32.gmra.mrb[2].mxu1 %v584_v25  ;;  %6334 = vmatpush3.bf16.msra.mxu0 %v5305_v46  ;;  %8883 = vst [vmem:[#allocation22_spill] sm:$0xff] %v7904_v38  ;;  %v1144_v25 = vrot.slane %v7828_v39, 2  ;;  %v7918_v46 = vld [vmem:[%s8875_s24 + $0xf8] sm:$0xff] }
  0x7e   :  { %6366 = vmatpush3.bf16.msra.mxu1 %v5321_v50  ;;  %765 = vmatprep.mubr.f32.mxu0 %v590_v51  ;;  %v7921_v39 = vsel %vm1111_vm1, %v1132_v0, %v1140_v32  ;;  %v5315_v50 = vld [vmem:[#allocation2 + $0x58] sm:$0xff]   ;;  %v600_v0 = vsel %vm566_vm0, %v591_v30, %v599_v59  ;;  %v5316_v30 = vld [vmem:[#allocation2 + $0x60] sm:$0xff]  }
  0x7f   :  { %870 = vmatprep.mubr.f32.mxu1 %v594_v53  ;;  %6336 = vmatprep.subr.bf16.mxu0 %v5314_v55  ;;  %8884 = vst [vmem:[#allocation23_spill] sm:$0xff] %v7921_v39  ;;  %v5331_v51 = vld [vmem:[#allocation2 + $0xd8] sm:$0xff]   ;;  %v645_v53 = vrot.slane %v7890_v22, 1  ;;  %v7926_v56 = vsel %vm1111_vm1, %v1136_v14, %v1144_v25  ;;  %v1170_v14 = vrot.slane %v7890_v22, 2  ;;  %v1171_v25 = vrot.slane %v7895_v28, 2  ;;  %v5332_v59 = vld [vmem:[#allocation2 + $0xe0] sm:$0xff]  }
  0x80   :  { %6368 = vmatprep.subr.bf16.mxu1 %v5330_v58  ;;  %766 = vmatmul.mubr.f32.gmra.mrb[4].mxu0 %v588_v57  ;;  %8885 = vst [vmem:[#allocation24_spill] sm:$0xff] %v7926_v56  ;;  %v1164_v58 = vrot.slane %v7872_v11, 2  ;;  %v5307_v32 = vld [vmem:[#allocation2 + $0x18] sm:$0xff]   ;;  %v7948_v55 = vld [vmem:[%s8875_s24 + $0xf0] sm:$0xff]  ;;  %v641_v56 = vsel %vm566_vm0, %v639_v40, %v8866_v27  ;;  %v8888_v39 = vrot.slane %v7895_v28, 1 }
  0x81   :  { %871 = vmatmul.mubr.f32.gmra.mrb[4].mxu1 %v592_v49  ;;  %6338 = vmatpush3.bf16.msra.mxu0 %v5306_v24  ;;  %v5323_v57 = vld [vmem:[#allocation2 + $0x98] sm:$0xff]   ;;  %v7935_v49 = vld [vmem:[%s8875_s24 + $0xe0] sm:$0xff]  ;;  %v644_v24 = vsel %vm566_vm0, %v642_v4, %v8865_v23  ;;  %v650_v4 = vsel %vm566_vm0, %v648_v35, %v649_v31  ;;  %v7976_v35 = vsel %vm1111_vm1, %v1170_v14, %v1171_v25 }
  0x82   :  { %6370 = vmatpush3.bf16.msra.mxu1 %v5322_v34  ;;  %770 = vmatprep.mubr.f32.mxu0 %v598_v3  ;;  %v7953_v3 = vld [vmem:[%s8875_s24 + $0x108] sm:$0xff]  ;;  %v7965_v23 = vld [vmem:[%s8875_s24 + $0x100] sm:$0xff]  ;;  %v7970_v34 = vld [vmem:[%s8875_s24 + $0x110] sm:$0xff]  ;;  %8887 = vst [vmem:[#allocation26_spill] sm:$0xff] %v7976_v35  ;;  %v647_v38 = vsel %vm566_vm0, %v645_v53, %v8888_v39  ;;  %v655_v39 = vrot.slane %v7948_v55, 1  ;;  %v8891_v35 = vrot.slane %v7913_v41, 1 }
  0x83   :  { %875 = vmatprep.mubr.f32.mxu1 %v602_v15  ;;  %v1176_v15 = vrot.slane %v7935_v49, 2  ;;  %6340 = vmatprep.subr.bf16.mxu0 %v5315_v50  ;;  %v7973_v50 = vsel %vm1111_vm1, %v1164_v58, %v1165_v33  ;;  %v651_v58 = vrot.slane %v7935_v49, 1  ;;  %v7989_v14 = vld [vmem:[%s8875_s24 + $0x120] sm:$0x3]  ;;  %v1188_v27 = vrot.slane %v7970_v34, 2 }
  0x84   :  { %6372 = vmatprep.subr.bf16.mxu1 %v5331_v51  ;;  %8886 = vst [vmem:[#allocation25_spill] sm:$0xff] %v7973_v50  ;;  %v1180_v51 = vrot.slane %v7948_v55, 2  ;;  %771 = vmatmul.mubr.f32.gmra.mrb[6].mxu0 %v596_v21  ;;  %v7994_v21 = vld [vmem:[%s8875_s24 + $0x130] sm:$0x3]  ;;  %v8892_v50 = vrot.slane %v7854_v62, 1 }
  0x85   :  { %876 = vmatmul.mubr.f32.gmra.mrb[6].mxu1 %v600_v0  ;;  %v7997_v40 = vsel %vm1111_vm1, %v1165_v33, %v1176_v15  ;;  %6342 = vmatpush3.bf16.msra.mxu0 %v5307_v32  ;;  %v1184_v0 = vrot.slane %v7965_v23, 2  ;;  %v8893_v32 = vrot.slane %v7918_v46, 1  ;;  %v652_v18 = vsel %vm566_vm0, %v8895_v26, %v651_v58  ;;  %v5318_v26 = vld [vmem:[#allocation2 + $0x70] sm:$0xff]  }
  0x86   :  { %8889 = vst [vmem:[#allocation27_spill] sm:$0xff] %v7997_v40  ;;  %6374 = vmatpush3.bf16.msra.mxu1 %v5323_v57  ;;  %v8001_v53 = vsel %vm1111_vm1, %v1171_v25, %v1180_v51  ;;  %775 = vmatprep.mubr.f32.mxu0 %v644_v24  ;;  %v654_v33 = vsel %vm566_vm0, %v8892_v50, %v8891_v35  ;;  %v5317_v40 = vld [vmem:[#allocation2 + $0x68] sm:$0xff]   ;;  %v661_v25 = vrot.slane %v7953_v3, 1  ;;  %v8022_v24 = vld [vmem:[%s8875_s24 + $0x138] sm:$0x3] }
  0x87   :  { %8890 = vst [vmem:[#allocation28_spill] sm:$0xff] %v8001_v53  ;;  %880 = vmatprep.mubr.f32.mxu1 %v650_v4  ;;  %v658_v57 = vsel %vm566_vm0, %v649_v31, %v8893_v32  ;;  %v8017_v53 = vld [vmem:[%s8875_s24 + $0x128] sm:$0x3]  ;;  %v1192_v4 = vrot.slane %v7989_v14, 2  ;;  %6344 = vmatprep.subr.bf16.mxu0 %v5316_v30  ;;  %v665_v31 = vrot.slane %v7960_v29, 1  ;;  %v8027_v50 = vsel %vm1111_vm1, %v1176_v15, %v1184_v0 }
  0x88   :  { %6376 = vmatprep.subr.bf16.mxu1 %v5332_v59  ;;  %v8030_v35 = vsel %vm1111_vm1, %v1180_v51, %v1188_v27  ;;  %v1196_v32 = vrot.slane %v7994_v21, 2  ;;  %776 = vmatmul.mubr.f32.gmra.mrb[8].mxu0 %v641_v56  ;;  %v8897_v59 = vrot.slane %v7895_v28, 1  ;;  %v659_v51 = vrot.slane %v7965_v23, 1 }
  0x89   :  { %8894 = vst [vmem:[#allocation29_spill] sm:$0xff] %v8030_v35  ;;  %881 = vmatmul.mubr.f32.gmra.mrb[8].mxu1 %v647_v38  ;;  %v8037_v30 = vsel %vm1111_vm1, %v1184_v0, %v1192_v4  ;;  %6346 = vmatpush3.bf16.msra.mxu0 %v5308_v2  ;;  %v663_v56 = vrot.slane %v7970_v34, 1  ;;  %v5334_v35 = vld [vmem:[#allocation2 + $0xf0] sm:$0xff]   ;;  %v8898_v2 = vrot.slane %v7913_v41, 1  ;;  %v8899_v0 = vrot.slane %v7918_v46, 1 }
  0x8a   :  { %8896 = vst [vmem:[#allocation30_spill] sm:$0xff] %v8037_v30  ;;  %6378 = vmatpush3.bf16.msra.mxu1 %v5324_v13  ;;  %v656_v15 = vsel %vm566_vm0, %v8897_v59, %v655_v39  ;;  %v8045_v38 = vsel %vm1111_vm1, %v1188_v27, %v1196_v32  ;;  %780 = vmatprep.mubr.f32.mxu0 %v654_v33  ;;  %v669_v59 = vrot.slane %v8017_v53, 1  ;;  %v673_v30 = vrot.slane %v8022_v24, 1  ;;  %v5310_v27 = vld [vmem:[#allocation2 + $0x30] sm:$0xff]  }
  0x8b   :  { %885 = vmatprep.mubr.f32.mxu1 %v658_v57  ;;  %6348 = vmatprep.subr.bf16.mxu0 %v5317_v40  ;;  %v662_v13 = vsel %vm566_vm0, %v8898_v2, %v661_v25  ;;  %v666_v4 = vsel %vm566_vm0, %v8899_v0, %v665_v31  ;;  %v5326_v33 = vld [vmem:[#allocation2 + $0xb0] sm:$0xff]   ;;  %v664_v40 = vsel %vm566_vm0, %v655_v39, %v663_v56  ;;  %v667_v57 = vrot.slane %v7989_v14, 1  ;;  %v5319_v2 = vld [vmem:[#allocation2 + $0x78] sm:$0xff]   ;;  %v5392_v39 = vld [vmem:[#allocation2 + $0x2c0] sm:$0xff]  }
  0x8c   :  { %6380 = vmatprep.subr.bf16.mxu1 %v5333_v45  ;;  %781 = vmatmul.mubr.f32.gmra.mrb[10].mxu0 %v652_v18  ;;  %v660_v45 = vsel %vm566_vm0, %v651_v58, %v659_v51  ;;  %v671_v32 = vrot.slane %v7994_v21, 1  ;;  %v5335_v0 = vld [vmem:[#allocation2 + $0xf8] sm:$0xff]   ;;  %v670_v18 = vsel %vm566_vm0, %v661_v25, %v669_v59  ;;  %v5376_v21 = vld [vmem:[#allocation2 + $0x240] sm:$0xff]  }
  0x8d   :  { %886 = vmatmul.mubr.f32.gmra.mrb[10].mxu1 %v656_v15  ;;  %6350 = vmatpush3.bf16.msra.mxu0 %v5309_v10  ;;  %v674_v15 = vsel %vm566_vm0, %v665_v31, %v673_v30  ;;  %v5327_v10 = vld [vmem:[#allocation2 + $0xb8] sm:$0xff]   ;;  %v668_v58 = vsel %vm566_vm0, %v659_v51, %v667_v57  ;;  %v5368_v25 = vld [vmem:[#allocation2 + $0x200] sm:$0xff]   ;;  %v5393_v30 = vld [vmem:[#allocation2 + $0x2c8] sm:$0xff]  }
  0x8e   :  { %6382 = vmatpush3.bf16.msra.mxu1 %v5325_v61  ;;  %785 = vmatprep.mubr.f32.mxu0 %v662_v13  ;;  %v5311_v61 = vld [vmem:[#allocation2 + $0x38] sm:$0xff]   ;;  %v672_v14 = vsel %vm566_vm0, %v663_v56, %v671_v32  ;;  %v5384_v31 = vld [vmem:[#allocation2 + $0x280] sm:$0xff]   ;;  %v5369_v51 = vld [vmem:[#allocation2 + $0x208] sm:$0xff]  }
  0x8f   :  { %890 = vmatprep.mubr.f32.mxu1 %v666_v4  ;;  %6352 = vmatprep.subr.bf16.mxu0 %v5318_v26  ;;  %v5385_v56 = vld [vmem:[#allocation2 + $0x288] sm:$0xff]   ;;  %v5378_v26 = vld [vmem:[#allocation2 + $0x250] sm:$0xff]   ;;  %v5395_v13 = vld [vmem:[#allocation2 + $0x2d8] sm:$0xff]  }
  0x90   :  { %6384 = vmatprep.subr.bf16.mxu1 %v5334_v35  ;;  %786 = vmatmul.mubr.f32.gmra.mrb[12].mxu0 %v660_v45  ;;  %v5377_v35 = vld [vmem:[#allocation2 + $0x248] sm:$0xff]   ;;  %v5371_v4 = vld [vmem:[#allocation2 + $0x218] sm:$0xff]   ;;  %v5396_v59 = vld [vmem:[#allocation2 + $0x2e0] sm:$0xff]  }
  0x91   :  { %891 = vmatmul.mubr.f32.gmra.mrb[12].mxu1 %v664_v40  ;;  %6354 = vmatpush3.bf16.msra.mxu0 %v5310_v27  ;;  %v5372_v27 = vld [vmem:[#allocation2 + $0x220] sm:$0xff]   ;;  %v5373_v45 = vld [vmem:[#allocation2 + $0x228] sm:$0xff]   ;;  %v5398_v40 = vld [vmem:[#allocation2 + $0x2f0] sm:$0xff]  }
  0x92   :  { %6386 = vmatpush3.bf16.msra.mxu1 %v5326_v33  ;;  %790 = vmatprep.mubr.f32.mxu0 %v670_v18  ;;  %v5397_v33 = vld [vmem:[#allocation2 + $0x2e8] sm:$0xff]   ;;  %v5374_v57 = vld [vmem:[#allocation2 + $0x230] sm:$0xff]   ;;  %v5399_v32 = vld [vmem:[#allocation2 + $0x2f8] sm:$0xff]   ;;  %v1134_v18 = vrot.slane %v7771_v5, 2 }
  0x93   :  { %895 = vmatprep.mubr.f32.mxu1 %v674_v15  ;;  %6356 = vmatprep.subr.bf16.mxu0 %v5319_v2  ;;  %v5375_v2 = vld [vmem:[#allocation2 + $0x238] sm:$0xff]   ;;  %v8902_v15 = vld [vmem:[#allocation15_spill] sm:$0xff] }
  0x94   :  { %6388 = vmatprep.subr.bf16.mxu1 %v5335_v0  ;;  %791 = vmatmul.mubr.f32.gmra.mrb[14].mxu0 %v668_v58  ;;  %v1130_v0 = vrot.slane %v7744_v54, 2  ;;  %v8906_v58 = vld [vmem:[#allocation19_spill] sm:$0xff] }
  0x95   :  { %896 = vmatmul.mubr.f32.gmra.mrb[14].mxu1 %v672_v14  ;;  %6358 = vmatpush3.bf16.msra.mxu0 %v5311_v61  ;;  %v8907_v14 = vld [vmem:[#allocation20_spill] sm:$0xff] }
  0x96   :  { %6390 = vmatpush3.bf16.msra.mxu1 %v5327_v10  ;;  %965 = vmatprep.mubr.f32.mxu0 %v7672_v16  ;;  %v5394_v16 = vld [vmem:[#allocation2 + $0x2d0] sm:$0xff]   ;;  %v8905_v10 = vld [vmem:[#allocation18_spill] sm:$0xff] }
  0x97   :  { %1070 = vmatprep.mubr.f32.mxu1 %v7683_v19  ;;  %6392 = vmatprep.subr.bf16.mxu0 %v5376_v21  ;;  %v5370_v19 = vld [vmem:[#allocation2 + $0x210] sm:$0xff]  }
  0x98   :  { %6424 = vmatprep.subr.bf16.mxu1 %v5392_v39  ;;  %966 = vmatmul.mubr.f32.vlgmr.msra.gmra.mrb[16].mxu0 %v7716_v42  ;;  %v5386_v42 = vld [vmem:[#allocation2 + $0x290] sm:$0xff]  }
  0x99   :  { %1071 = vmatmul.mubr.f32.vlgmr.msra.gmra.mrb[16].mxu1 %v7727_v47  ;;  %6394 = vmatpush3.bf16.msra.mxu0 %v5368_v25  ;;  %v5379_v47 = vld [vmem:[#allocation2 + $0x258] sm:$0xff]   ;;  %v1173_v25 = vrot.slane %v7859_v63, 2 }
  0x9a   :  { %6426 = vmatpush3.bf16.msra.mxu1 %v5384_v31  ;;  %970 = vmatprep.mubr.f32.mxu0 %v7677_v17  ;;  %v1174_v31 = vrot.slane %v7867_v7, 2 }
  0x9b   :  { %1075 = vmatprep.mubr.f32.mxu1 %v7688_v20  ;;  %6396 = vmatprep.subr.bf16.mxu0 %v5377_v35  ;;  %v8908_v35 = vld [vmem:[#allocation21_spill] sm:$0xff] }
  0x9c   :  { %6428 = vmatprep.subr.bf16.mxu1 %v5393_v30  ;;  %971 = vmatmul.mubr.f32.gmra.mrb[18].mxu0 %v7721_v44  ;;  %v5387_v44 = vld [vmem:[#allocation2 + $0x298] sm:$0xff]   ;;  %v8909_v30 = vld [vmem:[#allocation22_spill] sm:$0xff] }
  0x9d   :  { %1076 = vmatmul.mubr.f32.gmra.mrb[18].mxu1 %v7732_v48  ;;  %6398 = vmatpush3.bf16.msra.mxu0 %v5369_v51  ;;  %v5380_v48 = vld [vmem:[#allocation2 + $0x260] sm:$0xff]  }
  0x9e   :  { %6430 = vmatpush3.bf16.msra.mxu1 %v5385_v56  ;;  %975 = vmatprep.mubr.f32.mxu0 %v7738_v52  ;;  %v1182_v56 = vrot.slane %v7918_v46, 2 }
  0x9f   :  { %1080 = vmatprep.mubr.f32.mxu1 %v7744_v54  ;;  %6400 = vmatprep.subr.bf16.mxu0 %v5378_v26  ;;  %v8910_v26 = vld [vmem:[#allocation23_spill] sm:$0xff] }
  0xa0   :  { %6432 = vmatprep.subr.bf16.mxu1 %v5394_v16  ;;  %976 = vmatmul.mubr.f32.gmra.mrb[20].mxu0 %v7753_v60  ;;  %v5388_v60 = vld [vmem:[#allocation2 + $0x2a0] sm:$0xff]   ;;  %v8911_v16 = vld [vmem:[#allocation24_spill] sm:$0xff] }
  0xa1   :  { %1081 = vmatmul.mubr.f32.gmra.mrb[20].mxu1 %v7764_v1  ;;  %6402 = vmatpush3.bf16.msra.mxu0 %v5370_v19  ;;  %v5381_v1 = vld [vmem:[#allocation2 + $0x268] sm:$0xff]   ;;  %v1186_v19 = vrot.slane %v7953_v3, 2 }
  0xa2   :  { %6434 = vmatpush3.bf16.msra.mxu1 %v5386_v42  ;;  %980 = vmatprep.mubr.f32.mxu0 %v7771_v5  ;;  %v1167_v5 = vrot.slane %v7836_v43, 2  ;;  %v1190_v42 = vrot.slane %v7960_v29, 2 }
  0xa3   :  { %1085 = vmatprep.mubr.f32.mxu1 %v7776_v6  ;;  %6404 = vmatprep.subr.bf16.mxu0 %v5379_v47  ;;  %v8912_v47 = vld [vmem:[#allocation25_spill] sm:$0xff] }
  0xa4   :  { %6436 = vmatprep.subr.bf16.mxu1 %v5395_v13  ;;  %981 = vmatmul.mubr.f32.gmra.mrb[22].mxu0 %v7782_v8  ;;  %v5389_v8 = vld [vmem:[#allocation2 + $0x2a8] sm:$0xff]   ;;  %v8913_v13 = vld [vmem:[#allocation26_spill] sm:$0xff] }
  0xa5   :  { %1086 = vmatmul.mubr.f32.gmra.mrb[22].mxu1 %v7787_v9  ;;  %6406 = vmatpush3.bf16.msra.mxu0 %v5371_v4  ;;  %v5382_v9 = vld [vmem:[#allocation2 + $0x270] sm:$0xff]   ;;  %v1194_v4 = vrot.slane %v8017_v53, 2  ;;  %v5407_v53 = vld [vmem:[%s8918_s30 + $0x40] sm:$0xff]  }
  0xa6   :  { %6438 = vmatpush3.bf16.msra.mxu1 %v5387_v44  ;;  %985 = vmatprep.mubr.f32.mxu0 %v7836_v43  ;;  %v1175_v43 = vsel %vm1111_vm1, %v1173_v25, %v1174_v31  ;;  %v1198_v44 = vrot.slane %v8022_v24, 2  ;;  %v5423_v24 = vld [vmem:[%s8918_s30 + $0xc0] sm:$0xff]  }
  0xa7   :  { %1090 = vmatprep.mubr.f32.mxu1 %v7859_v63  ;;  %6408 = vmatprep.subr.bf16.mxu0 %v5380_v48  ;;  %v8914_v48 = vld [vmem:[#allocation27_spill] sm:$0xff] }
  0xa8   :  { %6440 = vmatprep.subr.bf16.mxu1 %v5396_v59  ;;  %986 = vmatmul.mubr.f32.gmra.mrb[24].mxu0 %v7872_v11  ;;  %v5390_v11 = vld [vmem:[#allocation2 + $0x2b0] sm:$0xff]  }
  0xa9   :  { %1091 = vmatmul.mubr.f32.gmra.mrb[24].mxu1 %v7890_v22  ;;  %6410 = vmatpush3.bf16.msra.mxu0 %v5372_v27  ;;  %v5383_v22 = vld [vmem:[#allocation2 + $0x278] sm:$0xff]   ;;  %v8915_v59 = vld [vmem:[#allocation28_spill] sm:$0xff] }
  0xaa   :  { %6442 = vmatpush3.bf16.msra.mxu1 %v5388_v60  ;;  %990 = vmatprep.mubr.f32.mxu0 %v7854_v62  ;;  %v8916_v27 = vld [vmem:[#allocation29_spill] sm:$0xff]  ;;  %v8917_v60 = vld [vmem:[#allocation30_spill] sm:$0xff] }
  0xab   :  { %1095 = vmatprep.mubr.f32.mxu1 %v7867_v7  ;;  %6412 = vmatprep.subr.bf16.mxu0 %v5381_v1  ;;  %v1183_v7 = vsel %vm1111_vm1, %v1174_v31, %v1182_v56  ;;  %v5415_v1 = vld [vmem:[%s8918_s30 + $0x80] sm:$0xff]  }
  0xac   :  { %6444 = vmatprep.subr.bf16.mxu1 %v5397_v33  ;;  %991 = vmatmul.mubr.f32.gmra.mrb[26].mxu0 %v7877_v12  ;;  %v5391_v12 = vld [vmem:[#allocation2 + $0x2b8] sm:$0xff]   ;;  %v5424_v33 = vld [vmem:[%s8918_s30 + $0xc8] sm:$0xff]  }
  0xad   :  { %1096 = vmatmul.mubr.f32.gmra.mrb[26].mxu1 %v7895_v28  ;;  %6414 = vmatpush3.bf16.msra.mxu0 %v5373_v45  ;;  %v1126_v28 = vrot.slane %v7738_v52, 2  ;;  %v8901_v52 = vrot.slane %v7688_v20, 2  ;;  %v1146_v20 = vrot.slane %v8905_v10, 2  ;;  %v5400_v45 = vld [vmem:[%s8918_s30 + $0x8] sm:$0xff]   ;;  %v5406_v10 = vld [vmem:[%s8918_s30 + $0x38] sm:$0xff]  }
  0xae   :  { %6446 = vmatpush3.bf16.msra.mxu1 %v5389_v8  ;;  %995 = vmatprep.mubr.f32.mxu0 %v7913_v41  ;;  %v5416_v8 = vld [vmem:[%s8918_s30 + $0x88] sm:$0xff]  }
  0xaf   :  { %1100 = vmatprep.mubr.f32.mxu1 %v7918_v46  ;;  %6416 = vmatprep.subr.bf16.mxu0 %v5382_v9  ;;  %v1131_v54 = vsel %vm1111_vm1, %v8901_v52, %v1130_v0  ;;  %v1191_v46 = vsel %vm1111_vm1, %v1182_v56, %v1190_v42  ;;  %v5409_v9 = vld [vmem:[%s8918_s30 + $0x50] sm:$0xff]   ;;  %v5412_v52 = vld [vmem:[%s8918_s30 + $0x68] sm:$0xff]  }
  0xb0   :  { %6448 = vmatprep.subr.bf16.mxu1 %v5398_v40  ;;  %996 = vmatmul.mubr.f32.gmra.mrb[28].mxu0 %v7935_v49  ;;  %v5425_v40 = vld [vmem:[%s8918_s30 + $0xd0] sm:$0xff]  }
  0xb1   :  { %1101 = vmatmul.mubr.f32.gmra.mrb[28].mxu1 %v7948_v55  ;;  %6418 = vmatpush3.bf16.msra.mxu0 %v5374_v57  ;;  %v8900_v55 = vrot.slane %v7677_v17, 2  ;;  %v5401_v57 = vld [vmem:[%s8918_s30 + $0x10] sm:$0xff]  }
  0xb2   :  { %6450 = vmatpush3.bf16.msra.mxu1 %v5390_v11  ;;  %1000 = vmatprep.mubr.f32.mxu0 %v7953_v3  ;;  %v1199_v3 = vsel %vm1111_vm1, %v1190_v42, %v1198_v44  ;;  %v5417_v11 = vld [vmem:[%s8918_s30 + $0x90] sm:$0xff]  }
  0xb3   :  { %1105 = vmatprep.mubr.f32.mxu1 %v7960_v29  ;;  %6420 = vmatprep.subr.bf16.mxu0 %v5383_v22  ;;  %v1127_v49 = vsel %vm1111_vm1, %v8900_v55, %v1126_v28  ;;  %v1195_v29 = vsel %vm1111_vm1, %v1186_v19, %v1194_v4  ;;  %v5410_v22 = vld [vmem:[%s8918_s30 + $0x58] sm:$0xff]   ;;  %v5403_v55 = vld [vmem:[%s8918_s30 + $0x20] sm:$0xff]  }
  0xb4   :  { %6452 = vmatprep.subr.bf16.mxu1 %v5399_v32  ;;  %1001 = vmatmul.mubr.f32.gmra.mrb[30].mxu0 %v7965_v23  ;;  %v1138_v23 = vrot.slane %v7776_v6, 2  ;;  %v1168_v6 = vrot.slane %v7854_v62, 2  ;;  %v1178_v62 = vrot.slane %v7913_v41, 2  ;;  %v5426_v32 = vld [vmem:[%s8918_s30 + $0xd8] sm:$0xff]  }
  0xb5   :  { %1106 = vmatmul.mubr.f32.gmra.mrb[30].mxu1 %v7970_v34  ;;  %6422 = vmatpush3.bf16.msra.mxu0 %v5375_v2  ;;  %v8903_v34 = vld [vmem:[#allocation16_spill] sm:$0xff]  ;;  %v5402_v2 = vld [vmem:[%s8918_s30 + $0x18] sm:$0xff]  }
  0xb6   :  { %6454 = vmatpush3.bf16.msra.mxu1 %v5391_v12  ;;  %1280 = vmatprep.mubr.f32.mxu0 %v7706_v36  ;;  %v1135_v36 = vsel %vm1111_vm1, %v1126_v28, %v1134_v18  ;;  %v1139_v17 = vsel %vm1111_vm1, %v1130_v0, %v1138_v23  ;;  %v1147_v39 = vsel %vm1111_vm1, %v1138_v23, %v1146_v20  ;;  %v5418_v12 = vld [vmem:[%s8918_s30 + $0x98] sm:$0xff]   ;;  %v5411_v28 = vld [vmem:[%s8918_s30 + $0x60] sm:$0xff]   ;;  %v5420_v23 = vld [vmem:[%s8918_s30 + $0xa8] sm:$0xff]  }
  0xb7   :  { %1385 = vmatprep.mubr.f32.mxu1 %v7711_v37  ;;  %v8904_v37 = vld [vmem:[#allocation17_spill] sm:$0xff]  ;;  %v1169_v51 = vsel %vm1111_vm1, %v1167_v5, %v1168_v6  ;;  %v1179_v63 = vsel %vm1111_vm1, %v1168_v6, %v1178_v62  ;;  %v1187_v41 = vsel %vm1111_vm1, %v1178_v62, %v1186_v19  ;;  %6456 = vmatprep.subr.bf16.mxu0 %v5407_v53  ;;  %v5427_v0 = vld [vmem:[%s8918_s30 + $0xe0] sm:$0xff]  }
  0xb8   :  { %1281 = vmatmul.mubr.f32.vlgmr.msra.gmra.mrb[32].mxu0 %v8902_v15  ;;  %v1142_v61 = vrot.slane %v8904_v37, 2  ;;  %6488 = vmatprep.subr.bf16.mxu1 %v5423_v24  ;;  %v5413_v15 = vld [vmem:[%s8918_s30 + $0x70] sm:$0xff]   ;;  %v5414_v37 = vld [vmem:[%s8918_s30 + $0x78] sm:$0xff]  }
  0xb9   :  { %1386 = vmatmul.mubr.f32.vlgmr.msra.gmra.mrb[32].mxu1 %v8903_v34  ;;  %1285 = vmatprep.mubr.f32.mxu0 %v1127_v49  ;;  %v5419_v49 = vld [vmem:[%s8918_s30 + $0xa0] sm:$0xff]   ;;  %v5429_v34 = vld [vmem:[%s8918_s30 + $0xf0] sm:$0xff]   ;;  %v5422_v20 = vld [vmem:[%s8918_s30 + $0xb8] sm:$0xff]  }
  0xba   :  { %1390 = vmatprep.mubr.f32.mxu1 %v1131_v54  ;;  %v1143_v21 = vsel %vm1111_vm1, %v1134_v18, %v1142_v61  ;;  %6490 = vmatpush3.bf16.msra.mxu1 %v5415_v1  ;;  %v5428_v54 = vld [vmem:[%s8918_s30 + $0xe8] sm:$0xff]   ;;  %v5430_v61 = vld [vmem:[%s8918_s30 + $0xf8] sm:$0xff]  }
  0xbb   :  { %6492 = vmatprep.subr.bf16.mxu1 %v5424_v33  ;;  %v5404_v18 = vld [vmem:[%s8918_s30 + $0x28] sm:$0xff]  }
  0xbc   :  { %1286 = vmatmul.mubr.f32.gmra.mrb[34].mxu0 %v8906_v58  ;;  %v5439_v58 = vld [vmem:[%s8918_s30 + $0x140] sm:$0xff]  }
  0xbd   :  { %1391 = vmatmul.mubr.f32.gmra.mrb[34].mxu1 %v8907_v14  ;;  %1290 = vmatprep.mubr.f32.mxu0 %v1135_v36  ;;  %v5405_v36 = vld [vmem:[%s8918_s30 + $0x30] sm:$0xff]   ;;  %v8249_v14 = vld [vmem:[%s8918_s30 + $0x180] sm:$0xff]  }
  0xbe   :  { %1395 = vmatprep.mubr.f32.mxu1 %v1139_v17  ;;  %6494 = vmatpush3.bf16.msra.mxu1 %v5416_v8  ;;  %v5421_v17 = vld [vmem:[%s8918_s30 + $0xb0] sm:$0xff]  }
  0xbf   :  { %6496 = vmatprep.subr.bf16.mxu1 %v5425_v40 }
  0xc0   :  { %1291 = vmatmul.mubr.f32.gmra.mrb[36].mxu0 %v8908_v35 }
  0xc1   :  { %1396 = vmatmul.mubr.f32.gmra.mrb[36].mxu1 %v8909_v30  ;;  %1295 = vmatprep.mubr.f32.mxu0 %v1143_v21 }
  0xc2   :  { %1400 = vmatprep.mubr.f32.mxu1 %v1147_v39  ;;  %6498 = vmatpush3.bf16.msra.mxu1 %v5417_v11 }
  0xc3   :  { %6500 = vmatprep.subr.bf16.mxu1 %v5426_v32 }
  0xc4   :  { %1296 = vmatmul.mubr.f32.gmra.mrb[38].mxu0 %v8910_v26 }
  0xc5   :  { %1401 = vmatmul.mubr.f32.gmra.mrb[38].mxu1 %v8911_v16  ;;  %1300 = vmatprep.mubr.f32.mxu0 %v1169_v51 }
  0xc6   :  { %1405 = vmatprep.mubr.f32.mxu1 %v1175_v43  ;;  %6502 = vmatpush3.bf16.msra.mxu1 %v5418_v12 }
  0xc7   :  { %6504 = vmatprep.subr.bf16.mxu1 %v5427_v0 }
  0xc8   :  { %1301 = vmatmul.mubr.f32.gmra.mrb[40].mxu0 %v8912_v47 }
  0xc9   :  { %1406 = vmatmul.mubr.f32.gmra.mrb[40].mxu1 %v8913_v13  ;;  %1305 = vmatprep.mubr.f32.mxu0 %v1179_v63 }
  0xca   :  { %1410 = vmatprep.mubr.f32.mxu1 %v1183_v7  ;;  %6506 = vmatpush3.bf16.msra.mxu1 %v5419_v49 }
  0xcb   :  { %6508 = vmatprep.subr.bf16.mxu1 %v5428_v54 }
  0xcc   :  { %1306 = vmatmul.mubr.f32.gmra.mrb[42].mxu0 %v8914_v48 }
  0xcd   :  { %1411 = vmatmul.mubr.f32.gmra.mrb[42].mxu1 %v8915_v59  ;;  %1310 = vmatprep.mubr.f32.mxu0 %v1187_v41 }
  0xce   :  { %1415 = vmatprep.mubr.f32.mxu1 %v1191_v46  ;;  %6510 = vmatpush3.bf16.msra.mxu1 %v5420_v23 }
  0xcf   :  { %6512 = vmatprep.subr.bf16.mxu1 %v5429_v34 }
  0xd0   :  { %1311 = vmatmul.mubr.f32.gmra.mrb[44].mxu0 %v8027_v50  ;;  %v4922_v50 = vld [vmem:[%s8918_s30] sm:$0xff]  }
  0xd1   :  { %1416 = vmatmul.mubr.f32.gmra.mrb[44].mxu1 %v8916_v27  ;;  %1315 = vmatprep.mubr.f32.mxu0 %v1195_v29 }
  0xd2   :  { %1420 = vmatprep.mubr.f32.mxu1 %v1199_v3  ;;  %6458 = vmatpush3.bf16.msra.mxu0 %v4922_v50 }
  0xd3   :  { %6514 = vmatpush3.bf16.msra.mxu1 %v5421_v17 }
  0xd4   :  { %1316 = vmatmul.mubr.f32.gmra.mrb[46].mxu0 %v8917_v60  ;;  %6516 = vmatprep.subr.bf16.mxu1 %v5430_v61 }
  0xd5   :  { %1421 = vmatmul.mubr.f32.gmra.mrb[46].mxu1 %v8045_v38  ;;  %v5408_v38 = vld [vmem:[%s8918_s30 + $0x48] sm:$0xff]  }
  0xd6   :  { %6460 = vmatprep.subr.bf16.mxu0 %v5408_v38 }
  0xd7   :  { %6462 = vmatpush3.bf16.msra.mxu0 %v5400_v45  ;;  %6518 = vmatpush3.bf16.msra.mxu1 %v5422_v20 }
  0xd8   :  { %6464 = vmatprep.subr.bf16.mxu0 %v5409_v9  ;;  %6552 = vmatprep.subr.bf16.mxu1 %v8249_v14 }
  0xdb   :  { %6466 = vmatpush3.bf16.msra.mxu0 %v5401_v57 }
  0xdc   :  { %6468 = vmatprep.subr.bf16.mxu0 %v5410_v22 }
  0xdf   :  { %6470 = vmatpush3.bf16.msra.mxu0 %v5402_v2 }
  0xe0   :  { %6472 = vmatprep.subr.bf16.mxu0 %v5411_v28 }
  0xe3   :  { %6474 = vmatpush3.bf16.msra.mxu0 %v5403_v55 }
  0xe4   :  { %6476 = vmatprep.subr.bf16.mxu0 %v5412_v52 }
  0xe7   :  { %6478 = vmatpush3.bf16.msra.mxu0 %v5404_v18 }
  0xe8   :  { %6480 = vmatprep.subr.bf16.mxu0 %v5413_v15 }
  0xeb   :  { %6482 = vmatpush3.bf16.msra.mxu0 %v5405_v36 }
  0xec   :  { %6484 = vmatprep.subr.bf16.mxu0 %v5414_v37 }
  0xef   :  { %6486 = vmatpush3.bf16.msra.mxu0 %v5406_v10 }
  0xf0   :  { %6520 = vmatprep.subr.bf16.mxu0 %v5439_v58 }
 0x14b   :  { %v5526_v5 = vpop.f32.mrb[0].mxu0 }
 0x14c   :  { %v5582_v6 = vpop.f32.mrb[0].mxu1  ;;  %v5527_v21 = vpop.f32.mrb[1].mxu0 }
 0x14d   :  { %v5583_v39 = vpop.f32.mrb[1].mxu1  ;;  %v5528_v25 = vadd.f32 %v5527_v21, %v5526_v5 }
 0x14e   :  { %v5584_v31 = vadd.f32 %v5583_v39, %v5582_v6 }
 0x14f   :  { %v5529_v30 = vpop.f32.mrb[2].mxu0 }
 0x150   :  { %v863_v35 = vadd.f32 %v5584_v31, %v5528_v25  ;;  %v5585_v51 = vpop.f32.mrb[2].mxu1  ;;  %v5530_v43 = vpop.f32.mrb[3].mxu0 }
 0x151   :  { %v5586_v62 = vpop.f32.mrb[3].mxu1  ;;  %v5531_v56 = vadd.f32 %v5530_v43, %v5529_v30 }
 0x152   :  { %v5587_v26 = vadd.f32 %v5586_v62, %v5585_v51 }
 0x153   :  { %v5532_v63 = vpop.f32.mrb[4].mxu0 }
 0x154   :  { %v868_v16 = vadd.f32 %v5587_v26, %v5531_v56  ;;  %v5588_v7 = vpop.f32.mrb[4].mxu1  ;;  %v5533_v19 = vpop.f32.mrb[5].mxu0 }
 0x155   :  { %v5589_v42 = vpop.f32.mrb[5].mxu1  ;;  %v5534_v47 = vadd.f32 %v5533_v19, %v5532_v63 }
 0x156   :  { %v5590_v13 = vadd.f32 %v5589_v42, %v5588_v7 }
 0x157   :  { %v5535_v46 = vpop.f32.mrb[6].mxu0 }
 0x158   :  { %v873_v41 = vadd.f32 %v5590_v13, %v5534_v47  ;;  %v5591_v4 = vpop.f32.mrb[6].mxu1  ;;  %v5536_v44 = vpop.f32.mrb[7].mxu0 }
 0x159   :  { %v5592_v48 = vpop.f32.mrb[7].mxu1  ;;  %v5537_v59 = vadd.f32 %v5536_v44, %v5535_v46 }
 0x15a   :  { %v5593_v29 = vadd.f32 %v5592_v48, %v5591_v4 }
 0x15b   :  { %v5538_v27 = vpop.f32.mrb[8].mxu0 }
 0x15c   :  { %v878_v3 = vadd.f32 %v5593_v29, %v5537_v59  ;;  %v5594_v60 = vpop.f32.mrb[8].mxu1  ;;  %v5539_v53 = vpop.f32.mrb[9].mxu0 }
 0x15d   :  { %v5595_v24 = vpop.f32.mrb[9].mxu1  ;;  %v5540_v50 = vadd.f32 %v5539_v53, %v5538_v27 }
 0x15e   :  { %v5596_v1 = vadd.f32 %v5595_v24, %v5594_v60 }
 0x15f   :  { %v5541_v33 = vpop.f32.mrb[10].mxu0 }
 0x160   :  { %v883_v38 = vadd.f32 %v5596_v1, %v5540_v50  ;;  %v5597_v45 = vpop.f32.mrb[10].mxu1  ;;  %v5542_v8 = vpop.f32.mrb[11].mxu0 }
 0x161   :  { %v5598_v9 = vpop.f32.mrb[11].mxu1  ;;  %v5543_v40 = vadd.f32 %v5542_v8, %v5541_v33 }
 0x162   :  { %v5599_v57 = vadd.f32 %v5598_v9, %v5597_v45 }
 0x163   :  { %v5544_v22 = vpop.f32.mrb[12].mxu0 }
 0x164   :  { %v888_v11 = vadd.f32 %v5599_v57, %v5543_v40  ;;  %v5600_v32 = vpop.f32.mrb[12].mxu1  ;;  %v5545_v2 = vpop.f32.mrb[13].mxu0 }
 0x165   :  { %v5601_v12 = vpop.f32.mrb[13].mxu1  ;;  %v5546_v28 = vadd.f32 %v5545_v2, %v5544_v22 }
 0x166   :  { %v5602_v0 = vadd.f32 %v5601_v12, %v5600_v32 }
 0x167   :  { %v5547_v49 = vpop.f32.mrb[14].mxu0 }
 0x168   :  { %v893_v55 = vadd.f32 %v5602_v0, %v5546_v28  ;;  %v5603_v52 = vpop.f32.mrb[14].mxu1  ;;  %v5548_v54 = vpop.f32.mrb[15].mxu0 }
 0x169   :  { %v5604_v18 = vpop.f32.mrb[15].mxu1  ;;  %v5549_v23 = vadd.f32 %v5548_v54, %v5547_v49 }
 0x16a   :  { %v5605_v15 = vadd.f32 %v5604_v18, %v5603_v52 }
 0x16b   :  { %v5638_v36 = vpop.f32.mrb[16].mxu0 }
 0x16c   :  { %v8252_v34 = vadd.f32 %v5605_v15, %v5549_v23  ;;  %v5694_v17 = vpop.f32.mrb[16].mxu1  ;;  %v5639_v37 = vpop.f32.mrb[17].mxu0 }
 0x16d   :  { %v5695_v61 = vpop.f32.mrb[17].mxu1  ;;  %v5640_v10 = vadd.f32 %v5639_v37, %v5638_v36 }
 0x16e   :  { %v5696_v20 = vadd.f32 %v5695_v61, %v5694_v17 }
 0x16f   :  { %v968_v58 = vadd.f32 %v5640_v10, %v863_v35  ;;  %v5641_v5 = vpop.f32.mrb[18].mxu0 }
 0x170   :  { %v5697_v6 = vpop.f32.mrb[18].mxu1  ;;  %v5642_v21 = vpop.f32.mrb[19].mxu0 }
 0x171   :  { %v5698_v39 = vpop.f32.mrb[19].mxu1  ;;  %v8254_v25 = vadd.f32 %v5696_v20, %v968_v58  ;;  %v5643_v31 = vadd.f32 %v5642_v21, %v5641_v5 }
 0x172   :  { %v5699_v30 = vadd.f32 %v5698_v39, %v5697_v6 }
 0x173   :  { %v973_v51 = vadd.f32 %v5643_v31, %v868_v16  ;;  %v5644_v43 = vpop.f32.mrb[20].mxu0  ;;  %v8274_v31 = vld [vmem:[%s8919_s23] ss:$0 sm:$0xff] }
 0x174   :  { %v5700_v62 = vpop.f32.mrb[20].mxu1  ;;  %v5645_v56 = vpop.f32.mrb[21].mxu0 }
 0x175   :  { %v5701_v26 = vpop.f32.mrb[21].mxu1  ;;  %v8256_v63 = vadd.f32 %v5699_v30, %v973_v51  ;;  %v5646_v7 = vadd.f32 %v5645_v56, %v5644_v43  ;;  %v8280_v56 = vld [vmem:[%s8920_s26] ss:$0 sm:$0xff]  ;;  %s7502_s26 = smov [#allocation10]  }
 0x176   :  { %v5702_v19 = vadd.f32 %v5701_v26, %v5700_v62  ;;  %s4472_s27 = sshll.u32 %s7502_s26, 4  ;;  %s4473_s27 = int_to_ptr.vmem [resolvable:$true] %s4472_s27 }
 0x177   :  { %v978_v42 = vadd.f32 %v5646_v7, %v873_v41  ;;  %v5647_v47 = vpop.f32.mrb[22].mxu0  ;;  %p7467_p5 = scmp.lt.s32.totalorder %s4473_s27, %s4473_s27 }
 0x178   :  { %v5703_v35 = vpop.f32.mrb[22].mxu1  ;;  %v5648_v13 = vpop.f32.mrb[23].mxu0 }
 0x179   :  { %v5704_v46 = vpop.f32.mrb[23].mxu1  ;;  %v8258_v4 = vadd.f32 %v5702_v19, %v978_v42  ;;  %v5649_v44 = vadd.f32 %v5648_v13, %v5647_v47 }
 0x17a   :  { %v5705_v48 = vadd.f32 %v5704_v46, %v5703_v35 }
 0x17b   :  { %v983_v59 = vadd.f32 %v5649_v44, %v878_v3  ;;  %v5650_v29 = vpop.f32.mrb[24].mxu0 }
 0x17c   :  { %v5706_v16 = vpop.f32.mrb[24].mxu1  ;;  %v5651_v27 = vpop.f32.mrb[25].mxu0 }
 0x17d   :  { %v5707_v60 = vpop.f32.mrb[25].mxu1  ;;  %v8260_v53 = vadd.f32 %v5705_v48, %v983_v59  ;;  %v5652_v24 = vadd.f32 %v5651_v27, %v5650_v29 }
 0x17e   :  { %v5708_v50 = vadd.f32 %v5707_v60, %v5706_v16 }
 0x17f   :  { %v988_v1 = vadd.f32 %v5652_v24, %v883_v38  ;;  %v5653_v33 = vpop.f32.mrb[26].mxu0 }
 0x180   :  { %v5709_v41 = vpop.f32.mrb[26].mxu1  ;;  %v5654_v45 = vpop.f32.mrb[27].mxu0 }
 0x181   :  { %v5710_v8 = vpop.f32.mrb[27].mxu1  ;;  %v8262_v9 = vadd.f32 %v5708_v50, %v988_v1  ;;  %v5655_v40 = vadd.f32 %v5654_v45, %v5653_v33 }
 0x182   :  { %v5711_v57 = vadd.f32 %v5710_v8, %v5709_v41 }
 0x183   :  { %v993_v22 = vadd.f32 %v5655_v40, %v888_v11  ;;  %v5656_v32 = vpop.f32.mrb[28].mxu0 }
 0x184   :  { %v5712_v3 = vpop.f32.mrb[28].mxu1  ;;  %v5657_v2 = vpop.f32.mrb[29].mxu0 }
 0x185   :  { %v5713_v12 = vpop.f32.mrb[29].mxu1  ;;  %v8264_v28 = vadd.f32 %v5711_v57, %v993_v22  ;;  %v5658_v0 = vadd.f32 %v5657_v2, %v5656_v32 }
 0x186   :  { %v5714_v49 = vadd.f32 %v5713_v12, %v5712_v3 }
 0x187   :  { %v998_v52 = vadd.f32 %v5658_v0, %v893_v55  ;;  %v5659_v54 = vpop.f32.mrb[30].mxu0 }
 0x188   :  { %v5715_v38 = vpop.f32.mrb[30].mxu1  ;;  %v5660_v18 = vpop.f32.mrb[31].mxu0 }
 0x189   :  { %v5716_v23 = vpop.f32.mrb[31].mxu1  ;;  %v8266_v15 = vadd.f32 %v5714_v49, %v998_v52  ;;  %v5661_v36 = vadd.f32 %v5660_v18, %v5659_v54 }
 0x18a   :  { %v5717_v17 = vadd.f32 %v5716_v23, %v5715_v38 }
 0x18b   :  { %v1003_v37 = vadd.f32 %v5661_v36, %v8252_v34  ;;  %v5750_v11 = vpop.f32.mrb[32].mxu0 }
 0x18c   :  { %v5806_v61 = vpop.f32.mrb[32].mxu1  ;;  %v5751_v10 = vpop.f32.mrb[33].mxu0 }
 0x18d   :  { %v5807_v20 = vpop.f32.mrb[33].mxu1  ;;  %v8269_v58 = vadd.f32 %v5717_v17, %v1003_v37  ;;  %v5752_v5 = vadd.f32 %v5751_v10, %v5750_v11 }
 0x18e   :  { %v5808_v6 = vadd.f32 %v5807_v20, %v5806_v61 }
 0x18f   :  { %v5753_v55 = vpop.f32.mrb[34].mxu0 }
 0x190   :  { %v1388_v21 = vadd.f32 %v5808_v6, %v5752_v5  ;;  %v5809_v39 = vpop.f32.mrb[34].mxu1  ;;  %v5754_v30 = vpop.f32.mrb[35].mxu0 }
 0x191   :  { %v5810_v51 = vpop.f32.mrb[35].mxu1  ;;  %v5755_v43 = vadd.f32 %v5754_v30, %v5753_v55 }
 0x192   :  { %v1426_v34 = vadd.f32 %v1388_v21, %v8254_v25  ;;  %v5811_v62 = vadd.f32 %v5810_v51, %v5809_v39 }
 0x193   :  { %v5756_v19 = vpop.f32.mrb[36].mxu0 }
 0x194   :  { %v1442_v26 = vmul.f32 %v8274_v31, %v1426_v34  ;;  %v1393_v7 = vadd.f32 %v5811_v62, %v5755_v43  ;;  %v5812_v42 = vpop.f32.mrb[36].mxu1  ;;  %v5757_v47 = vpop.f32.mrb[37].mxu0 }
 0x195   :  { %v5813_v35 = vpop.f32.mrb[37].mxu1  ;;  %v5758_v44 = vadd.f32 %v5757_v47, %v5756_v19  ;;  %v5431_v47 = vld [vmem:[%s8918_s30 + $0x100] sm:$0xff]  }
 0x196   :  { %v1456_v13 = vadd.f32 %v8280_v56, %v1442_v26  ;;  %v1427_v46 = vadd.f32 %v1393_v7, %v8256_v63  ;;  %v5814_v25 = vadd.f32 %v5813_v35, %v5812_v42 }
 0x197   :  { %v5759_v16 = vpop.f32.mrb[38].mxu0 }
 0x198   :  { %v1464_v48 = vmax.f32 %v1456_v13, 0.0  ;;  %v1443_v59 = vmul.f32 %v8274_v31, %v1427_v46  ;;  %v1398_v29 = vadd.f32 %v5814_v25, %v5758_v44  ;;  %v5815_v27 = vpop.f32.mrb[38].mxu1  ;;  %v5760_v60 = vpop.f32.mrb[39].mxu0  ;;  %v5440_v25 = vld [vmem:[%s8918_s30 + $0x148] sm:$0xff]  }
 0x199   :  { %v5816_v24 = vpop.f32.mrb[39].mxu1  ;;  %v5761_v41 = vadd.f32 %v5760_v60, %v5759_v16 }
 0x19a   :  { %v1701_v50 = vrot.slane %v1464_v48, 5  ;;  %v1457_v1 = vadd.f32 %v8280_v56, %v1443_v59  ;;  %v1428_v33 = vadd.f32 %v1398_v29, %v8258_v4  ;;  %v5817_v45 = vadd.f32 %v5816_v24, %v5815_v27 }
 0x19b   :  { %v5762_v57 = vpop.f32.mrb[40].mxu0 }
 0x19c   :  { %v8289_v63 = vsel %vm1700_vm2, 0.0, %v1701_v50  ;;  %v1465_v8 = vmax.f32 %v1457_v1, 0.0  ;;  %v1444_v40 = vmul.f32 %v8274_v31, %v1428_v33  ;;  %v5818_v22 = vpop.f32.mrb[40].mxu1  ;;  %v1403_v32 = vadd.f32 %v5817_v45, %v5761_v41  ;;  %v5763_v3 = vpop.f32.mrb[41].mxu0 }
 0x19d   :  { %v5819_v2 = vpop.f32.mrb[41].mxu1  ;;  %v1735_v12 = vrot.slane %v8289_v63, 1  ;;  %v1762_v0 = vrot.slane %v8289_v63, 3  ;;  %v5764_v52 = vadd.f32 %v5763_v3, %v5762_v57  ;;  %v1748_v18 = vrot.slane %v8289_v63, 2 }
 0x19e   :  { %v1702_v49 = vrot.slane %v1465_v8, 5  ;;  %v1458_v4 = vadd.f32 %v8280_v56, %v1444_v40  ;;  %v5820_v54 = vadd.f32 %v5819_v2, %v5818_v22  ;;  %v1429_v38 = vadd.f32 %v1403_v32, %v8260_v53  ;;  %v5448_v22 = vld [vmem:[%s8918_s30 + $0x188] sm:$0xff]  }
 0x19f   :  { %v1789_v23 = vrot.slane %v8289_v63, 5  ;;  %v1803_v36 = vrot.slane %v8289_v63, 6  ;;  %v5765_v61 = vpop.f32.mrb[42].mxu0  ;;  %v1776_v20 = vrot.slane %v8289_v63, 4  ;;  %v5451_v63 = vld [vmem:[%s8918_s30 + $0x1a0] sm:$0xff]  }
 0x1a0   :  { %v8300_v17 = vsel %vm1700_vm2, %v1701_v50, %v1702_v49  ;;  %v1466_v37 = vmax.f32 %v1458_v4, 0.0  ;;  %v1408_v11 = vadd.f32 %v5820_v54, %v5764_v52  ;;  %v5821_v10 = vpop.f32.mrb[42].mxu1  ;;  %v1445_v5 = vmul.f32 %v8274_v31, %v1429_v38  ;;  %v5766_v6 = vpop.f32.mrb[43].mxu0 }
 0x1a1   :  { %v5822_v21 = vpop.f32.mrb[43].mxu1  ;;  %v1736_v53 = vrot.slane %v8300_v17, 1  ;;  %v1763_v55 = vrot.slane %v8300_v17, 3  ;;  %v1749_v39 = vrot.slane %v8300_v17, 2  ;;  %v5767_v34 = vadd.f32 %v5766_v6, %v5765_v61 }
 0x1a2   :  { %v1704_v30 = vrot.slane %v1466_v37, 5  ;;  %v1430_v51 = vadd.f32 %v1408_v11, %v8262_v9  ;;  %v5823_v43 = vadd.f32 %v5822_v21, %v5821_v10  ;;  %v1459_v26 = vadd.f32 %v8280_v56, %v1445_v5 }
 0x1a3   :  { %v1737_v7 = vsel %vm566_vm0, %v1735_v12, %v1736_v53  ;;  %v1764_v19 = vsel %vm1761_vm3, %v1762_v0, %v1763_v55  ;;  %v1750_v42 = vsel %vm1111_vm1, %v1748_v18, %v1749_v39  ;;  %v5768_v46 = vpop.f32.mrb[44].mxu0  ;;  %v1790_v48 = vrot.slane %v8300_v17, 5  ;;  %v5441_v0 = vld [vmem:[%s8918_s30 + $0x150] sm:$0xff]  }
 0x1a4   :  { %v8321_v9 = vsel %vm1700_vm2, %v1702_v49, %v1704_v30  ;;  %v1446_v35 = vmul.f32 %v8274_v31, %v1430_v51  ;;  %v1413_v13 = vadd.f32 %v5823_v43, %v5767_v34  ;;  %v5824_v44 = vpop.f32.mrb[44].mxu1  ;;  %1960 = vmatprep.mubr.f32.mxu0 %v1737_v7  ;;  %2065 = vmatprep.mubr.f32.mxu1 %v1764_v19  ;;  %v1467_v59 = vmax.f32 %v1459_v26, 0.0  ;;  %v5769_v29 = vpop.f32.mrb[45].mxu0  ;;  %v5449_v18 = vld [vmem:[%s8918_s30 + $0x190] sm:$0xff]  }
 0x1a5   :  { %v5825_v16 = vpop.f32.mrb[45].mxu1  ;;  %4509 = vmatmul.mubr.msk.f32.vlgmr.msra.gmra.mrb[48].mxu0 %vm8309_vm4, %v1701_v50  ;;  %2066 = vmatmul.mubr.f32.vlgmr.msra.gmra.mrb[48].mxu1 %v1750_v42  ;;  %v1738_v27 = vrot.slane %v8321_v9, 1  ;;  %v1765_v60 = vrot.slane %v8321_v9, 3  ;;  %v1751_v24 = vrot.slane %v8321_v9, 2  ;;  %v5770_v41 = vadd.f32 %v5769_v29, %v5768_v46  ;;  %v5433_v19 = vld [vmem:[%s8918_s30 + $0x110] sm:$0xff]  }
 0x1a6   :  { %v1460_v1 = vadd.f32 %v8280_v56, %v1446_v35  ;;  %v1431_v33 = vadd.f32 %v1413_v13, %v8264_v28  ;;  %v5826_v45 = vadd.f32 %v5825_v16, %v5824_v44  ;;  %6522 = vmatpush3.bf16.msra.mxu0 %v5431_v47  ;;  %v1706_v8 = vrot.slane %v1467_v59, 5  ;;  %6554 = vmatpush3.bf16.msra.mxu1 %v8249_v14  ;;  %v5432_v28 = vld [vmem:[%s8918_s30 + $0x108] sm:$0xff]   ;;  %v5450_v59 = vld [vmem:[%s8918_s30 + $0x198] sm:$0xff]  }
 0x1a7   :  { %v1739_v40 = vsel %vm566_vm0, %v1736_v53, %v1738_v27  ;;  %v1766_v50 = vsel %vm1761_vm3, %v1763_v55, %v1765_v60  ;;  %v1752_v57 = vsel %vm1111_vm1, %v1749_v39, %v1751_v24  ;;  %6524 = vmatprep.subr.bf16.mxu0 %v5440_v25  ;;  %v5771_v2 = vpop.f32.mrb[46].mxu0  ;;  %v8354_v49 = vsel %vm1700_vm2, %v1789_v23, %v1790_v48  ;;  %v5442_v25 = vld [vmem:[%s8918_s30 + $0x158] sm:$0xff]  }
 0x1a8   :  { %v1468_v32 = vmax.f32 %v1460_v1, 0.0  ;;  %v1447_v14 = vmul.f32 %v8274_v31, %v1431_v33  ;;  %v1418_v3 = vadd.f32 %v5826_v45, %v5770_v41  ;;  %v5827_v12 = vpop.f32.mrb[46].mxu1  ;;  %1965 = vmatprep.mubr.f32.mxu0 %v1739_v40  ;;  %2070 = vmatprep.mubr.f32.mxu1 %v1766_v50  ;;  %v8357_v4 = vsel %vm1700_vm2, %v1704_v30, %v1706_v8  ;;  %v5772_v54 = vpop.f32.mrb[47].mxu0  ;;  %v5434_v41 = vld [vmem:[%s8918_s30 + $0x118] sm:$0xff]  }
 0x1a9   :  { %v8360_v52 = vsel %vm1700_vm2, %v1706_v8, 0.0  ;;  %v5828_v38 = vpop.f32.mrb[47].mxu1  ;;  %1966 = vmatmul.mubr.f32.gmra.mrb[50].mxu0 %v8300_v17  ;;  %2071 = vmatmul.mubr.f32.gmra.mrb[50].mxu1 %v1752_v57  ;;  %v1804_v37 = vrot.slane %v8300_v17, 6  ;;  %v1777_v23 = vrot.slane %v8300_v17, 4  ;;  %v5773_v5 = vadd.f32 %v5772_v54, %v5771_v2  ;;  %v5436_v17 = vld [vmem:[%s8918_s30 + $0x128] sm:$0xff]  }
 0x1aa   :  { %v8368_v11 = vrot.slane %v1468_v32, 5  ;;  %v1461_v61 = vadd.f32 %v8280_v56, %v1447_v14  ;;  %v1432_v10 = vadd.f32 %v1418_v3, %v8266_v15  ;;  %6556 = vmatprep.subr.bf16.mxu1 %v5448_v22  ;;  %6526 = vmatpush3.bf16.msra.mxu0 %v5432_v28  ;;  %v5829_v6 = vadd.f32 %v5828_v38, %v5827_v12 }
 0x1ab   :  { %6558 = vmatpush3.bf16.msra.mxu1 %v5448_v22  ;;  %v1740_v21 = vrot.slane %v8357_v4, 1  ;;  %v1767_v53 = vrot.slane %v8357_v4, 3  ;;  %v1753_v55 = vrot.slane %v8357_v4, 2  ;;  %6528 = vmatprep.subr.bf16.mxu0 %v5441_v0  ;;  %v1742_v15 = vrot.slane %v8360_v52, 1  ;;  %v5435_v0 = vld [vmem:[%s8918_s30 + $0x120] sm:$0xff]  }
 0x1ac   :  { %v8377_v39 = vsel %vm1700_vm2, 0.0, %v8368_v11  ;;  %v1469_v30 = vmax.f32 %v1461_v61, 0.0  ;;  %v1448_v51 = vmul.f32 %v8274_v31, %v1432_v10  ;;  %6560 = vmatprep.subr.bf16.mxu1 %v5449_v18  ;;  %v1423_v34 = vadd.f32 %v5829_v6, %v5773_v5 }
 0x1ad   :  { %v1741_v43 = vsel %vm566_vm0, %v1738_v27, %v1740_v21  ;;  %v1768_v26 = vsel %vm1761_vm3, %v1765_v60, %v1767_v53  ;;  %v1754_v7 = vsel %vm1111_vm1, %v1751_v24, %v1753_v55  ;;  %v1743_v35 = vsel %vm566_vm0, %v1740_v21, %v1742_v15 }
 0x1ae   :  { %v1720_v42 = vrot.slane %v1469_v30, 5  ;;  %v1462_v47 = vadd.f32 %v8280_v56, %v1448_v51  ;;  %1970 = vmatprep.mubr.f32.mxu0 %v1741_v43  ;;  %2075 = vmatprep.mubr.f32.mxu1 %v1768_v26  ;;  %v1769_v13 = vrot.slane %v8360_v52, 3  ;;  %v1433_v46 = vadd.f32 %v1423_v34, %v8269_v58 }
 0x1af   :  { %1971 = vmatmul.mubr.f32.gmra.mrb[52].mxu0 %v8321_v9  ;;  %2076 = vmatmul.mubr.f32.gmra.mrb[52].mxu1 %v1754_v7  ;;  %v1755_v44 = vrot.slane %v8360_v52, 2  ;;  %v1818_v29 = vrot.slane %v8377_v39, 1  ;;  %v1844_v16 = vrot.slane %v8377_v39, 3  ;;  %v1831_v24 = vrot.slane %v8377_v39, 2 }
 0x1b0   :  { %v8403_v58 = vsel %vm1700_vm2, %v8368_v11, %v1720_v42  ;;  %v1470_v27 = vmax.f32 %v1462_v47, 0.0  ;;  %1975 = vmatprep.mubr.f32.mxu0 %v1743_v35  ;;  %v1770_v60 = vsel %vm1761_vm3, %v1767_v53, %v1769_v13  ;;  %6530 = vmatpush3.bf16.msra.mxu0 %v5433_v19  ;;  %v1449_v1 = vmul.f32 %v8274_v31, %v1433_v46  ;;  %v5445_v47 = vld [vmem:[%s8918_s30 + $0x170] sm:$0xff]  }
 0x1b1   :  { %2080 = vmatprep.mubr.f32.mxu1 %v1770_v60  ;;  %6562 = vmatpush3.bf16.msra.mxu1 %v5449_v18  ;;  %v1756_v33 = vsel %vm1111_vm1, %v1753_v55, %v1755_v44  ;;  %v1819_v45 = vrot.slane %v8403_v58, 1  ;;  %v1845_v8 = vrot.slane %v8403_v58, 3  ;;  %v1832_v50 = vrot.slane %v8403_v58, 2 }
 0x1b2   :  { %v1722_v40 = vrot.slane %v1470_v27, 5  ;;  %6532 = vmatprep.subr.bf16.mxu0 %v5442_v25  ;;  %6564 = vmatprep.subr.bf16.mxu1 %v5450_v59  ;;  %v8420_v31 = vsel %vm1802_vm5, %v1803_v36, %v1804_v37  ;;  %v8427_v57 = vsel %vm1775_vm6, %v1776_v20, %v1777_v23  ;;  %v1463_v22 = vadd.f32 %v8280_v56, %v1449_v1  ;;  %v5443_v36 = vld [vmem:[%s8918_s30 + $0x160] sm:$0xff]  }
 0x1b3   :  { %1976 = vmatmul.mubr.f32.gmra.mrb[54].mxu0 %v8357_v4  ;;  %2081 = vmatmul.mubr.f32.gmra.mrb[54].mxu1 %v1756_v33  ;;  %v1820_v28 = vsel %vm566_vm0, %v1818_v29, %v1819_v45  ;;  %v1846_v32 = vsel %vm1761_vm3, %v1844_v16, %v1845_v8  ;;  %v1806_v20 = vrot.slane %v8321_v9, 6  ;;  %v1833_v56 = vsel %vm1111_vm1, %v1831_v24, %v1832_v50  ;;  %v5453_v16 = vld [vmem:[%s8918_s30 + $0x1b0] sm:$0xff]  }
 0x1b4   :  { %v8441_v14 = vsel %vm1700_vm2, %v1720_v42, %v1722_v40  ;;  %6534 = vmatpush3.bf16.msra.mxu0 %v5434_v41  ;;  %1980 = vmatprep.mubr.f32.mxu0 %v1820_v28  ;;  %v1792_v3 = vrot.slane %v8321_v9, 5  ;;  %v1808_v2 = vrot.slane %v8357_v4, 6  ;;  %v1471_v12 = vmax.f32 %v1463_v22, 0.0  ;;  %v5437_v33 = vld [vmem:[%s8918_s30 + $0x130] sm:$0xff]  }
 0x1b5   :  { %6566 = vmatpush3.bf16.msra.mxu1 %v5450_v59  ;;  %2085 = vmatprep.mubr.f32.mxu1 %v1846_v32  ;;  %v1821_v54 = vrot.slane %v8441_v14, 1  ;;  %v1847_v38 = vrot.slane %v8441_v14, 3  ;;  %v1834_v18 = vrot.slane %v8441_v14, 2  ;;  %v8455_v61 = vsel %vm1802_vm5, %v1804_v37, %v1806_v20 }
 0x1b6   :  { %6536 = vmatprep.subr.bf16.mxu0 %v5443_v36  ;;  %6568 = vmatprep.subr.bf16.mxu1 %v5451_v63  ;;  %v8460_v10 = vsel %vm1700_vm2, %v1790_v48, %v1792_v3  ;;  %v8463_v5 = vsel %vm1802_vm5, %v1806_v20, %v1808_v2  ;;  %v1779_v6 = vrot.slane %v8321_v9, 4  ;;  %v1724_v21 = vrot.slane %v1471_v12, 5  ;;  %v5444_v48 = vld [vmem:[%s8918_s30 + $0x168] sm:$0xff]  }
 0x1b7   :  { %4511 = vmatmul.mubr.msk.f32.gmra.mrb[56].mxu0 %vm8309_vm4, %v8368_v11  ;;  %2086 = vmatmul.mubr.f32.gmra.mrb[56].mxu1 %v1833_v56  ;;  %v1822_v53 = vsel %vm566_vm0, %v1819_v45, %v1821_v54  ;;  %v1848_v37 = vsel %vm1761_vm3, %v1845_v8, %v1847_v38  ;;  %v1835_v55 = vsel %vm1111_vm1, %v1832_v50, %v1834_v18  ;;  %v5452_v9 = vld [vmem:[%s8918_s30 + $0x1a8] sm:$0xff]   ;;  %v1810_v11 = vrot.slane %v8360_v52, 6  ;;  %v5446_v50 = vld [vmem:[%s8918_s30 + $0x178] sm:$0xff]  }
 0x1b8   :  { %6538 = vmatpush3.bf16.msra.mxu0 %v5435_v0  ;;  %1985 = vmatprep.mubr.f32.mxu0 %v1822_v53  ;;  %v8481_v62 = vsel %vm1775_vm6, %v1777_v23, %v1779_v6  ;;  %v1794_v30 = vrot.slane %v8357_v4, 5  ;;  %v1883_v51 = vrot.slane %v8377_v39, 6  ;;  %v8487_v15 = vsel %vm1700_vm2, %v1722_v40, %v1724_v21 }
 0x1b9   :  { %v8490_v34 = vsel %vm1700_vm2, %v1724_v21, 0.0  ;;  %6570 = vmatpush3.bf16.msra.mxu1 %v5451_v63  ;;  %2090 = vmatprep.mubr.f32.mxu1 %v1848_v37  ;;  %v1884_v23 = vrot.slane %v8403_v58, 6  ;;  %v1781_v43 = vrot.slane %v8357_v4, 4  ;;  %v1823_v26 = vrot.slane %v8487_v15, 1 }
 0x1ba   :  { %6540 = vmatprep.subr.bf16.mxu0 %v5444_v48  ;;  %6572 = vmatprep.subr.bf16.mxu1 %v5452_v9  ;;  %v1849_v7 = vrot.slane %v8487_v15, 3  ;;  %v1836_v19 = vrot.slane %v8487_v15, 2  ;;  %v1825_v42 = vrot.slane %v8490_v34, 1  ;;  %v1851_v35 = vrot.slane %v8490_v34, 3 }
 0x1bb   :  { %1986 = vmatmul.mubr.f32.gmra.mrb[58].mxu0 %v8403_v58  ;;  %2091 = vmatmul.mubr.f32.gmra.mrb[58].mxu1 %v1835_v55  ;;  %v1838_v4 = vrot.slane %v8490_v34, 2  ;;  %v8508_v13 = vsel %vm1802_vm5, %v1808_v2, %v1810_v11  ;;  %v8511_v46 = vsel %vm1700_vm2, %v1792_v3, %v1794_v30  ;;  %v1824_v44 = vsel %vm566_vm0, %v1821_v54, %v1823_v26  ;;  %v5454_v3 = vld [vmem:[%s8918_s30 + $0x1b8] sm:$0xff]  }
 0x1bc   :  { %6542 = vmatpush3.bf16.msra.mxu0 %v5436_v17  ;;  %v1850_v25 = vsel %vm1761_vm3, %v1847_v38, %v1849_v7  ;;  %v1837_v59 = vsel %vm1111_vm1, %v1834_v18, %v1836_v19  ;;  %v1826_v29 = vsel %vm566_vm0, %v1823_v26, %v1825_v42  ;;  %1990 = vmatprep.mubr.f32.mxu0 %v1824_v44  ;;  %v1886_v1 = vrot.slane %v8441_v14, 6  ;;  %v5467_v17 = vld [vmem:[#allocation5 + $0x68] sm:$0xff]  }
 0x1bd   :  { %6574 = vmatpush3.bf16.msra.mxu1 %v5452_v9  ;;  %v1852_v27 = vsel %vm1761_vm3, %v1849_v7, %v1851_v35  ;;  %v1839_v60 = vsel %vm1111_vm1, %v1836_v19, %v1838_v4  ;;  %v1885_v24 = vsel %vm1802_vm5, %v1883_v51, %v1884_v23  ;;  %2095 = vmatprep.mubr.f32.mxu1 %v1850_v25  ;;  %v1796_v45 = vrot.slane %v8360_v52, 5  ;;  %v5457_v51 = vld [vmem:[#allocation5 + $0x18] sm:$0xff]  }
 0x1be   :  { %6544 = vmatprep.subr.bf16.mxu0 %v5445_v47  ;;  %v1782_v41 = vsel %vm1775_vm6, %v1779_v6, %v1781_v43  ;;  %v1888_v8 = vrot.slane %v8487_v15, 6  ;;  %v1783_v40 = vrot.slane %v8360_v52, 4  ;;  %v1887_v22 = vsel %vm1802_vm5, %v1884_v23, %v1886_v1  ;;  %6576 = vmatprep.subr.bf16.mxu1 %v5453_v16  ;;  %v5459_v23 = vld [vmem:[#allocation5 + $0x28] sm:$0xff]  }
 0x1bf   :  { %1991 = vmatmul.mubr.f32.gmra.mrb[60].mxu0 %v8441_v14  ;;  %2096 = vmatmul.mubr.f32.gmra.mrb[60].mxu1 %v1837_v59  ;;  %v1890_v28 = vrot.slane %v8490_v34, 6  ;;  %v1870_v32 = vrot.slane %v8377_v39, 5  ;;  %v1871_v36 = vrot.slane %v8403_v58, 5  ;;  %v1797_v63 = vsel %vm1700_vm2, %v1794_v30, %v1796_v45  ;;  %v5465_v30 = vld [vmem:[#allocation5 + $0x58] sm:$0xff]  }
 0x1c0   :  { %1995 = vmatprep.mubr.f32.mxu0 %v1826_v29  ;;  %v1889_v52 = vsel %vm1802_vm5, %v1886_v1, %v1888_v8  ;;  %v1784_v20 = vsel %vm1775_vm6, %v1781_v43, %v1783_v40  ;;  %v1857_v56 = vrot.slane %v8377_v39, 4  ;;  %2100 = vmatprep.mubr.f32.mxu1 %v1852_v27  ;;  %v1858_v0 = vrot.slane %v8403_v58, 4  ;;  %v5438_v39 = vld [vmem:[%s8918_s30 + $0x138] sm:$0xff]  }
 0x1c1   :  { %6546 = vmatpush3.bf16.msra.mxu0 %v5437_v33  ;;  %v1891_v2 = vsel %vm1802_vm5, %v1888_v8, %v1890_v28  ;;  %v1872_v12 = vsel %vm1700_vm2, %v1870_v32, %v1871_v36  ;;  %v1873_v54 = vrot.slane %v8441_v14, 5  ;;  %6578 = vmatpush3.bf16.msra.mxu1 %v5453_v16  ;;  %v1860_v38 = vrot.slane %v8441_v14, 4 }
 0x1c2   :  { %6548 = vmatprep.subr.bf16.mxu0 %v5446_v50  ;;  %v1875_v18 = vrot.slane %v8487_v15, 5  ;;  %v1862_v6 = vrot.slane %v8487_v15, 4  ;;  %v1877_v21 = vrot.slane %v8490_v34, 5  ;;  %v1859_v58 = vsel %vm1775_vm6, %v1857_v56, %v1858_v0  ;;  %6580 = vmatprep.subr.bf16.mxu1 %v5454_v3 }
 0x1c3   :  { %1996 = vmatmul.mubr.f32.gmra.mrb[62].mxu0 %v8487_v15  ;;  %2101 = vmatmul.mubr.f32.gmra.mrb[62].mxu1 %v1839_v60  ;;  %v1874_v53 = vsel %vm1700_vm2, %v1871_v36, %v1873_v54  ;;  %v1864_v37 = vrot.slane %v8490_v34, 4  ;;  %v1861_v14 = vsel %vm1775_vm6, %v1858_v0, %v1860_v38  ;;  %v5466_v15 = vld [vmem:[#allocation5 + $0x60] sm:$0xff]  }
 0x1c4   :  { %2170 = vmatprep.mubr.f32.mxu0 %v8354_v49  ;;  %v1876_v55 = vsel %vm1700_vm2, %v1873_v54, %v1875_v18  ;;  %v1863_v48 = vsel %vm1775_vm6, %v1860_v38, %v1862_v6  ;;  %6180 = vmatprep.mubr.f32.mxu1 %v8420_v31  ;;  %v1878_v9 = vsel %vm1700_vm2, %v1875_v18, %v1877_v21  ;;  %v2463_v49 = vld [vmem:[%s8854_s16] sm:$0xff] }
 0x1c5   :  { %6550 = vmatpush3.bf16.msra.mxu0 %v5438_v39  ;;  %v1865_v11 = vsel %vm1775_vm6, %v1862_v6, %v1864_v37  ;;  %6582 = vmatpush3.bf16.msra.mxu1 %v5454_v3  ;;  %v5462_v31 = vld [vmem:[#allocation5 + $0x40] sm:$0xff]  }
 0x1c6   :  { %6600 = vmatprep.subr.bf16.mxu0 %v5462_v31  ;;  %v5458_v34 = vld [vmem:[#allocation5 + $0x20] sm:$0xff]  }
 0x1c8   :  { %2171 = vmatmul.mubr.f32.vlgmr.msra.gmra.mrb[64].mxu0 %v8427_v57  ;;  %6181 = vmatmul.mubr.f32.vlgmr.msra.gmra.mrb[64].mxu1 %v8455_v61  ;;  %v5146_v57 = vld [vmem:[#allocation5] sm:$0xff]   ;;  %v5463_v61 = vld [vmem:[#allocation5 + $0x48] sm:$0xff]  }
 0x1c9   :  { %2175 = vmatprep.mubr.f32.mxu0 %v8460_v10  ;;  %6183 = vmatprep.mubr.f32.mxu1 %v8463_v5  ;;  %v5455_v10 = vld [vmem:[#allocation5 + $0x8] sm:$0xff]   ;;  %v5464_v5 = vld [vmem:[#allocation5 + $0x50] sm:$0xff]  }
 0x1ca   :  { %6602 = vmatpush3.bf16.msra.mxu0 %v5146_v57 }
 0x1cb   :  { %6604 = vmatprep.subr.bf16.mxu0 %v5463_v61 }
 0x1cc   :  { %2176 = vmatmul.mubr.f32.gmra.mrb[66].mxu0 %v8481_v62  ;;  %6184 = vmatmul.mubr.f32.gmra.mrb[66].mxu1 %v8508_v13  ;;  %v5456_v62 = vld [vmem:[#allocation5 + $0x10] sm:$0xff]  }
 0x1cd   :  { %2180 = vmatprep.mubr.f32.mxu0 %v8511_v46  ;;  %6186 = vmatprep.mubr.f32.mxu1 %v1885_v24 }
 0x1ce   :  { %6606 = vmatpush3.bf16.msra.mxu0 %v5455_v10 }
 0x1cf   :  { %6608 = vmatprep.subr.bf16.mxu0 %v5464_v5 }
 0x1d0   :  { %2181 = vmatmul.mubr.f32.gmra.mrb[68].mxu0 %v1782_v41  ;;  %6187 = vmatmul.mubr.f32.gmra.mrb[68].mxu1 %v1887_v22 }
 0x1d1   :  { %2185 = vmatprep.mubr.f32.mxu0 %v1797_v63  ;;  %6189 = vmatprep.mubr.f32.mxu1 %v1889_v52 }
 0x1d2   :  { %6610 = vmatpush3.bf16.msra.mxu0 %v5456_v62 }
 0x1d3   :  { %6612 = vmatprep.subr.bf16.mxu0 %v5465_v30 }
 0x1d4   :  { %2186 = vmatmul.mubr.f32.gmra.mrb[70].mxu0 %v1784_v20  ;;  %6190 = vmatmul.mubr.f32.gmra.mrb[70].mxu1 %v1891_v2 }
 0x1d5   :  { %2190 = vmatprep.mubr.f32.mxu0 %v1872_v12  ;;  %6208 = vmatprep.mubr.msk.f32.mxu1 %vm2467_vm7, %v2463_v49 }
 0x1d6   :  { %6614 = vmatpush3.bf16.msra.mxu0 %v5457_v51 }
 0x1d7   :  { %6616 = vmatprep.subr.bf16.mxu0 %v5466_v15 }
 0x1d8   :  { %2191 = vmatmul.mubr.f32.gmra.mrb[72].mxu0 %v1859_v58 }
 0x1d9   :  { %2195 = vmatprep.mubr.f32.mxu0 %v1874_v53 }
 0x1da   :  { %6618 = vmatpush3.bf16.msra.mxu0 %v5458_v34 }
 0x1db   :  { %6620 = vmatprep.subr.bf16.mxu0 %v5467_v17 }
 0x1dc   :  { %2196 = vmatmul.mubr.f32.gmra.mrb[74].mxu0 %v1861_v14 }
 0x1dd   :  { %2200 = vmatprep.mubr.f32.mxu0 %v1876_v55 }
 0x1de   :  { %6622 = vmatpush3.bf16.msra.mxu0 %v5459_v23  ;;  %v8592_v23 = vld [vmem:[%s8843_s5] ss:$0 sm:$0xff] }
 0x1e0   :  { %2201 = vmatmul.mubr.f32.gmra.mrb[76].mxu0 %v1863_v48 }
 0x1e1   :  { %2205 = vmatprep.mubr.f32.mxu0 %v1878_v9 }
 0x1e4   :  { %2206 = vmatmul.mubr.f32.gmra.mrb[78].mxu0 %v1865_v11 }
 0x278   :  { %v5862_v43 = vpop.f32.mrb[48].mxu0  ;;  %v5918_v26 = vpop.f32.mrb[48].mxu1 }
 0x279   :  { %v5863_v7 = vpop.f32.mrb[49].mxu0  ;;  %v5919_v19 = vpop.f32.mrb[49].mxu1 }
 0x27a   :  { %v5864_v42 = vadd.f32 %v5863_v7, %v5862_v43  ;;  %v5920_v47 = vadd.f32 %v5919_v19, %v5918_v26 }
 0x27c   :  { %v2068_v35 = vadd.f32 %v5920_v47, %v5864_v42  ;;  %v5865_v4 = vpop.f32.mrb[50].mxu0  ;;  %v5921_v13 = vpop.f32.mrb[50].mxu1  ;;  %v8597_v47 = vld [vmem:[%s8844_s6] ss:$0 sm:$0xff] }
 0x27d   :  { %v5866_v46 = vpop.f32.mrb[51].mxu0  ;;  %v5922_v44 = vpop.f32.mrb[51].mxu1 }
 0x27e   :  { %v5867_v25 = vadd.f32 %v5866_v46, %v5865_v4  ;;  %v5923_v59 = vadd.f32 %v5922_v44, %v5921_v13 }
 0x280   :  { %v2073_v29 = vadd.f32 %v5923_v59, %v5867_v25 }
 0x282   :  { %v5868_v16 = vpop.f32.mrb[52].mxu0  ;;  %v5924_v27 = vpop.f32.mrb[52].mxu1 }
 0x283   :  { %v5869_v60 = vpop.f32.mrb[53].mxu0  ;;  %v5925_v24 = vpop.f32.mrb[53].mxu1 }
 0x284   :  { %v5870_v1 = vadd.f32 %v5869_v60, %v5868_v16  ;;  %v5926_v33 = vadd.f32 %v5925_v24, %v5924_v27 }
 0x286   :  { %v2078_v41 = vadd.f32 %v5926_v33, %v5870_v1  ;;  %v5871_v45 = vpop.f32.mrb[54].mxu0  ;;  %v5927_v8 = vpop.f32.mrb[54].mxu1 }
 0x287   :  { %v5872_v40 = vpop.f32.mrb[55].mxu0  ;;  %v5928_v50 = vpop.f32.mrb[55].mxu1 }
 0x288   :  { %v5873_v22 = vadd.f32 %v5872_v40, %v5871_v45  ;;  %v5929_v28 = vadd.f32 %v5928_v50, %v5927_v8 }
 0x28a   :  { %v8579_v32 = vadd.f32 %v5929_v28, %v5873_v22  ;;  %v5874_v36 = vpop.f32.mrb[56].mxu0  ;;  %v5930_v63 = vpop.f32.mrb[56].mxu1 }
 0x28b   :  { %v5875_v52 = vpop.f32.mrb[57].mxu0  ;;  %v5931_v20 = vpop.f32.mrb[57].mxu1 }
 0x28c   :  { %v5876_v56 = vadd.f32 %v5875_v52, %v5874_v36  ;;  %v5932_v3 = vadd.f32 %v5931_v20, %v5930_v63 }
 0x28e   :  { %v8581_v2 = vadd.f32 %v5932_v3, %v5876_v56  ;;  %v5877_v12 = vpop.f32.mrb[58].mxu0  ;;  %v5933_v0 = vpop.f32.mrb[58].mxu1 }
 0x28f   :  { %v5878_v54 = vpop.f32.mrb[59].mxu0  ;;  %v5934_v39 = vpop.f32.mrb[59].mxu1 }
 0x290   :  { %v5879_v38 = vadd.f32 %v5878_v54, %v5877_v12  ;;  %v5935_v18 = vadd.f32 %v5934_v39, %v5933_v0 }
 0x292   :  { %v8583_v6 = vadd.f32 %v5935_v18, %v5879_v38  ;;  %v5880_v21 = vpop.f32.mrb[60].mxu0  ;;  %v5936_v58 = vpop.f32.mrb[60].mxu1 }
 0x293   :  { %v5881_v53 = vpop.f32.mrb[61].mxu0  ;;  %v5937_v37 = vpop.f32.mrb[61].mxu1 }
 0x294   :  { %v5882_v14 = vadd.f32 %v5881_v53, %v5880_v21  ;;  %v5938_v55 = vadd.f32 %v5937_v37, %v5936_v58 }
 0x296   :  { %v8585_v48 = vadd.f32 %v5938_v55, %v5882_v14  ;;  %v5883_v9 = vpop.f32.mrb[62].mxu0  ;;  %v5939_v11 = vpop.f32.mrb[62].mxu1 }
 0x297   :  { %v5884_v49 = vpop.f32.mrb[63].mxu0  ;;  %v5940_v31 = vpop.f32.mrb[63].mxu1 }
 0x298   :  { %v5885_v57 = vadd.f32 %v5884_v49, %v5883_v9  ;;  %v5941_v61 = vadd.f32 %v5940_v31, %v5939_v11 }
 0x29a   :  { %v8587_v10 = vadd.f32 %v5941_v61, %v5885_v57 }
 0x29b   :  { %v5974_v5 = vpop.f32.mrb[64].mxu0  ;;  %v6182_v62 = vpop.f32.mrb[64].mxu1 }
 0x29c   :  { %v5975_v30 = vpop.f32.mrb[65].mxu0  ;;  %v2277_v15 = vpop.f32.mrb[65].mxu1 }
 0x29d   :  { %v5976_v51 = vadd.f32 %v5975_v30, %v5974_v5 }
 0x29f   :  { %v2173_v34 = vadd.f32 %v5976_v51, %v2068_v35  ;;  %v5977_v17 = vpop.f32.mrb[66].mxu0  ;;  %v6185_v43 = vpop.f32.mrb[66].mxu1 }
 0x2a0   :  { %v5978_v26 = vpop.f32.mrb[67].mxu0  ;;  %v2287_v42 = vpop.f32.mrb[67].mxu1 }
 0x2a1   :  { %v2278_v7 = vadd.f32 %v2277_v15, %v2173_v34  ;;  %v5979_v19 = vadd.f32 %v5978_v26, %v5977_v17 }
 0x2a3   :  { %v2324_v4 = vmul.f32 %v8592_v23, %v2278_v7  ;;  %v2178_v13 = vadd.f32 %v5979_v19, %v2073_v29  ;;  %v5980_v35 = vpop.f32.mrb[68].mxu0  ;;  %v6188_v46 = vpop.f32.mrb[68].mxu1 }
 0x2a4   :  { %v5981_v44 = vpop.f32.mrb[69].mxu0  ;;  %v2297_v27 = vpop.f32.mrb[69].mxu1 }
 0x2a5   :  { %v2338_v25 = vadd.f32 %v8597_v47, %v2324_v4  ;;  %v2283_v59 = vadd.f32 %v6182_v62, %v2178_v13  ;;  %v5982_v16 = vadd.f32 %v5981_v44, %v5980_v35 }
 0x2a7   :  { %v2346_v60 = vmax.f32 %v2338_v25, 0.0  ;;  %v2325_v24 = vmul.f32 %v8592_v23, %v2283_v59  ;;  %v2183_v1 = vadd.f32 %v5982_v16, %v2078_v41  ;;  %v5983_v33 = vpop.f32.mrb[70].mxu0  ;;  %v8602_v45 = vpop.f32.mrb[70].mxu1 }
 0x2a8   :  { %v5984_v8 = vpop.f32.mrb[71].mxu0  ;;  %v2307_v28 = vpop.f32.mrb[71].mxu1 }
 0x2a9   :  { %v2359_v40 = vrot.slane %v2346_v60, 7  ;;  %v2339_v29 = vadd.f32 %v8597_v47, %v2325_v24  ;;  %v2288_v50 = vadd.f32 %v2287_v42, %v2183_v1  ;;  %v5985_v22 = vadd.f32 %v5984_v8, %v5983_v33 }
 0x2ab   :  { %v2347_v36 = vmax.f32 %v2339_v29, 0.0  ;;  %v2326_v63 = vmul.f32 %v8592_v23, %v2288_v50  ;;  %v2188_v52 = vadd.f32 %v5985_v22, %v8579_v32  ;;  %v5986_v20 = vpop.f32.mrb[72].mxu0  ;;  %v2371_v56 = vsel %vm2358_vm8, 0.0, %v2359_v40 }
 0x2ac   :  { %v5987_v41 = vpop.f32.mrb[73].mxu0  ;;  %v2375_v53 = vrot.slane %v2371_v56, 1  ;;  %v2392_v37 = vrot.slane %v2371_v56, 2 }
 0x2ad   :  { %v2360_v3 = vrot.slane %v2347_v36, 7  ;;  %v2340_v12 = vadd.f32 %v8597_v47, %v2326_v63  ;;  %v2293_v0 = vadd.f32 %v6185_v43, %v2188_v52  ;;  %v5988_v54 = vadd.f32 %v5987_v41, %v5986_v20 }
 0x2af   :  { %v2348_v39 = vmax.f32 %v2340_v12, 0.0  ;;  %v2327_v38 = vmul.f32 %v8592_v23, %v2293_v0  ;;  %v2193_v18 = vadd.f32 %v5988_v54, %v8581_v2  ;;  %v5989_v21 = vpop.f32.mrb[74].mxu0  ;;  %v2361_v58 = vsel %vm2358_vm8, %v2359_v40, %v2360_v3 }
 0x2b0   :  { %v5990_v32 = vpop.f32.mrb[75].mxu0  ;;  %v2376_v14 = vrot.slane %v2361_v58, 1  ;;  %v2393_v55 = vrot.slane %v2361_v58, 2 }
 0x2b1   :  { %v2362_v9 = vrot.slane %v2348_v39, 7  ;;  %v2341_v11 = vadd.f32 %v8597_v47, %v2327_v38  ;;  %v2298_v49 = vadd.f32 %v2297_v27, %v2193_v18  ;;  %v5991_v31 = vadd.f32 %v5990_v32, %v5989_v21 }
 0x2b2   :  { %v2377_v57 = vsel %vm566_vm0, %v2375_v53, %v2376_v14  ;;  %v2394_v61 = vsel %vm1111_vm1, %v2392_v37, %v2393_v55 }
 0x2b3   :  { %v2349_v5 = vmax.f32 %v2341_v11, 0.0  ;;  %v2328_v2 = vmul.f32 %v8592_v23, %v2298_v49  ;;  %v2198_v62 = vadd.f32 %v5991_v31, %v8583_v6  ;;  %v5992_v30 = vpop.f32.mrb[76].mxu0  ;;  %v2363_v51 = vsel %vm2358_vm8, %v2360_v3, %v2362_v9 }
 0x2b4   :  { %v5993_v15 = vpop.f32.mrb[77].mxu0  ;;  %v2378_v34 = vrot.slane %v2363_v51, 1  ;;  %v2388_v17 = vmax.f32 %v2371_v56, %v2377_v57  ;;  %v2395_v43 = vrot.slane %v2363_v51, 2 }
 0x2b5   :  { %v2364_v26 = vrot.slane %v2349_v5, 7  ;;  %v2342_v7 = vadd.f32 %v8597_v47, %v2328_v2  ;;  %v2303_v19 = vadd.f32 %v6188_v46, %v2198_v62  ;;  %v5994_v42 = vadd.f32 %v5993_v15, %v5992_v30 }
 0x2b6   :  { %v2379_v4 = vsel %vm566_vm0, %v2376_v14, %v2378_v34  ;;  %v2396_v13 = vsel %vm1111_vm1, %v2393_v55, %v2395_v43  ;;  %v2405_v35 = vmax.f32 %v2388_v17, %v2394_v61 }
 0x2b7   :  { %v2372_v44 = vsel %vm2358_vm8, %v2364_v26, 0.0  ;;  %v2350_v6 = vmax.f32 %v2342_v7, 0.0  ;;  %v2329_v25 = vmul.f32 %v8592_v23, %v2303_v19  ;;  %v2203_v59 = vadd.f32 %v5994_v42, %v8585_v48  ;;  %v5995_v16 = vpop.f32.mrb[78].mxu0 }
 0x2b8   :  { %v2382_v27 = vrot.slane %v2372_v44, 1  ;;  %v5996_v60 = vpop.f32.mrb[79].mxu0  ;;  %v2389_v24 = vmax.f32 %v2361_v58, %v2379_v4  ;;  %v2365_v1 = vsel %vm2358_vm8, %v2362_v9, %v2364_v26  ;;  %v2399_v36 = vrot.slane %v2372_v44, 2 }
 0x2b9   :  { %v2413_v46 = vrot.slane %v2350_v6, 7  ;;  %v2343_v33 = vadd.f32 %v8597_v47, %v2329_v25  ;;  %v2308_v8 = vadd.f32 %v2307_v28, %v2203_v59  ;;  %v5997_v40 = vadd.f32 %v5996_v60, %v5995_v16 }
 0x2ba   :  { %v2406_v29 = vmax.f32 %v2389_v24, %v2396_v13  ;;  %v2380_v50 = vrot.slane %v2365_v1, 1  ;;  %v2397_v22 = vrot.slane %v2365_v1, 2 }
 0x2bb   :  { %v2351_v63 = vmax.f32 %v2343_v33, 0.0  ;;  %v2330_v52 = vmul.f32 %v8592_v23, %v2308_v8  ;;  %v2208_v48 = vadd.f32 %v5997_v40, %v8587_v10  ;;  %v2425_v20 = vsel %vm2358_vm8, 0.0, %v2413_v46  ;;  %v2466_v33 = vld [vmem:[%s8854_s16 + $0x18] sm:$0xff]  ;;  %v5468_v8 = vld [vmem:[#allocation5 + $0x70] sm:$0xff]  }
 0x2bc   :  { %v6583_v56 = vpack.c.bf16 %v2406_v29, %v2405_v35  ;;  %v2381_v41 = vsel %vm566_vm0, %v2378_v34, %v2380_v50  ;;  %v2383_v3 = vsel %vm566_vm0, %v2380_v50, %v2382_v27  ;;  %v2398_v12 = vsel %vm1111_vm1, %v2395_v43, %v2397_v22  ;;  %6624 = vmatprep.subr.bf16.mxu0 %v5468_v8  ;;  %v5460_v40 = vld [vmem:[#allocation5 + $0x30] sm:$0xff]   ;;  %v5469_v29 = vld [vmem:[#allocation5 + $0x78] sm:$0xff]  }
 0x2bd   :  { %v2414_v28 = vrot.slane %v2351_v63, 7  ;;  %v2344_v0 = vadd.f32 %v8597_v47, %v2330_v52  ;;  %v2313_v54 = vadd.f32 %v8602_v45, %v2208_v48  ;;  %v2390_v39 = vmax.f32 %v2363_v51, %v2381_v41  ;;  %6626 = vmatpush3.bf16.msra.mxu0 %v5460_v40  ;;  %v5461_v50 = vld [vmem:[#allocation5 + $0x38] sm:$0xff]  }
 0x2be   :  { %6584 = vmatprep.subr.bf16.mxu1 %v6583_v56  ;;  %v2391_v38 = vmax.f32 %v2365_v1, %v2383_v3  ;;  %v2400_v18 = vsel %vm1111_vm1, %v2397_v22, %v2399_v36  ;;  %v2429_v10 = vrot.slane %v2425_v20, 1  ;;  %v2446_v55 = vrot.slane %v2425_v20, 2  ;;  %v2464_v1 = vld [vmem:[%s8854_s16 + $0x8] sm:$0xff]  ;;  %6628 = vmatprep.subr.bf16.mxu0 %v5469_v29  ;;  %v5478_v22 = vld [vmem:[#allocation5 + $0xc0] sm:$0xff]   ;;  %v5473_v29 = vld [vmem:[#allocation5 + $0x98] sm:$0xff]  }
 0x2bf   :  { %v2352_v21 = vmax.f32 %v2344_v0, 0.0  ;;  %v2331_v58 = vmul.f32 %v8592_v23, %v2313_v54  ;;  %6586 = vmatpush3.bf16.msra.mxu1 %v6583_v56  ;;  %v2407_v53 = vmax.f32 %v2390_v39, %v2398_v12  ;;  %v2415_v37 = vsel %vm2358_vm8, %v2413_v46, %v2414_v28  ;;  %v2465_v46 = vld [vmem:[%s8854_s16 + $0x10] sm:$0xff] }
 0x2c0   :  { %v2408_v32 = vmax.f32 %v2391_v38, %v2400_v18  ;;  %v2430_v14 = vrot.slane %v2415_v37, 1  ;;  %v2447_v9 = vrot.slane %v2415_v37, 2 }
 0x2c1   :  { %v2416_v11 = vrot.slane %v2352_v21, 7  ;;  %v2345_v45 = vadd.f32 %v8597_v47, %v2331_v58  ;;  %6630 = vmatpush3.bf16.msra.mxu0 %v5461_v50  ;;  %v5482_v50 = vld [vmem:[#allocation5 + $0xe0] sm:$0xff]  }
 0x2c2   :  { %v6587_v49 = vpack.c.bf16 %v2408_v32, %v2407_v53  ;;  %v2431_v31 = vsel %vm566_vm0, %v2429_v10, %v2430_v14  ;;  %v2448_v57 = vsel %vm1111_vm1, %v2446_v55, %v2447_v9  ;;  %6632 = vmatprep.subr.bf16.mxu0 %v5478_v22  ;;  %v5470_v55 = vld [vmem:[#allocation5 + $0x80] sm:$0xff]  }
 0x2c3   :  { %v2353_v61 = vmax.f32 %v2345_v45, 0.0  ;;  %v2417_v5 = vsel %vm2358_vm8, %v2414_v28, %v2416_v11  ;;  %v2442_v23 = vmax.f32 %v2425_v20, %v2431_v31  ;;  %v5479_v31 = vld [vmem:[#allocation5 + $0xc8] sm:$0xff]   ;;  %v5474_v22 = vld [vmem:[#allocation5 + $0xa0] sm:$0xff]  }
 0x2c4   :  { %6588 = vmatprep.subr.bf16.mxu1 %v6587_v49  ;;  %v2432_v2 = vrot.slane %v2417_v5, 1  ;;  %v2449_v62 = vrot.slane %v2417_v5, 2 }
 0x2c5   :  { %v2418_v30 = vrot.slane %v2353_v61, 7  ;;  %6590 = vmatpush3.bf16.msra.mxu1 %v6587_v49  ;;  %v2459_v51 = vmax.f32 %v2442_v23, %v2448_v57 }
 0x2c6   :  { %v2433_v15 = vsel %vm566_vm0, %v2430_v14, %v2432_v2  ;;  %v2450_v34 = vsel %vm1111_vm1, %v2447_v9, %v2449_v62 }
 0x2c7   :  { %v2426_v47 = vsel %vm2358_vm8, %v2418_v30, 0.0  ;;  %v2443_v17 = vmax.f32 %v2415_v37, %v2433_v15  ;;  %v2419_v43 = vsel %vm2358_vm8, %v2416_v11, %v2418_v30 }
 0x2c8   :  { %v2436_v26 = vrot.slane %v2426_v47, 1  ;;  %v2434_v7 = vrot.slane %v2419_v43, 1  ;;  %v2451_v19 = vrot.slane %v2419_v43, 2  ;;  %v2453_v42 = vrot.slane %v2426_v47, 2  ;;  %v5471_v47 = vld [vmem:[#allocation5 + $0x88] sm:$0xff]  }
 0x2c9   :  { %v2460_v4 = vmax.f32 %v2443_v17, %v2450_v34 }
 0x2ca   :  { %v2435_v13 = vsel %vm566_vm0, %v2432_v2, %v2434_v7  ;;  %v2437_v35 = vsel %vm566_vm0, %v2434_v7, %v2436_v26  ;;  %v2452_v44 = vsel %vm1111_vm1, %v2449_v62, %v2451_v19  ;;  %v2454_v6 = vsel %vm1111_vm1, %v2451_v19, %v2453_v42  ;;  %v5480_v19 = vld [vmem:[#allocation5 + $0xd0] sm:$0xff]  }
 0x2cb   :  { %v6591_v25 = vpack.c.bf16 %v2460_v4, %v2459_v51  ;;  %v2444_v59 = vmax.f32 %v2417_v5, %v2435_v13  ;;  %v2445_v16 = vmax.f32 %v2419_v43, %v2437_v35 }
 0x2cd   :  { %6592 = vmatprep.subr.bf16.mxu1 %v6591_v25  ;;  %v2461_v27 = vmax.f32 %v2444_v59, %v2452_v44  ;;  %v2462_v60 = vmax.f32 %v2445_v16, %v2454_v6 }
 0x2ce   :  { %6594 = vmatpush3.bf16.msra.mxu1 %v6591_v25 }
 0x2cf   :  { %v6595_v24 = vpack.c.bf16 %v2462_v60, %v2461_v27 }
 0x2d1   :  { %6596 = vmatprep.subr.bf16.mxu1 %v6595_v24 }
 0x2d2   :  { %6598 = vmatpush3.bf16.msra.mxu1 %v6595_v24  ;;  %v5472_v24 = vld [vmem:[#allocation5 + $0x90] sm:$0xff]  }
 0x2d5   :  { %6209 = vmatmul.mubr.msk.f32.vlgmr.msra.gmra.mrb[72].mxu1 %vm2467_vm7, %v2464_v1 }
 0x2d6   :  { %6211 = vmatprep.mubr.msk.f32.mxu1 %vm2467_vm7, %v2465_v46 }
 0x2d9   :  { %6212 = vmatmul.mubr.msk.f32.gmra.mrb[74].mxu1 %vm2467_vm7, %v2466_v33  ;;  %v5481_v33 = vld [vmem:[#allocation5 + $0xd8] sm:$0xff]  }
 0x3a8   :  { %v6210_v36 = vpop.f32.mrb[72].mxu1 }
 0x3a9   :  { %v2728_v63 = vrot.slane %v6210_v36, 6  ;;  %v2546_v52 = vpop.f32.mrb[73].mxu1  ;;  %v5483_v36 = vld [vmem:[#allocation5 + $0xe8] sm:$0xff]  }
 0x3aa   :  { %v2727_v48 = vrot.slane %v2546_v52, 6  ;;  %v5484_v52 = vld [vmem:[#allocation5 + $0xf0] sm:$0xff]  }
 0x3ab   :  { %v8662_v20 = vsel %vm1802_vm5, %v2728_v63, 0.0 }
 0x3ac   :  { %v2771_v56 = vrot.slane %v8662_v20, 4  ;;  %v2729_v41 = vsel %vm1802_vm5, %v2727_v48, %v2728_v63  ;;  %v2733_v3 = vsel %vm1802_vm5, 0.0, %v2727_v48  ;;  %v6213_v12 = vpop.f32.mrb[74].mxu1  ;;  %v2750_v28 = vrot.slane %v8662_v20, 1  ;;  %v5475_v63 = vld [vmem:[#allocation5 + $0xa8] sm:$0xff]  }
 0x3ad   :  { %v2754_v0 = vrot.slane %v2733_v3, 2  ;;  %v2738_v54 = vrot.slane %v6213_v12, 6  ;;  %v2747_v39 = vrot.slane %v2733_v3, 1  ;;  %v2748_v38 = vrot.slane %v2729_v41, 1  ;;  %v2556_v18 = vpop.f32.mrb[75].mxu1  ;;  %v5488_v12 = vld [vmem:[#allocation5 + $0x110] sm:$0xff]  }
 0x3ae   :  { %v2737_v10 = vrot.slane %v2556_v18, 6  ;;  %v2761_v58 = vrot.slane %v2733_v3, 3  ;;  %v2762_v53 = vrot.slane %v2729_v41, 3  ;;  %v2755_v37 = vrot.slane %v2729_v41, 2  ;;  %v3146_v18 = vld [vmem:[%s8855_s17] sm:$0xff] }
 0x3af   :  { %v2744_v32 = vsel %vm1802_vm5, %v2738_v54, 0.0  ;;  %v2749_v14 = vsel %vm566_vm0, %v2747_v39, %v2748_v38  ;;  %v2751_v9 = vsel %vm566_vm0, %v2748_v38, %v2750_v28  ;;  %v2764_v11 = vrot.slane %v8662_v20, 3  ;;  %v5489_v28 = vld [vmem:[#allocation5 + $0x118] sm:$0xff]   ;;  %v5492_v39 = vld [vmem:[#allocation5 + $0x130] sm:$0xff]  }
 0x3b0   :  { %2869 = vmatprep.mubr.f32.mxu0 %v2749_v14  ;;  %v2739_v45 = vsel %vm1802_vm5, %v2737_v10, %v2738_v54  ;;  %v2743_v49 = vsel %vm1802_vm5, 0.0, %v2737_v10  ;;  %v2780_v57 = vrot.slane %v2744_v32, 1  ;;  %v2763_v61 = vsel %vm1761_vm3, %v2761_v58, %v2762_v53  ;;  %v5491_v54 = vld [vmem:[#allocation5 + $0x128] sm:$0xff]   ;;  %v5493_v38 = vld [vmem:[#allocation5 + $0x138] sm:$0xff]  }
 0x3b1   :  { %4519 = vmatmul.mubr.msk.f32.vlgmr.msra.gmra.mrb[80].mxu0 %vm8669_vm9, %v2727_v48  ;;  %v2777_v5 = vrot.slane %v2743_v49, 1  ;;  %v2778_v23 = vrot.slane %v2739_v45, 1  ;;  %v2756_v2 = vsel %vm1111_vm1, %v2754_v0, %v2755_v37  ;;  %v2765_v62 = vsel %vm1761_vm3, %v2762_v53, %v2764_v11  ;;  %v5476_v48 = vld [vmem:[#allocation5 + $0xb0] sm:$0xff]   ;;  %v5490_v0 = vld [vmem:[#allocation5 + $0x120] sm:$0xff]  }
 0x3b2   :  { %6634 = vmatpush3.bf16.msra.mxu0 %v5470_v55  ;;  %2874 = vmatprep.mubr.f32.mxu0 %v2751_v9  ;;  %v2757_v30 = vrot.slane %v8662_v20, 2  ;;  %v2791_v51 = vrot.slane %v2743_v49, 3  ;;  %v2792_v15 = vrot.slane %v2739_v45, 3  ;;  %v2784_v34 = vrot.slane %v2743_v49, 2  ;;  %v5485_v20 = vld [vmem:[#allocation5 + $0xf8] sm:$0xff]  }
 0x3b3   :  { %6636 = vmatprep.subr.bf16.mxu0 %v5479_v31  ;;  %v2779_v17 = vsel %vm566_vm0, %v2777_v5, %v2778_v23  ;;  %v2781_v43 = vsel %vm566_vm0, %v2778_v23, %v2780_v57  ;;  %v2785_v26 = vrot.slane %v2739_v45, 2  ;;  %v2794_v7 = vrot.slane %v2744_v32, 3 }
 0x3b4   :  { %v2758_v42 = vsel %vm1111_vm1, %v2755_v37, %v2757_v30  ;;  %v2793_v4 = vsel %vm1761_vm3, %v2791_v51, %v2792_v15  ;;  %v2787_v13 = vrot.slane %v2744_v32, 2  ;;  %v2768_v35 = vrot.slane %v2733_v3, 4  ;;  %v5487_v3 = vld [vmem:[#allocation5 + $0x108] sm:$0xff]  }
 0x3b5   :  { %2875 = vmatmul.mubr.f32.gmra.mrb[82].mxu0 %v2729_v41  ;;  %v2786_v44 = vsel %vm1111_vm1, %v2784_v34, %v2785_v26  ;;  %v2795_v6 = vsel %vm1761_vm3, %v2792_v15, %v2794_v7  ;;  %v2769_v25 = vrot.slane %v2729_v41, 4  ;;  %v2798_v59 = vrot.slane %v2743_v49, 4  ;;  %v5486_v41 = vld [vmem:[#allocation5 + $0x100] sm:$0xff]  }
 0x3b6   :  { %6638 = vmatpush3.bf16.msra.mxu0 %v5471_v47  ;;  %2879 = vmatprep.mubr.f32.mxu0 %v2779_v17  ;;  %v2788_v16 = vsel %vm1111_vm1, %v2785_v26, %v2787_v13  ;;  %v2799_v27 = vrot.slane %v2739_v45, 4  ;;  %v2801_v60 = vrot.slane %v2744_v32, 4 }
 0x3b7   :  { %6640 = vmatprep.subr.bf16.mxu0 %v5480_v19  ;;  %v2770_v1 = vsel %vm1775_vm6, %v2768_v35, %v2769_v25  ;;  %v2772_v46 = vsel %vm1775_vm6, %v2769_v25, %v2771_v56  ;;  %v5477_v56 = vld [vmem:[#allocation5 + $0xb8] sm:$0xff]   ;;  %v4523_v35 = vld [vmem:[%s8847_s9] ss:$0 sm:$0xff] }
 0x3b8   :  { %v2800_v8 = vsel %vm1775_vm6, %v2798_v59, %v2799_v27  ;;  %v2802_v40 = vsel %vm1775_vm6, %v2799_v27, %v2801_v60 }
 0x3b9   :  { %4521 = vmatmul.mubr.msk.f32.gmra.mrb[84].mxu0 %vm8669_vm9, %v2737_v10 }
 0x3ba   :  { %6642 = vmatpush3.bf16.msra.mxu0 %v5472_v24  ;;  %2884 = vmatprep.mubr.f32.mxu0 %v2781_v43 }
 0x3bb   :  { %6644 = vmatprep.subr.bf16.mxu0 %v5481_v33 }
 0x3bd   :  { %2885 = vmatmul.mubr.f32.gmra.mrb[86].mxu0 %v2739_v45 }
 0x3be   :  { %6646 = vmatpush3.bf16.msra.mxu0 %v5473_v29  ;;  %2954 = vmatprep.mubr.f32.mxu0 %v2763_v61 }
 0x3bf   :  { %6648 = vmatprep.subr.bf16.mxu0 %v5482_v50 }
 0x3c2   :  { %6650 = vmatpush3.bf16.msra.mxu0 %v5474_v22 }
 0x3c3   :  { %6652 = vmatprep.subr.bf16.mxu0 %v5483_v36 }
 0x3c6   :  { %6654 = vmatpush3.bf16.msra.mxu0 %v5475_v63 }
 0x3c7   :  { %6656 = vmatprep.subr.bf16.mxu0 %v5484_v52 }
 0x3ca   :  { %6658 = vmatpush3.bf16.msra.mxu0 %v5476_v48 }
 0x3cb   :  { %6660 = vmatprep.subr.bf16.mxu0 %v5485_v20 }
 0x3ce   :  { %6662 = vmatpush3.bf16.msra.mxu0 %v5477_v56 }
 0x3cf   :  { %6664 = vmatprep.subr.bf16.mxu0 %v5486_v41 }
 0x3d1   :  { %2955 = vmatmul.mubr.f32.vlgmr.msra.gmra.mrb[88].mxu0 %v2756_v2 }
 0x3d2   :  { %2959 = vmatprep.mubr.f32.mxu0 %v2765_v62  ;;  %6666 = vmatpush3.bf16.msra.mxu0 %v5486_v41 }
 0x3d3   :  { %6668 = vmatprep.subr.bf16.mxu0 %v5487_v3 }
 0x3d5   :  { %2960 = vmatmul.mubr.f32.gmra.mrb[90].mxu0 %v2758_v42  ;;  %v4522_v42 = vld [vmem:[%s8846_s8] ss:$0 sm:$0xff] }
 0x3d6   :  { %2964 = vmatprep.mubr.f32.mxu0 %v2793_v4  ;;  %6670 = vmatpush3.bf16.msra.mxu0 %v5487_v3 }
 0x3d7   :  { %6672 = vmatprep.subr.bf16.mxu0 %v5488_v12 }
 0x3d9   :  { %2965 = vmatmul.mubr.f32.gmra.mrb[92].mxu0 %v2786_v44 }
 0x3da   :  { %2969 = vmatprep.mubr.f32.mxu0 %v2795_v6  ;;  %6674 = vmatpush3.bf16.msra.mxu0 %v5488_v12 }
 0x3db   :  { %6676 = vmatprep.subr.bf16.mxu0 %v5489_v28 }
 0x3dd   :  { %2970 = vmatmul.mubr.f32.gmra.mrb[94].mxu0 %v2788_v16 }
 0x3de   :  { %6678 = vmatpush3.bf16.msra.mxu0 %v5489_v28  ;;  %6246 = vmatprep.mubr.f32.mxu0 %v2770_v1 }
 0x3df   :  { %6680 = vmatprep.subr.bf16.mxu0 %v5490_v0 }
 0x3e2   :  { %6682 = vmatpush3.bf16.msra.mxu0 %v5490_v0 }
 0x3e3   :  { %6684 = vmatprep.subr.bf16.mxu0 %v5491_v54 }
 0x3e6   :  { %6686 = vmatpush3.bf16.msra.mxu0 %v5491_v54 }
 0x3e7   :  { %6688 = vmatprep.subr.bf16.mxu0 %v5492_v39 }
 0x3ea   :  { %6690 = vmatpush3.bf16.msra.mxu0 %v5492_v39 }
 0x3eb   :  { %6692 = vmatprep.subr.bf16.mxu0 %v5493_v38 }
 0x3ee   :  { %6694 = vmatpush3.bf16.msra.mxu0 %v5493_v38 }
 0x3f1   :  { %6247 = vmatmul.mubr.f32.vlgmr.msra.gmra.mrb[96].mxu0 %v2772_v46 }
 0x3f2   :  { %6249 = vmatprep.mubr.f32.mxu0 %v2800_v8 }
 0x3f5   :  { %6250 = vmatmul.mubr.f32.gmra.mrb[98].mxu0 %v2802_v40 }
 0x3f6   :  { %6260 = vmatprep.mubr.msk.f32.mxu0 %vm3148_vm10, %v3146_v18 }
 0x484   :  { %v6066_v10 = vpop.f32.mrb[80].mxu0 }
 0x485   :  { %v6067_v21 = vpop.f32.mrb[81].mxu0 }
 0x486   :  { %v6068_v58 = vadd.f32 %v6067_v21, %v6066_v10 }
 0x488   :  { %v6069_v53 = vpop.f32.mrb[82].mxu0 }
 0x489   :  { %v6070_v37 = vpop.f32.mrb[83].mxu0 }
 0x48a   :  { %v6071_v32 = vadd.f32 %v6070_v37, %v6069_v53 }
 0x48c   :  { %v6072_v14 = vpop.f32.mrb[84].mxu0 }
 0x48d   :  { %v6073_v55 = vpop.f32.mrb[85].mxu0 }
 0x48e   :  { %v6074_v9 = vadd.f32 %v6073_v55, %v6072_v14 }
 0x490   :  { %v6075_v11 = vpop.f32.mrb[86].mxu0 }
 0x491   :  { %v6076_v45 = vpop.f32.mrb[87].mxu0 }
 0x492   :  { %v6077_v49 = vadd.f32 %v6076_v45, %v6075_v11 }
 0x4a4   :  { %v6110_v31 = vpop.f32.mrb[88].mxu0 }
 0x4a5   :  { %v6111_v57 = vpop.f32.mrb[89].mxu0 }
 0x4a6   :  { %v6112_v61 = vadd.f32 %v6111_v57, %v6110_v31 }
 0x4a8   :  { %v6113_v5 = vpop.f32.mrb[90].mxu0  ;;  %v2957_v23 = vadd.f32 %v6112_v61, %v6068_v58 }
 0x4a9   :  { %v6114_v2 = vpop.f32.mrb[91].mxu0 }
 0x4aa   :  { %v6115_v62 = vadd.f32 %v6114_v2, %v6113_v5 }
 0x4ac   :  { %v6116_v30 = vpop.f32.mrb[92].mxu0  ;;  %v2962_v51 = vadd.f32 %v6115_v62, %v6071_v32 }
 0x4ad   :  { %v6117_v15 = vpop.f32.mrb[93].mxu0 }
 0x4ae   :  { %v6118_v34 = vadd.f32 %v6117_v15, %v6116_v30 }
 0x4b0   :  { %v6119_v47 = vpop.f32.mrb[94].mxu0  ;;  %v2967_v17 = vadd.f32 %v6118_v34, %v6074_v9 }
 0x4b1   :  { %v6120_v43 = vpop.f32.mrb[95].mxu0 }
 0x4b2   :  { %v6121_v26 = vadd.f32 %v6120_v43, %v6119_v47 }
 0x4b4   :  { %v2972_v7 = vadd.f32 %v6121_v26, %v6077_v49  ;;  %v7158_v26 = vld [vmem:[#allocation7 + $0x4] ss:$8 sps:$4 sm:$0xff]  }
 0x4c4   :  { %v6248_v19 = vpop.f32.mrb[96].mxu0 }
 0x4c5   :  { %v3047_v4 = vadd.f32 %v6248_v19, %v2962_v51  ;;  %v3041_v13 = vpop.f32.mrb[97].mxu0  ;;  %v7160_v19 = vld [vmem:[#allocation7] ss:$8 sps:$4 sm:$0xff]  }
 0x4c6   :  { %v3042_v44 = vadd.f32 %v3041_v13, %v2957_v23  ;;  %v7164_v13 = vld [vmem:[#allocation7 + $0x24] ss:$8 sps:$4 sm:$0xff]  }
 0x4c7   :  { %v3069_v6 = vmul.f32 %v4522_v42, %v3047_v4  ;;  %v7163_v4 = vld [vmem:[#allocation7 + $0x10] ss:$8 sps:$4 sm:$0xff]  }
 0x4c8   :  { %v3068_v25 = vmul.f32 %v4522_v42, %v3042_v44  ;;  %v6251_v59 = vpop.f32.mrb[98].mxu0  ;;  %v7167_v44 = vld [vmem:[#allocation7 + $0x34] ss:$8 sps:$4 sm:$0xff]  }
 0x4c9   :  { %v3079_v16 = vadd.f32 %v4523_v35, %v3069_v6  ;;  %v3057_v27 = vadd.f32 %v6251_v59, %v2972_v7  ;;  %v3051_v60 = vpop.f32.mrb[99].mxu0  ;;  %v3147_v7 = vld [vmem:[%s8855_s17 + $0x8] sm:$0xff]  ;;  %v7169_v6 = vld [vmem:[#allocation7 + $0x30] ss:$8 sps:$4 sm:$0xff]  }
 0x4ca   :  { %v3078_v24 = vadd.f32 %v4523_v35, %v3068_v25  ;;  %v3052_v1 = vadd.f32 %v3051_v60, %v2967_v17  ;;  %v7170_v25 = vld [vmem:[#allocation7 + $0x44] ss:$8 sps:$4 sm:$0xff]   ;;  %v7172_v59 = vld [vmem:[#allocation7 + $0x40] ss:$8 sps:$4 sm:$0xff]  }
 0x4cb   :  { %v3083_v46 = vmax.f32 %v3079_v16, 0.0  ;;  %v3071_v33 = vmul.f32 %v4522_v42, %v3057_v27  ;;  %v7173_v16 = vld [vmem:[#allocation7 + $0x54] ss:$8 sps:$4 sm:$0xff]   ;;  %v7175_v27 = vld [vmem:[#allocation7 + $0x50] ss:$8 sps:$4 sm:$0xff]  }
 0x4cc   :  { %v3082_v8 = vmax.f32 %v3078_v24, 0.0  ;;  %v3070_v40 = vmul.f32 %v4522_v42, %v3052_v1  ;;  %v7161_v42 = vld [vmem:[#allocation7 + $0x14] ss:$8 sps:$4 sm:$0xff]   ;;  %v7176_v60 = vld [vmem:[#allocation7 + $0x64] ss:$8 sps:$4 sm:$0xff]  }
 0x4cd   :  { %v3089_v29 = vrot.slane %v3083_v46, 7  ;;  %v3081_v50 = vadd.f32 %v4523_v35, %v3071_v33  ;;  %v7178_v24 = vld [vmem:[#allocation7 + $0x60] ss:$8 sps:$4 sm:$0xff]   ;;  %v7179_v1 = vld [vmem:[#allocation7 + $0x74] ss:$8 sps:$4 sm:$0xff]  }
 0x4ce   :  { %v3088_v22 = vrot.slane %v3082_v8, 7  ;;  %v3080_v36 = vadd.f32 %v4523_v35, %v3070_v40  ;;  %v7166_v35 = vld [vmem:[#allocation7 + $0x20] ss:$8 sps:$4 sm:$0xff]   ;;  %v7181_v46 = vld [vmem:[#allocation7 + $0x70] ss:$8 sps:$4 sm:$0xff]  }
 0x4cf   :  { %v3095_v63 = vsel %vm2358_vm8, %v3089_v29, 0.0  ;;  %v3085_v52 = vmax.f32 %v3081_v50, 0.0  ;;  %v7182_v33 = vld [vmem:[#allocation7 + $0x84] ss:$8 sps:$4 sm:$0xff]   ;;  %v7184_v8 = vld [vmem:[#allocation7 + $0x80] ss:$8 sps:$4 sm:$0xff]  }
 0x4d0   :  { %v3101_v48 = vrot.slane %v3095_v63, 1  ;;  %v3110_v20 = vrot.slane %v3095_v63, 2  ;;  %v3090_v56 = vsel %vm2358_vm8, %v3088_v22, %v3089_v29  ;;  %v3094_v41 = vsel %vm2358_vm8, 0.0, %v3088_v22  ;;  %v7185_v40 = vld [vmem:[#allocation7 + $0x94] ss:$8 sps:$4 sm:$0xff]  }
 0x4d1   :  { %v3098_v3 = vrot.slane %v3094_v41, 1  ;;  %v3099_v12 = vrot.slane %v3090_v56, 1  ;;  %v3107_v28 = vrot.slane %v3094_v41, 2  ;;  %v3119_v0 = vrot.slane %v3085_v52, 7  ;;  %v7187_v29 = vld [vmem:[#allocation7 + $0x90] ss:$8 sps:$4 sm:$0xff]  }
 0x4d2   :  { %v3084_v54 = vmax.f32 %v3080_v36, 0.0  ;;  %v3108_v39 = vrot.slane %v3090_v56, 2  ;;  %v7188_v50 = vld [vmem:[#allocation7 + $0xa4] ss:$8 sps:$4 sm:$0xff]   ;;  %v7190_v22 = vld [vmem:[#allocation7 + $0xa0] ss:$8 sps:$4 sm:$0xff]  }
 0x4d3   :  { %v3125_v38 = vsel %vm2358_vm8, %v3119_v0, 0.0  ;;  %v3100_v18 = vsel %vm566_vm0, %v3098_v3, %v3099_v12  ;;  %v3102_v10 = vsel %vm566_vm0, %v3099_v12, %v3101_v48  ;;  %v7191_v36 = vld [vmem:[#allocation7 + $0xb4] ss:$8 sps:$4 sm:$0xff]   ;;  %v7193_v63 = vld [vmem:[#allocation7 + $0xb0] ss:$8 sps:$4 sm:$0xff]  }
 0x4d4   :  { %v3118_v21 = vrot.slane %v3084_v54, 7  ;;  %v3105_v58 = vmax.f32 %v3094_v41, %v3100_v18  ;;  %v3131_v53 = vrot.slane %v3125_v38, 1  ;;  %v3106_v37 = vmax.f32 %v3090_v56, %v3102_v10  ;;  %v7194_v52 = vld [vmem:[#allocation7 + $0xc4] ss:$8 sps:$4 sm:$0xff]   ;;  %v7196_v48 = vld [vmem:[#allocation7 + $0xc0] ss:$8 sps:$4 sm:$0xff]  }
 0x4d5   :  { %v3109_v32 = vsel %vm1111_vm1, %v3107_v28, %v3108_v39  ;;  %v3111_v14 = vsel %vm1111_vm1, %v3108_v39, %v3110_v20  ;;  %v3140_v55 = vrot.slane %v3125_v38, 2  ;;  %v7197_v20 = vld [vmem:[#allocation7 + $0xd4] ss:$8 sps:$4 sm:$0xff]   ;;  %v7199_v56 = vld [vmem:[#allocation7 + $0xd0] ss:$8 sps:$4 sm:$0xff]  }
 0x4d6   :  { %v3120_v9 = vsel %vm2358_vm8, %v3118_v21, %v3119_v0  ;;  %v3124_v11 = vsel %vm2358_vm8, 0.0, %v3118_v21  ;;  %v3114_v45 = vmax.f32 %v3105_v58, %v3109_v32  ;;  %v3115_v61 = vmax.f32 %v3106_v37, %v3111_v14  ;;  %v7200_v41 = vld [vmem:[#allocation7 + $0xe4] ss:$8 sps:$4 sm:$0xff]   ;;  %v7202_v3 = vld [vmem:[#allocation7 + $0xe0] ss:$8 sps:$4 sm:$0xff]  }
 0x4d7   :  { %v3128_v49 = vrot.slane %v3124_v11, 1  ;;  %v3129_v31 = vrot.slane %v3120_v9, 1  ;;  %v3137_v57 = vrot.slane %v3124_v11, 2  ;;  %v3138_v5 = vrot.slane %v3120_v9, 2  ;;  %v7203_v12 = vld [vmem:[#allocation7 + $0xf4] ss:$8 sps:$4 sm:$0xff]  }
 0x4d8   :  { %v6695_v23 = vpack.c.bf16 %v3115_v61, %v3114_v45  ;;  %v7205_v28 = vld [vmem:[#allocation7 + $0xf0] ss:$8 sps:$4 sm:$0xff]   ;;  %v7206_v0 = vld [vmem:[#allocation7 + $0x104] ss:$8 sps:$4 sm:$0xff]   ;;  %v7209_v45 = vld [vmem:[#allocation7 + $0x114] ss:$8 sps:$4 sm:$0xff]  }
 0x4d9   :  { %v3130_v2 = vsel %vm566_vm0, %v3128_v49, %v3129_v31  ;;  %v3132_v62 = vsel %vm566_vm0, %v3129_v31, %v3131_v53  ;;  %v3139_v15 = vsel %vm1111_vm1, %v3137_v57, %v3138_v5  ;;  %v3141_v34 = vsel %vm1111_vm1, %v3138_v5, %v3140_v55  ;;  %v7211_v31 = vld [vmem:[#allocation7 + $0x110] ss:$8 sps:$4 sm:$0xff]   ;;  %v7212_v57 = vld [vmem:[#allocation7 + $0x124] ss:$8 sps:$4 sm:$0xff]   ;;  %v7214_v61 = vld [vmem:[#allocation7 + $0x120] ss:$8 sps:$4 sm:$0xff]  }
 0x4da   :  { %v3135_v30 = vmax.f32 %v3124_v11, %v3130_v2  ;;  %v3136_v51 = vmax.f32 %v3120_v9, %v3132_v62  ;;  %6696 = vmatprep.subr.bf16.mxu0 %v6695_v23  ;;  %v7208_v9 = vld [vmem:[#allocation7 + $0x100] ss:$8 sps:$4 sm:$0xff]   ;;  %v7500_v5 = vmov 0.0   ;;  %v7217_v2 = vld [vmem:[#allocation7 + $0x130] ss:$8 sps:$4 sm:$0xff]  }
 0x4db   :  { %6698 = vmatpush3.bf16.msra.mxu0 %v6695_v23  ;;  %v7215_v23 = vld [vmem:[#allocation7 + $0x134] ss:$8 sps:$4 sm:$0xff]   ;;  %v7218_v62 = vld [vmem:[#allocation7 + $0x144] ss:$8 sps:$4 sm:$0xff]  }
 0x4dc   :  { %v3144_v47 = vmax.f32 %v3135_v30, %v3139_v15  ;;  %v3145_v17 = vmax.f32 %v3136_v51, %v3141_v34  ;;  %v7220_v30 = vld [vmem:[#allocation7 + $0x140] ss:$8 sps:$4 sm:$0xff]   ;;  %v7221_v51 = vld [vmem:[#allocation7 + $0x154] ss:$8 sps:$4 sm:$0xff]   ;;  %v7223_v15 = vld [vmem:[#allocation7 + $0x150] ss:$8 sps:$4 sm:$0xff]  }
 0x4dd   :  { %v7224_v34 = vld [vmem:[#allocation7 + $0x164] ss:$8 sps:$4 sm:$0xff]  }
 0x4de   :  { %v6699_v43 = vpack.c.bf16 %v3145_v17, %v3144_v47  ;;  %v7226_v47 = vld [vmem:[#allocation7 + $0x160] ss:$8 sps:$4 sm:$0xff]   ;;  %v7227_v17 = vld [vmem:[#allocation7 + $0x174] ss:$8 sps:$4 sm:$0xff]  }
 0x4e0   :  { %6700 = vmatprep.subr.bf16.mxu0 %v6699_v43 }
 0x4e1   :  { %6702 = vmatpush3.bf16.msra.mxu0 %v6699_v43  ;;  %v7229_v43 = vld [vmem:[#allocation7 + $0x170] ss:$8 sps:$4 sm:$0xff]  }
 0x4e2   :  { %6704 = vmatprep.subr.bf16.mxu0 %v7158_v26 }
 0x4e4   :  { %6261 = vmatmul.mubr.msk.f32.vlgmr.msra.gmra.mrb[100].mxu0 %vm3148_vm10, %v3147_v7 }
 0x4e5   :  { %6706 = vmatpush1.bf16.msra.mxu0 %v7160_v19 }
 0x4e6   :  { %6708 = vmatprep.subr.bf16.mxu0 %v7161_v42 }
 0x4e9   :  { %6710 = vmatpush1.bf16.msra.mxu0 %v7163_v4 }
 0x4ea   :  { %6712 = vmatprep.subr.bf16.mxu0 %v7164_v13 }
 0x4ed   :  { %6714 = vmatpush1.bf16.msra.mxu0 %v7166_v35  ;;  %v7230_v35 = vld [vmem:[#allocation8 + $0x4] ss:$8 sps:$4 sm:$0xff]  }
 0x4ee   :  { %6716 = vmatprep.subr.bf16.mxu0 %v7167_v44  ;;  %v7232_v44 = vld [vmem:[#allocation8] ss:$8 sps:$4 sm:$0xff]   ;;  %6804 = vmatprep.subr.bf16.mxu1 %v7230_v35 }
 0x4ef   :  { %6806 = vmatpush1.bf16.msra.mxu1 %v7232_v44 }
 0x4f1   :  { %6718 = vmatpush1.bf16.msra.mxu0 %v7169_v6  ;;  %v7233_v6 = vld [vmem:[#allocation8 + $0x14] ss:$8 sps:$4 sm:$0xff]  }
 0x4f2   :  { %6720 = vmatprep.subr.bf16.mxu0 %v7170_v25  ;;  %v7235_v25 = vld [vmem:[#allocation8 + $0x10] ss:$8 sps:$4 sm:$0xff]   ;;  %6808 = vmatprep.subr.bf16.mxu1 %v7233_v6 }
 0x4f3   :  { %6810 = vmatpush1.bf16.msra.mxu1 %v7235_v25 }
 0x4f5   :  { %6722 = vmatpush1.bf16.msra.mxu0 %v7172_v59  ;;  %v7236_v59 = vld [vmem:[#allocation8 + $0x24] ss:$8 sps:$4 sm:$0xff]  }
 0x4f6   :  { %6724 = vmatprep.subr.bf16.mxu0 %v7173_v16  ;;  %v7238_v16 = vld [vmem:[#allocation8 + $0x20] ss:$8 sps:$4 sm:$0xff]   ;;  %6812 = vmatprep.subr.bf16.mxu1 %v7236_v59 }
 0x4f7   :  { %6814 = vmatpush1.bf16.msra.mxu1 %v7238_v16 }
 0x4f9   :  { %6726 = vmatpush1.bf16.msra.mxu0 %v7175_v27  ;;  %v7239_v27 = vld [vmem:[#allocation8 + $0x34] ss:$8 sps:$4 sm:$0xff]  }
 0x4fa   :  { %6728 = vmatprep.subr.bf16.mxu0 %v7176_v60  ;;  %v7241_v60 = vld [vmem:[#allocation8 + $0x30] ss:$8 sps:$4 sm:$0xff]   ;;  %6816 = vmatprep.subr.bf16.mxu1 %v7239_v27 }
 0x4fb   :  { %6818 = vmatpush1.bf16.msra.mxu1 %v7241_v60 }
 0x4fd   :  { %6730 = vmatpush1.bf16.msra.mxu0 %v7178_v24  ;;  %v7242_v24 = vld [vmem:[#allocation8 + $0x44] ss:$8 sps:$4 sm:$0xff]  }
 0x4fe   :  { %6732 = vmatprep.subr.bf16.mxu0 %v7179_v1  ;;  %v7244_v1 = vld [vmem:[#allocation8 + $0x40] ss:$8 sps:$4 sm:$0xff]   ;;  %6820 = vmatprep.subr.bf16.mxu1 %v7242_v24 }
 0x4ff   :  { %6822 = vmatpush1.bf16.msra.mxu1 %v7244_v1 }
 0x501   :  { %6734 = vmatpush1.bf16.msra.mxu0 %v7181_v46  ;;  %v7245_v46 = vld [vmem:[#allocation8 + $0x54] ss:$8 sps:$4 sm:$0xff]  }
 0x502   :  { %6736 = vmatprep.subr.bf16.mxu0 %v7182_v33  ;;  %v7247_v33 = vld [vmem:[#allocation8 + $0x50] ss:$8 sps:$4 sm:$0xff]   ;;  %6824 = vmatprep.subr.bf16.mxu1 %v7245_v46 }
 0x503   :  { %6826 = vmatpush1.bf16.msra.mxu1 %v7247_v33 }
 0x505   :  { %6738 = vmatpush1.bf16.msra.mxu0 %v7184_v8  ;;  %v7248_v8 = vld [vmem:[#allocation8 + $0x64] ss:$8 sps:$4 sm:$0xff]  }
 0x506   :  { %6740 = vmatprep.subr.bf16.mxu0 %v7185_v40  ;;  %v7250_v40 = vld [vmem:[#allocation8 + $0x60] ss:$8 sps:$4 sm:$0xff]   ;;  %6828 = vmatprep.subr.bf16.mxu1 %v7248_v8 }
 0x507   :  { %6830 = vmatpush1.bf16.msra.mxu1 %v7250_v40 }
 0x509   :  { %6742 = vmatpush1.bf16.msra.mxu0 %v7187_v29  ;;  %v7251_v29 = vld [vmem:[#allocation8 + $0x74] ss:$8 sps:$4 sm:$0xff]  }
 0x50a   :  { %6744 = vmatprep.subr.bf16.mxu0 %v7188_v50  ;;  %v7253_v50 = vld [vmem:[#allocation8 + $0x70] ss:$8 sps:$4 sm:$0xff]   ;;  %6832 = vmatprep.subr.bf16.mxu1 %v7251_v29 }
 0x50b   :  { %6834 = vmatpush1.bf16.msra.mxu1 %v7253_v50 }
 0x50d   :  { %6746 = vmatpush1.bf16.msra.mxu0 %v7190_v22  ;;  %v7254_v22 = vld [vmem:[#allocation8 + $0x84] ss:$8 sps:$4 sm:$0xff]  }
 0x50e   :  { %6748 = vmatprep.subr.bf16.mxu0 %v7191_v36  ;;  %v7256_v36 = vld [vmem:[#allocation8 + $0x80] ss:$8 sps:$4 sm:$0xff]   ;;  %6836 = vmatprep.subr.bf16.mxu1 %v7254_v22 }
 0x50f   :  { %6838 = vmatpush1.bf16.msra.mxu1 %v7256_v36 }
 0x511   :  { %6750 = vmatpush1.bf16.msra.mxu0 %v7193_v63  ;;  %v7257_v63 = vld [vmem:[#allocation8 + $0x94] ss:$8 sps:$4 sm:$0xff]  }
 0x512   :  { %6752 = vmatprep.subr.bf16.mxu0 %v7194_v52  ;;  %v7259_v52 = vld [vmem:[#allocation8 + $0x90] ss:$8 sps:$4 sm:$0xff]   ;;  %6840 = vmatprep.subr.bf16.mxu1 %v7257_v63 }
 0x513   :  { %6842 = vmatpush1.bf16.msra.mxu1 %v7259_v52 }
 0x515   :  { %6754 = vmatpush1.bf16.msra.mxu0 %v7196_v48  ;;  %v7260_v48 = vld [vmem:[#allocation8 + $0xa4] ss:$8 sps:$4 sm:$0xff]  }
 0x516   :  { %6756 = vmatprep.subr.bf16.mxu0 %v7197_v20  ;;  %v7262_v20 = vld [vmem:[#allocation8 + $0xa0] ss:$8 sps:$4 sm:$0xff]   ;;  %6844 = vmatprep.subr.bf16.mxu1 %v7260_v48 }
 0x517   :  { %6846 = vmatpush1.bf16.msra.mxu1 %v7262_v20 }
 0x519   :  { %6758 = vmatpush1.bf16.msra.mxu0 %v7199_v56  ;;  %v7263_v56 = vld [vmem:[#allocation8 + $0xb4] ss:$8 sps:$4 sm:$0xff]  }
 0x51a   :  { %6760 = vmatprep.subr.bf16.mxu0 %v7200_v41  ;;  %v7265_v41 = vld [vmem:[#allocation8 + $0xb0] ss:$8 sps:$4 sm:$0xff]   ;;  %6848 = vmatprep.subr.bf16.mxu1 %v7263_v56 }
 0x51b   :  { %6850 = vmatpush1.bf16.msra.mxu1 %v7265_v41 }
 0x51d   :  { %6762 = vmatpush1.bf16.msra.mxu0 %v7202_v3  ;;  %v7266_v3 = vld [vmem:[#allocation8 + $0xc4] ss:$8 sps:$4 sm:$0xff]  }
 0x51e   :  { %6764 = vmatprep.subr.bf16.mxu0 %v7203_v12  ;;  %v7268_v12 = vld [vmem:[#allocation8 + $0xc0] ss:$8 sps:$4 sm:$0xff]   ;;  %6852 = vmatprep.subr.bf16.mxu1 %v7266_v3 }
 0x51f   :  { %6854 = vmatpush1.bf16.msra.mxu1 %v7268_v12 }
 0x521   :  { %6766 = vmatpush1.bf16.msra.mxu0 %v7205_v28  ;;  %v7269_v28 = vld [vmem:[#allocation8 + $0xd4] ss:$8 sps:$4 sm:$0xff]  }
 0x522   :  { %6768 = vmatprep.subr.bf16.mxu0 %v7206_v0  ;;  %v7271_v0 = vld [vmem:[#allocation8 + $0xd0] ss:$8 sps:$4 sm:$0xff]   ;;  %6856 = vmatprep.subr.bf16.mxu1 %v7269_v28 }
 0x523   :  { %6858 = vmatpush1.bf16.msra.mxu1 %v7271_v0 }
 0x5b7   :  { %v6262_v54 = vpop.f32.mrb[100].mxu0 }
 0x5b8   :  { %v3380_v39 = vrot.slane %v6262_v54, 7  ;;  %v3221_v38 = vpop.f32.mrb[101].mxu0  ;;  %v3561_v54 = vlaneseq }
 0x5b9   :  { %v3375_v18 = vrot.slane %v3221_v38, 7 }
 0x5ba   :  { %v3382_v10 = vsel %vm2358_vm8, 0.0, %v3380_v39  ;;  %v3383_v21 = vsel %vm2358_vm8, %v3380_v39, 0.0 }
 0x5bb   :  { %v3377_v58 = vsel %vm2358_vm8, 0.0, %v3375_v18  ;;  %v3378_v53 = vsel %vm2358_vm8, %v3375_v18, 0.0  ;;  %v3396_v37 = vrot.slane %v3382_v10, 1  ;;  %v3397_v32 = vrot.slane %v3383_v21, 1 }
 0x5bc   :  { %v3386_v14 = vrot.slane %v3377_v58, 1  ;;  %v3387_v55 = vrot.slane %v3378_v53, 1  ;;  %v3390_v26 = vrot.slane %v3377_v58, 2  ;;  %v3391_v7 = vrot.slane %v3378_v53, 2 }
 0x5bd   :  { %v3398_v49 = vsel %vm566_vm0, %v3396_v37, %v3397_v32  ;;  %v3400_v19 = vrot.slane %v3382_v10, 2  ;;  %v3401_v42 = vrot.slane %v3383_v21, 2  ;;  %v3559_v21 = vld [vmem:[%s8850_s12] sm:$0x3] }
 0x5be   :  { %v3388_v11 = vsel %vm566_vm0, %v3386_v14, %v3387_v55  ;;  %v3392_v4 = vsel %vm1111_vm1, %v3390_v26, %v3391_v7 }
 0x5bf   :  { %3468 = vmatprep.mubr.f32.mxu0 %v3388_v11  ;;  %v3402_v13 = vsel %vm1111_vm1, %v3400_v19, %v3401_v42 }
 0x5c0   :  { %4527 = vmatmul.mubr.msk.f32.vlgmr.msra.gmra.mrb[102].mxu0 %vm4526_vm11, %v3375_v18  ;;  %v3558_v18 = vld [vmem:[%s8849_s11] sm:$0x3] }
 0x5c1   :  { %6770 = vmatpush1.bf16.msra.mxu0 %v7208_v9  ;;  %3474 = vmatprep.mubr.f32.mxu0 %v3398_v49 }
 0x5c2   :  { %6772 = vmatprep.subr.bf16.mxu0 %v7209_v45 }
 0x5c4   :  { %4529 = vmatmul.mubr.msk.f32.gmra.mrb[104].mxu0 %vm4526_vm11, %v3380_v39  ;;  %v8738_v39 = vshrl.u32 %v3561_v54, 7 }
 0x5c5   :  { %6774 = vmatpush1.bf16.msra.mxu0 %v7211_v31  ;;  %3545 = vmatprep.mubr.f32.mxu0 %v7500_v5 }
 0x5c6   :  { %6776 = vmatprep.subr.bf16.mxu0 %v7212_v57  ;;  %v8741_v38 = vsub.s32 0, %v8738_v39  ;;  %v8747_v10 = vsub.s32 1, %v8738_v39 }
 0x5c8   :  { %v3564_v58 = vrot.slane %v3558_v18, %v8741_v38  ;;  %v3568_v53 = vrot.slane %v3558_v18, %v8747_v10  ;;  %v3579_v37 = vrot.slane %v3559_v21, %v8741_v38  ;;  %v3583_v14 = vrot.slane %v3559_v21, %v8747_v10 }
 0x5c9   :  { %6778 = vmatpush1.bf16.msra.mxu0 %v7214_v61 }
 0x5ca   :  { %6780 = vmatprep.subr.bf16.mxu0 %v7215_v23 }
 0x5cd   :  { %6782 = vmatpush1.bf16.msra.mxu0 %v7217_v2 }
 0x5ce   :  { %6784 = vmatprep.subr.bf16.mxu0 %v7218_v62 }
 0x5d1   :  { %6786 = vmatpush1.bf16.msra.mxu0 %v7220_v30 }
 0x5d2   :  { %6788 = vmatprep.subr.bf16.mxu0 %v7221_v51 }
 0x5d5   :  { %6790 = vmatpush1.bf16.msra.mxu0 %v7223_v15 }
 0x5d6   :  { %6792 = vmatprep.subr.bf16.mxu0 %v7224_v34 }
 0x5d9   :  { %6794 = vmatpush1.bf16.msra.mxu0 %v7226_v47 }
 0x5da   :  { %6796 = vmatprep.subr.bf16.mxu0 %v7227_v17 }
 0x5dd   :  { %6798 = vmatpush1.bf16.msra.mxu0 %v7229_v43 }
 0x5e0   :  { %3546 = vmatmul.mubr.f32.vlgmr.msra.gmra.mrb[102].mxu0 %v3392_v4 }
 0x5e1   :  { %3551 = vmatprep.mubr.f32.mxu0 %v7500_v5 }
 0x5e4   :  { %3552 = vmatmul.mubr.f32.gmra.mrb[104].mxu0 %v3402_v13 }
 0x5e5   :  { %3731 = vmatprep.mubr.f32.mxu0 %v7500_v5 }
 0x6b3   :  { %v3547_v32 = vpop.f32.mrb[102].mxu0 }
 0x6b4   :  { %v3571_v55 = vmul.f32 %v3564_v58, %v3547_v32  ;;  %v3549_v9 = vpop.f32.mrb[103].mxu0 }
 0x6b5   :  { %v3572_v11 = vmul.f32 %v3568_v53, %v3549_v9  ;;  %v3662_v9 = vld [vmem:[%s8856_s18] sm:$0xff] }
 0x6b6   :  { %v3586_v45 = vadd.f32 %v3579_v37, %v3571_v55 }
 0x6b7   :  { %v3587_v49 = vadd.f32 %v3583_v14, %v3572_v11  ;;  %v3553_v31 = vpop.f32.mrb[104].mxu0  ;;  %v7272_v11 = vld [vmem:[#allocation8 + $0xe4] ss:$8 sps:$4 sm:$0xff]  }
 0x6b8   :  { %v3590_v57 = vmax.f32 %v3586_v45, 0.0  ;;  %v3573_v61 = vmul.f32 %v3564_v58, %v3553_v31  ;;  %v3555_v23 = vpop.f32.mrb[105].mxu0  ;;  %v7274_v45 = vld [vmem:[#allocation8 + $0xe0] ss:$8 sps:$4 sm:$0xff]   ;;  %6860 = vmatprep.subr.bf16.mxu1 %v7272_v11  ;;  %v7277_v31 = vld [vmem:[#allocation8 + $0xf0] ss:$8 sps:$4 sm:$0xff]  }
 0x6b9   :  { %v3591_v2 = vmax.f32 %v3587_v49, 0.0  ;;  %v3574_v62 = vmul.f32 %v3568_v53, %v3555_v23  ;;  %v7275_v49 = vld [vmem:[#allocation8 + $0xf4] ss:$8 sps:$4 sm:$0xff]   ;;  %6862 = vmatpush1.bf16.msra.mxu1 %v7274_v45  ;;  %v7319_v11 = vld [vmem:[#allocation8 + $0x1d0] ss:$8 sps:$4 sm:$0xff]  }
 0x6ba   :  { %v3596_v30 = vrot.slane %v3590_v57, 7  ;;  %v3588_v51 = vadd.f32 %v3579_v37, %v3573_v61  ;;  %6864 = vmatprep.subr.bf16.mxu1 %v7275_v49  ;;  %v7278_v57 = vld [vmem:[#allocation8 + $0x104] ss:$8 sps:$4 sm:$0xff]   ;;  %v7322_v49 = vld [vmem:[#allocation8 + $0x1e0] ss:$8 sps:$4 sm:$0xff]  }
 0x6bb   :  { %v3597_v15 = vrot.slane %v3591_v2, 7  ;;  %v3589_v34 = vadd.f32 %v3583_v14, %v3574_v62  ;;  %v7320_v45 = vld [vmem:[#allocation8 + $0x1e4] ss:$8 sps:$4 sm:$0xff]  }
 0x6bc   :  { %v3600_v47 = vsel %vm2358_vm8, 0.0, %v3596_v30  ;;  %v3602_v17 = vsel %vm2358_vm8, %v3596_v30, 0.0  ;;  %v3592_v43 = vmax.f32 %v3588_v51, 0.0 }
 0x6bd   :  { %v3608_v26 = vrot.slane %v3600_v47, 1  ;;  %v3609_v7 = vrot.slane %v3602_v17, 1  ;;  %v3601_v19 = vsel %vm2358_vm8, 0.0, %v3597_v15  ;;  %v3603_v42 = vsel %vm2358_vm8, %v3597_v15, 0.0  ;;  %6866 = vmatpush1.bf16.msra.mxu1 %v7277_v31  ;;  %v7323_v31 = vld [vmem:[#allocation8 + $0x1f4] ss:$8 sps:$4 sm:$0xff]  }
 0x6be   :  { %v3630_v4 = vrot.slane %v3592_v43, 7  ;;  %v3593_v13 = vmax.f32 %v3589_v34, 0.0  ;;  %v3611_v35 = vrot.slane %v3601_v19, 1  ;;  %v3612_v44 = vrot.slane %v3603_v42, 1  ;;  %6868 = vmatprep.subr.bf16.mxu1 %v7278_v57  ;;  %v7325_v57 = vld [vmem:[#allocation8 + $0x1f0] ss:$8 sps:$4 sm:$0xff]  }
 0x6bf   :  { %v3610_v6 = vsel %vm566_vm0, %v3608_v26, %v3609_v7  ;;  %v3618_v16 = vrot.slane %v3600_v47, 2  ;;  %v3619_v24 = vrot.slane %v3602_v17, 2  ;;  %v3621_v29 = vrot.slane %v3601_v19, 2 }
 0x6c0   :  { %v3634_v25 = vsel %vm2358_vm8, 0.0, %v3630_v4  ;;  %v3636_v59 = vsel %vm2358_vm8, %v3630_v4, 0.0  ;;  %v3631_v33 = vrot.slane %v3593_v13, 7  ;;  %v3616_v8 = vmax.f32 %v3600_v47, %v3610_v6 }
 0x6c1   :  { %v3642_v27 = vrot.slane %v3634_v25, 1  ;;  %v3643_v60 = vrot.slane %v3636_v59, 1  ;;  %v3652_v1 = vrot.slane %v3634_v25, 2  ;;  %v3653_v46 = vrot.slane %v3636_v59, 2  ;;  %v7280_v59 = vld [vmem:[#allocation8 + $0x100] ss:$8 sps:$4 sm:$0xff]  }
 0x6c2   :  { %v3613_v40 = vsel %vm566_vm0, %v3611_v35, %v3612_v44  ;;  %v3622_v22 = vrot.slane %v3603_v42, 2  ;;  %v3635_v63 = vsel %vm2358_vm8, 0.0, %v3631_v33  ;;  %v3637_v52 = vsel %vm2358_vm8, %v3631_v33, 0.0 }
 0x6c3   :  { %v3644_v50 = vsel %vm566_vm0, %v3642_v27, %v3643_v60  ;;  %v3645_v48 = vrot.slane %v3635_v63, 1  ;;  %v3646_v20 = vrot.slane %v3637_v52, 1  ;;  %v3655_v56 = vrot.slane %v3635_v63, 2 }
 0x6c4   :  { %v3650_v36 = vmax.f32 %v3634_v25, %v3644_v50  ;;  %v3656_v41 = vrot.slane %v3637_v52, 2  ;;  %v3617_v3 = vmax.f32 %v3601_v19, %v3613_v40  ;;  %v3620_v12 = vsel %vm1111_vm1, %v3618_v16, %v3619_v24  ;;  %v7284_v50 = vld [vmem:[#allocation8 + $0x124] ss:$8 sps:$4 sm:$0xff]  }
 0x6c5   :  { %v3654_v28 = vsel %vm1111_vm1, %v3652_v1, %v3653_v46  ;;  %v3647_v0 = vsel %vm566_vm0, %v3645_v48, %v3646_v20  ;;  %v3626_v54 = vmax.f32 %v3616_v8, %v3620_v12  ;;  %v3623_v58 = vsel %vm1111_vm1, %v3621_v29, %v3622_v22  ;;  %v7281_v46 = vld [vmem:[#allocation8 + $0x114] ss:$8 sps:$4 sm:$0xff]   ;;  %v7283_v29 = vld [vmem:[#allocation8 + $0x110] ss:$8 sps:$4 sm:$0xff]   ;;  %v7286_v22 = vld [vmem:[#allocation8 + $0x120] ss:$8 sps:$4 sm:$0xff]  }
 0x6c6   :  { %v3660_v18 = vmax.f32 %v3650_v36, %v3654_v28  ;;  %v3651_v21 = vmax.f32 %v3635_v63, %v3647_v0  ;;  %v3657_v53 = vsel %vm1111_vm1, %v3655_v56, %v3656_v41  ;;  %v3627_v32 = vmax.f32 %v3617_v3, %v3623_v58  ;;  %v7287_v36 = vld [vmem:[#allocation8 + $0x134] ss:$8 sps:$4 sm:$0xff]   ;;  %v7289_v63 = vld [vmem:[#allocation8 + $0x130] ss:$8 sps:$4 sm:$0xff]   ;;  %v7290_v52 = vld [vmem:[#allocation8 + $0x144] ss:$8 sps:$4 sm:$0xff]  }
 0x6c7   :  { %v7292_v48 = vld [vmem:[#allocation8 + $0x140] ss:$8 sps:$4 sm:$0xff]   ;;  %v7293_v20 = vld [vmem:[#allocation8 + $0x154] ss:$8 sps:$4 sm:$0xff]   ;;  %v7295_v56 = vld [vmem:[#allocation8 + $0x150] ss:$8 sps:$4 sm:$0xff]  }
 0x6c8   :  { %v6801_v37 = vpack.c.bf16 %v3660_v18, %v3626_v54  ;;  %v3661_v14 = vmax.f32 %v3651_v21, %v3657_v53  ;;  %v7296_v41 = vld [vmem:[#allocation8 + $0x164] ss:$8 sps:$4 sm:$0xff]   ;;  %v7298_v3 = vld [vmem:[#allocation8 + $0x160] ss:$8 sps:$4 sm:$0xff]   ;;  %v7299_v12 = vld [vmem:[#allocation8 + $0x174] ss:$8 sps:$4 sm:$0xff]  }
 0x6c9   :  { %v7301_v28 = vld [vmem:[#allocation8 + $0x170] ss:$8 sps:$4 sm:$0xff]   ;;  %v7302_v0 = vld [vmem:[#allocation8 + $0x184] ss:$8 sps:$4 sm:$0xff]   ;;  %v7304_v54 = vld [vmem:[#allocation8 + $0x180] ss:$8 sps:$4 sm:$0xff]  }
 0x6ca   :  { %v6799_v55 = vpack.c.bf16 %v3661_v14, %v3627_v32  ;;  %v7305_v18 = vld [vmem:[#allocation8 + $0x194] ss:$8 sps:$4 sm:$0xff]   ;;  %v7307_v21 = vld [vmem:[#allocation8 + $0x190] ss:$8 sps:$4 sm:$0xff]   ;;  %v7308_v58 = vld [vmem:[#allocation8 + $0x1a4] ss:$8 sps:$4 sm:$0xff]  }
 0x6cb   :  { %v7310_v53 = vld [vmem:[#allocation8 + $0x1a0] ss:$8 sps:$4 sm:$0xff]   ;;  %v7313_v32 = vld [vmem:[#allocation8 + $0x1b0] ss:$8 sps:$4 sm:$0xff]   ;;  %v7314_v14 = vld [vmem:[#allocation8 + $0x1c4] ss:$8 sps:$4 sm:$0xff]  }
 0x6cc   :  { %6800 = vmatprep.subr.bf16.mxu0 %v6799_v55  ;;  %v7316_v55 = vld [vmem:[#allocation8 + $0x1c0] ss:$8 sps:$4 sm:$0xff]  }
 0x6cd   :  { %6802 = vmatpush1.bf16.msra.mxu0 %v6801_v37  ;;  %v7311_v37 = vld [vmem:[#allocation8 + $0x1b4] ss:$8 sps:$4 sm:$0xff]  }
 0x6d0   :  { %4530 = vmatmul.mubr.msk.f32.vlgmr.msra.gmra.mrb[106].mxu0 %vm3663_vm12, %v3662_v9  ;;  %v7317_v9 = vld [vmem:[#allocation8 + $0x1d4] ss:$8 sps:$4 sm:$0xff]  }
 0x6d1   :  { %4444 = vmatprep.mubr.f32.mxu0 %v7500_v5 }
 0x7a3   :  { %v3733_v61 = vpop.f32.mrb[106].mxu0 }
 0x7a4   :  { %v4028_v23 = vrot.slane %v3733_v61, 7  ;;  %v4036_v2 = vrot.slane %v3733_v61, 3  ;;  %v3735_v62 = vpop.f32.mrb[107].mxu0  ;;  %v7326_v61 = vld [vmem:[#allocation8 + $0x204] ss:$8 sps:$4 sm:$0xff]  }
 0x7a5   :  { %v4029_v30 = vrot.slane %v3735_v62, 7  ;;  %v4037_v51 = vrot.slane %v3735_v62, 3  ;;  %v7331_v62 = vld [vmem:[#allocation8 + $0x210] ss:$8 sps:$4 sm:$0xff]  }
 0x7a6   :  { %v4032_v15 = vsel %vm2358_vm8, 0.0, %v4028_v23  ;;  %v4040_v5 = vsel %vm2358_vm8, 0.0, %v4036_v2  ;;  %v7328_v23 = vld [vmem:[#allocation8 + $0x200] ss:$8 sps:$4 sm:$0xff]   ;;  %v7329_v2 = vld [vmem:[#allocation8 + $0x214] ss:$8 sps:$4 sm:$0xff]  }
 0x7a7   :  { %v4034_v34 = vsel %vm1761_vm3, %v4032_v15, 0.0  ;;  %v4042_v47 = vsel %vm1761_vm3, %v4040_v5, 0.0  ;;  %v4033_v17 = vsel %vm2358_vm8, 0.0, %v4029_v30  ;;  %v4041_v43 = vsel %vm2358_vm8, 0.0, %v4037_v51  ;;  %v7332_v30 = vld [vmem:[#allocation8 + $0x224] ss:$8 sps:$4 sm:$0xff]  }
 0x7a8   :  { %v4046_v26 = vrot.slane %v4034_v34, 1  ;;  %v4050_v7 = vrot.slane %v4034_v34, 2  ;;  %v4531_v19 = vrot.slane %v4042_v47, 5  ;;  %v4060_v42 = vrot.slane %v4042_v47, 4  ;;  %v7334_v51 = vld [vmem:[#allocation8 + $0x220] ss:$8 sps:$4 sm:$0xff]  }
 0x7a9   :  { %v4533_v4 = vrot.slane %v4042_v47, 6  ;;  %v4043_v13 = vsel %vm1761_vm3, %v4041_v43, 0.0  ;;  %v4035_v35 = vsel %vm1761_vm3, %v4033_v17, 0.0  ;;  %v7335_v15 = vld [vmem:[#allocation8 + $0x234] ss:$8 sps:$4 sm:$0xff]  }
 0x7aa   :  { %v4061_v44 = vrot.slane %v4043_v13, 4  ;;  %v4047_v6 = vrot.slane %v4035_v35, 1  ;;  %v4532_v25 = vrot.slane %v4043_v13, 5  ;;  %v8785_v16 = vsel %vm1775_vm6, %v4046_v26, %v4531_v19  ;;  %v7337_v5 = vld [vmem:[#allocation8 + $0x230] ss:$8 sps:$4 sm:$0xff]  }
 0x7ab   :  { %v4051_v27 = vrot.slane %v4035_v35, 2  ;;  %v4534_v60 = vrot.slane %v4043_v13, 6  ;;  %v8788_v24 = vsel %vm1775_vm6, %v4050_v7, %v4533_v4  ;;  %v4072_v33 = vsel %vm1775_vm6, %v4034_v34, %v4060_v42  ;;  %v7338_v34 = vld [vmem:[#allocation8 + $0x244] ss:$8 sps:$4 sm:$0xff]   ;;  %v7340_v47 = vld [vmem:[#allocation8 + $0x240] ss:$8 sps:$4 sm:$0xff]  }
 0x7ac   :  { %v4073_v1 = vsel %vm1775_vm6, %v4035_v35, %v4061_v44  ;;  %v4075_v40 = vsel %vm1775_vm6, %v4047_v6, %v4532_v25  ;;  %v7341_v17 = vld [vmem:[#allocation8 + $0x254] ss:$8 sps:$4 sm:$0xff]   ;;  %v7343_v43 = vld [vmem:[#allocation8 + $0x250] ss:$8 sps:$4 sm:$0xff]   ;;  %v7344_v26 = vld [vmem:[#allocation8 + $0x264] ss:$8 sps:$4 sm:$0xff]  }
 0x7ad   :  { %4142 = vmatprep.mubr.f32.mxu1 %v4073_v1  ;;  %v8793_v8 = vsel %vm1775_vm6, %v4051_v27, %v4534_v60  ;;  %v7346_v7 = vld [vmem:[#allocation8 + $0x260] ss:$8 sps:$4 sm:$0xff]   ;;  %v7347_v19 = vld [vmem:[#allocation8 + $0x274] ss:$8 sps:$4 sm:$0xff]   ;;  %v7349_v42 = vld [vmem:[#allocation8 + $0x270] ss:$8 sps:$4 sm:$0xff]  }
 0x7ae   :  { %4143 = vmatmul.mubr.f32.vlgmr.msra.gmra.mrb[76].mxu1 %v4072_v33  ;;  %v7350_v4 = vld [vmem:[#allocation8 + $0x284] ss:$8 sps:$4 sm:$0xff]   ;;  %v7352_v13 = vld [vmem:[#allocation8 + $0x280] ss:$8 sps:$4 sm:$0xff]   ;;  %v7353_v35 = vld [vmem:[#allocation8 + $0x294] ss:$8 sps:$4 sm:$0xff]  }
 0x7af   :  { %6870 = vmatpush1.bf16.msra.mxu1 %v7280_v59  ;;  %4213 = vmatprep.mubr.f32.mxu1 %v4075_v40  ;;  %v7355_v44 = vld [vmem:[#allocation8 + $0x290] ss:$8 sps:$4 sm:$0xff]   ;;  %v7356_v6 = vld [vmem:[#allocation8 + $0x2a4] ss:$8 sps:$4 sm:$0xff]   ;;  %v7358_v25 = vld [vmem:[#allocation8 + $0x2a0] ss:$8 sps:$4 sm:$0xff]  }
 0x7b0   :  { %6872 = vmatprep.subr.bf16.mxu1 %v7281_v46  ;;  %v7359_v59 = vld [vmem:[#allocation8 + $0x2b4] ss:$8 sps:$4 sm:$0xff]   ;;  %v7362_v27 = vld [vmem:[#allocation8 + $0x2c4] ss:$8 sps:$4 sm:$0xff]   ;;  %v7364_v60 = vld [vmem:[#allocation8 + $0x2c0] ss:$8 sps:$4 sm:$0xff]  }
 0x7b1   :  { %v7365_v1 = vld [vmem:[#allocation8 + $0x2d4] ss:$8 sps:$4 sm:$0xff]   ;;  %v7367_v46 = vld [vmem:[#allocation8 + $0x2d0] ss:$8 sps:$4 sm:$0xff]   ;;  %v7368_v33 = vld [vmem:[#allocation8 + $0x2e4] ss:$8 sps:$4 sm:$0xff]  }
 0x7b2   :  { %v7371_v40 = vld [vmem:[#allocation8 + $0x2f4] ss:$8 sps:$4 sm:$0xff]  }
 0x7b3   :  { %6874 = vmatpush1.bf16.msra.mxu1 %v7283_v29  ;;  %v7373_v29 = vld [vmem:[#allocation8 + $0x2f0] ss:$8 sps:$4 sm:$0xff]  }
 0x7b4   :  { %6876 = vmatprep.subr.bf16.mxu1 %v7284_v50  ;;  %v4291_v50 = vld [vmem:[%s8852_s14] sm:$0x3] }
 0x7b7   :  { %6878 = vmatpush1.bf16.msra.mxu1 %v7286_v22  ;;  %v4292_v22 = vld [vmem:[%s8853_s15] sm:$0x3] }
 0x7b8   :  { %6880 = vmatprep.subr.bf16.mxu1 %v7287_v36  ;;  %v4297_v36 = vrot.slane %v4291_v50, %v8741_v38 }
 0x7bb   :  { %6882 = vmatpush1.bf16.msra.mxu1 %v7289_v63  ;;  %v4301_v63 = vrot.slane %v4291_v50, %v8747_v10 }
 0x7bc   :  { %6884 = vmatprep.subr.bf16.mxu1 %v7290_v52  ;;  %v4310_v52 = vrot.slane %v4292_v22, %v8741_v38 }
 0x7bf   :  { %6886 = vmatpush1.bf16.msra.mxu1 %v7292_v48 }
 0x7c0   :  { %6888 = vmatprep.subr.bf16.mxu1 %v7293_v20  ;;  %v4314_v20 = vrot.slane %v4292_v22, %v8747_v10 }
 0x7c3   :  { %6890 = vmatpush1.bf16.msra.mxu1 %v7295_v56 }
 0x7c4   :  { %6892 = vmatprep.subr.bf16.mxu1 %v7296_v41 }
 0x7c7   :  { %6894 = vmatpush1.bf16.msra.mxu1 %v7298_v3 }
 0x7c8   :  { %6896 = vmatprep.subr.bf16.mxu1 %v7299_v12 }
 0x7cb   :  { %6898 = vmatpush1.bf16.msra.mxu1 %v7301_v28 }
 0x7cc   :  { %6900 = vmatprep.subr.bf16.mxu1 %v7302_v0 }
 0x7cf   :  { %6902 = vmatpush1.bf16.msra.mxu1 %v7304_v54 }
 0x7d0   :  { %6904 = vmatprep.subr.bf16.mxu1 %v7305_v18 }
 0x7d3   :  { %6906 = vmatpush1.bf16.msra.mxu1 %v7307_v21 }
 0x7d4   :  { %6908 = vmatprep.subr.bf16.mxu1 %v7308_v58 }
 0x7d7   :  { %6910 = vmatpush1.bf16.msra.mxu1 %v7310_v53 }
 0x7d8   :  { %6912 = vmatprep.subr.bf16.mxu1 %v7311_v37 }
 0x7db   :  { %6914 = vmatpush1.bf16.msra.mxu1 %v7313_v32 }
 0x7dc   :  { %6916 = vmatprep.subr.bf16.mxu1 %v7314_v14 }
 0x7df   :  { %6918 = vmatpush1.bf16.msra.mxu1 %v7316_v55 }
 0x7e0   :  { %6920 = vmatprep.subr.bf16.mxu1 %v7317_v9 }
 0x7e3   :  { %6922 = vmatpush1.bf16.msra.mxu1 %v7319_v11 }
 0x7e4   :  { %6924 = vmatprep.subr.bf16.mxu1 %v7320_v45 }
 0x7e7   :  { %6926 = vmatpush1.bf16.msra.mxu1 %v7322_v49 }
 0x7e8   :  { %6928 = vmatprep.subr.bf16.mxu1 %v7323_v31 }
 0x7eb   :  { %6930 = vmatpush1.bf16.msra.mxu1 %v7325_v57 }
 0x7ec   :  { %6932 = vmatprep.subr.bf16.mxu1 %v7326_v61 }
 0x7ee   :  { %4214 = vmatmul.mubr.f32.vlgmr.msra.gmra.mrb[76].mxu1 %v8785_v16  ;;  %v7361_v16 = vld [vmem:[#allocation8 + $0x2b0] ss:$8 sps:$4 sm:$0xff]  }
 0x7ef   :  { %6934 = vmatpush1.bf16.msra.mxu1 %v7328_v23  ;;  %4284 = vmatprep.mubr.f32.mxu1 %v8793_v8  ;;  %v7370_v8 = vld [vmem:[#allocation8 + $0x2e0] ss:$8 sps:$4 sm:$0xff]  }
 0x7f0   :  { %6936 = vmatprep.subr.bf16.mxu1 %v7329_v2 }
 0x7f3   :  { %6938 = vmatpush1.bf16.msra.mxu1 %v7331_v62 }
 0x7f4   :  { %6940 = vmatprep.subr.bf16.mxu1 %v7332_v30 }
 0x7f7   :  { %6942 = vmatpush1.bf16.msra.mxu1 %v7334_v51 }
 0x7f8   :  { %6944 = vmatprep.subr.bf16.mxu1 %v7335_v15 }
 0x7fb   :  { %6946 = vmatpush1.bf16.msra.mxu1 %v7337_v5 }
 0x7fc   :  { %6948 = vmatprep.subr.bf16.mxu1 %v7338_v34 }
 0x7ff   :  { %6950 = vmatpush1.bf16.msra.mxu1 %v7340_v47 }
 0x800   :  { %6952 = vmatprep.subr.bf16.mxu1 %v7341_v17 }
 0x803   :  { %6954 = vmatpush1.bf16.msra.mxu1 %v7343_v43 }
 0x804   :  { %6956 = vmatprep.subr.bf16.mxu1 %v7344_v26 }
 0x807   :  { %6958 = vmatpush1.bf16.msra.mxu1 %v7346_v7 }
 0x808   :  { %6960 = vmatprep.subr.bf16.mxu1 %v7347_v19  ;;  %v4375_v19 = vld [vmem:[%s8857_s19] sm:$0xf]  ;;  %s7462_s19 = scalar_lea.vmem %s4473_s27, 128 }
 0x809   :  { %p7463_p4 = scmp.ne.s32.totalorder %s4473_s27, %s7462_s19  ;;  %p7468_p6 = scmp.lt.s32.totalorder %s7462_s19, %s7462_s19 }
 0x80b   :  { %6962 = vmatpush1.bf16.msra.mxu1 %v7349_v42  ;;  %p7469_p7 = por %p7468_p6, %p7467_p5 }
 0x80c   :  { %6964 = vmatprep.subr.bf16.mxu1 %v7350_v4  ;;  %v7501_v4 = vmov 1983009808  }
 0x80d   :  { %p7470_p8 = pnand %p7469_p7, %p7463_p4 }
 0x80f   :  { %6966 = vmatpush1.bf16.msra.mxu1 %v7352_v13  ;;  %v4455_v13 = vunpack.c.l.s4 %v7501_v4 }
 0x810   :  { %6968 = vmatprep.subr.bf16.mxu1 %v7353_v35 }
 0x811   :  { %v4456_v35 = vunpack.c.0.s8 %v4455_v13 }
 0x813   :  { %6970 = vmatpush1.bf16.msra.mxu1 %v7355_v44 }
 0x814   :  { %6972 = vmatprep.subr.bf16.mxu1 %v7356_v6  ;;  %v4459_v6 = vsub.s32 %v4456_v35, %v8738_v39 }
 0x817   :  { %6974 = vmatpush1.bf16.msra.mxu1 %v7358_v25 }
 0x818   :  { %6976 = vmatprep.subr.bf16.mxu1 %v7359_v59 }
 0x81b   :  { %6978 = vmatpush1.bf16.msra.mxu1 %v7361_v16 }
 0x81c   :  { %6980 = vmatprep.subr.bf16.mxu1 %v7362_v27 }
 0x81f   :  { %6982 = vmatpush1.bf16.msra.mxu1 %v7364_v60 }
 0x820   :  { %6984 = vmatprep.subr.bf16.mxu1 %v7365_v1 }
 0x823   :  { %6986 = vmatpush1.bf16.msra.mxu1 %v7367_v46 }
 0x824   :  { %6988 = vmatprep.subr.bf16.mxu1 %v7368_v33 }
 0x827   :  { %6990 = vmatpush1.bf16.msra.mxu1 %v7370_v8 }
 0x828   :  { %6992 = vmatprep.subr.bf16.mxu1 %v7371_v40 }
 0x82b   :  { %6994 = vmatpush1.bf16.msra.mxu1 %v7373_v29 }
 0x82e   :  { %4285 = vmatmul.mubr.f32.vlgmr.msra.gmra.mrb[76].mxu1 %v8788_v24 }
 0x901   :  { %v4286_v48 = vpop.f32.mrb[76].mxu1 }
 0x902   :  { %v4304_v56 = vmul.f32 %v4297_v36, %v4286_v48  ;;  %v4288_v41 = vpop.f32.mrb[77].mxu1 }
 0x903   :  { %v4305_v24 = vmul.f32 %v4301_v63, %v4288_v41 }
 0x904   :  { %v4317_v3 = vadd.f32 %v4310_v52, %v4304_v56 }
 0x905   :  { %v4318_v12 = vadd.f32 %v4314_v20, %v4305_v24 }
 0x906   :  { %v4319_v28 = vmax.f32 %v4317_v3, 0.0 }
 0x907   :  { %v4320_v0 = vmax.f32 %v4318_v12, 0.0 }
 0x908   :  { %v4323_v54 = vrot.slane %v4319_v28, 7  ;;  %v4345_v18 = vrot.slane %v4319_v28, 3 }
 0x909   :  { %v4324_v21 = vrot.slane %v4320_v0, 7  ;;  %v4346_v58 = vrot.slane %v4320_v0, 3 }
 0x90a   :  { %v4327_v53 = vsel %vm2358_vm8, 0.0, %v4323_v54  ;;  %v4349_v37 = vsel %vm2358_vm8, 0.0, %v4345_v18 }
 0x90b   :  { %v4329_v38 = vsel %vm1761_vm3, %v4327_v53, 0.0  ;;  %v4351_v32 = vsel %vm1761_vm3, %v4349_v37, 0.0  ;;  %v4328_v10 = vsel %vm2358_vm8, 0.0, %v4324_v21  ;;  %v4350_v14 = vsel %vm2358_vm8, 0.0, %v4346_v58 }
 0x90c   :  { %v4355_v55 = vrot.slane %v4351_v32, 1  ;;  %v4330_v9 = vsel %vm1761_vm3, %v4328_v10, 0.0  ;;  %v4333_v11 = vrot.slane %v4329_v38, 1  ;;  %v4352_v45 = vsel %vm1761_vm3, %v4350_v14, 0.0 }
 0x90d   :  { %v4334_v49 = vrot.slane %v4330_v9, 1  ;;  %v4361_v57 = vrot.slane %v4351_v32, 2  ;;  %v4356_v61 = vrot.slane %v4352_v45, 1  ;;  %v4362_v62 = vrot.slane %v4352_v45, 2 }
 0x90e   :  { %v4359_v31 = vmax.f32 %v4351_v32, %v4355_v55  ;;  %v4337_v51 = vmax.f32 %v4329_v38, %v4333_v11  ;;  %v4340_v15 = vrot.slane %v4330_v9, 2  ;;  %v4339_v34 = vrot.slane %v4329_v38, 2 }
 0x90f   :  { %v4338_v23 = vmax.f32 %v4330_v9, %v4334_v49  ;;  %v4360_v2 = vmax.f32 %v4352_v45, %v4356_v61 }
 0x910   :  { %v4365_v30 = vmax.f32 %v4359_v31, %v4361_v57  ;;  %v4343_v26 = vmax.f32 %v4337_v51, %v4339_v34 }
 0x911   :  { %v4366_v5 = vmax.f32 %v4360_v2, %v4362_v62  ;;  %v4344_v17 = vmax.f32 %v4338_v23, %v4340_v15 }
 0x912   :  { %v4369_v47 = vrot.slane %v4365_v30, 4 }
 0x913   :  { %v4370_v43 = vrot.slane %v4366_v5, 4 }
 0x914   :  { %v4373_v42 = vsel %vm1775_vm6, %v4343_v26, %v4369_v47 }
 0x915   :  { %v4374_v7 = vsel %vm1775_vm6, %v4344_v17, %v4370_v43 }
 0x916   :  { %4380 = vmatprep.subr.mxu0 %v4374_v7 }
 0x917   :  { %4381 = vmatpush1.msra.mxu0 %v4373_v42 }
 0x918   :  { %4535 = vmatmul.mubr.msk.f32.vlgmr.msra.gmra.mrb[108].mxu0 %vm4376_vm13, %v4375_v19 }
 0x9eb   :  { %v4446_v44 = vpop.f32.mrb[108].mxu0 }
 0x9ec   :  { %v4448_v25 = vpop.f32.mrb[109].mxu0 }
 0x9ed   :  { %v4453_v59 = vcombine.low %v4446_v44, %v4448_v25 }
 0x9ef   :  { %v4460_v16 = vrot.slane %v4453_v59, %v4459_v6  ;;  %4536 = vst.sshfl [vmem:[#allocation10] sm:$0x33 pattern:$0x76325410] %v4453_v59 }
 0x9f1   :  { %v4463_v27 = vcombine.high %v4460_v16, %v4460_v16 }
 0x9f3   :  { %4466 = vst [vmem:[#allocation10 + $0x4] sm:$0xf] %v4463_v27 }
 0x9f4   :  { %7473 = shalt.err (!%p7470_p8)
}
 0x9f5   :  { %s7474_s28 = scalar_lea.hbm %s8858_s20, 128 }
 0x9f6   :  { %p7475_p9 = scmp.ne.s32.totalorder %s8858_s20, %s7474_s28  ;;  %p7478_p10 = scmp.lt.u32.totalorder %s7474_s28, %s8858_s20 }
 0x9f8   :  { %p7480_p11 = pnand %p7478_p10, %p7475_p9 }
 0x9fa   :  { %7483 = shalt.err (!%p7480_p11)
}
 0x9fb   :  { %s8925_s1 = smov 64  }
 0x9fc   :  { %4478 = dma.vmem_to_hbm [thread:$0]  %s4473_s27, 128, %s8858_s20, [#allocation4], %s8925_s1, %s8925_s1, %s7495_s0  }
 0x9fd   :  { %7490 = dma.done.wait [#allocation4], 128  }
 0x9fe   :  { %7491 = vsyncadd [#allocation4], 4294967168 }
 0x9ff   :  { %4482 = vsyncpa [#allocation3], 1 }
 0xa00   :  { %4483 = vsyncpa [#allocation6], 1 }
 0xa01   :  { %4484 = vsyncpa [#allocation9], 1 }
 0xa02   :  { %4485 = vsyncpa [#allocation4], 1 }

</bundles_post_ra>
